<compile_context>
chip_gen: v5e
topology: v5e:2x2
jax: 0.10.0
libtpu: 0.0.40
codegen_flags: <defaults>
</compile_context>

<pallas_src>
import functools

import jax
import jax.numpy as jnp
from jax.experimental import pallas as pl
from jax.experimental.pallas import tpu as pltpu

STEM_CH = 32          # efficientnet-b0 stem output channels
STEM_K = 27           # 3*3*3 im2col patch size
STEM_K_PAD = 32       # zero-padded for aligned MXU operand
FEAT_CH = 1280        # dict_sizes['efficientnet-b0']
NUM_CLASSES = 19
NUM_CLASSES_PAD = 128  # lane-dense output, sliced back to 19 in the wrapper


def _pick_spatial_tile(s, max_tile=512):
    """Largest divisor of s that is a multiple of 8 and <= max_tile (fallback: s)."""
    best = None
    for t in range(8, min(s, max_tile) + 1, 8):
        if s % t == 0:
            best = t
    return best if best is not None else s


# ---------------------------------------------------------------------------
# Fused Pallas kernel: stem matmul + swish -> head matmul + swish -> GAP -> dense
# ---------------------------------------------------------------------------
def _fused_effnet_green_kernel(inv_s,
                               patches_ref, stem_w_ref, stem_b_ref,
                               head_w_ref, head_b_ref,
                               dense_w_ref, dense_b_ref,
                               out_ref, acc_ref):
    s_idx = pl.program_id(1)

    @pl.when(s_idx == 0)
    def _init():
        acc_ref[...] = jnp.zeros_like(acc_ref)

    # (TILE_S, 32) bf16 im2col patch rows for this batch / spatial tile.
    p = patches_ref[0]

    # Stem conv (as matmul) + folded-BN bias + swish; f32 accumulation.
    stem = jnp.dot(p, stem_w_ref[...],
                   preferred_element_type=jnp.float32) + stem_b_ref[...]
    stem = stem * jax.nn.sigmoid(stem)                         # (TILE_S, 32) f32

    # Head 1x1 conv to 1280 features + swish; bf16 operands, f32 accumulation.
    head = jnp.dot(stem.astype(jnp.bfloat16), head_w_ref[...],
                   preferred_element_type=jnp.float32) + head_b_ref[...]
    head = head * jax.nn.sigmoid(head)                         # (TILE_S, 1280) f32

    # Global-average-pool: running f32 sum over this tile's rows.
    acc_ref[...] += jnp.sum(head, axis=0, keepdims=True)

    @pl.when(s_idx == pl.num_programs(1) - 1)
    def _finalize():
        pooled = acc_ref[...] * inv_s                          # (1, 1280) f32
        logits = jnp.dot(pooled, dense_w_ref[...],
                         preferred_element_type=jnp.float32) + dense_b_ref[...]
        out_ref[0] = logits                                    # (1, 128) lane-dense store


def fused_effnet_green(patches, stem_w, stem_b, head_w, head_b,
                       dense_w, dense_b, *, tile_s):
    B, S, K = patches.shape
    assert S % tile_s == 0
    inv_s = 1.0 / float(S)
    kernel = functools.partial(_fused_effnet_green_kernel, inv_s)

    out = pl.pallas_call(
        kernel,
        out_shape=jax.ShapeDtypeStruct((B, 1, NUM_CLASSES_PAD), jnp.float32),
        grid=(B, S // tile_s),
        in_specs=[
            pl.BlockSpec((1, tile_s, K), lambda b, s: (b, s, 0)),          # activations
            pl.BlockSpec((K, STEM_CH), lambda b, s: (0, 0)),               # stem_w (bf16)
            pl.BlockSpec((1, STEM_CH), lambda b, s: (0, 0)),               # stem_b (f32)
            pl.BlockSpec((STEM_CH, FEAT_CH), lambda b, s: (0, 0)),         # head_w (bf16)
            pl.BlockSpec((1, FEAT_CH), lambda b, s: (0, 0)),               # head_b (f32)
            pl.BlockSpec((FEAT_CH, NUM_CLASSES_PAD), lambda b, s: (0, 0)),  # dense_w (f32)
            pl.BlockSpec((1, NUM_CLASSES_PAD), lambda b, s: (0, 0)),       # dense_b (f32)
        ],
        out_specs=pl.BlockSpec((1, 1, NUM_CLASSES_PAD), lambda b, s: (b, 0, 0)),
        scratch_shapes=[pltpu.VMEM((1, FEAT_CH), jnp.float32)],            # GAP accumulator
        compiler_params=pltpu.CompilerParams(
            dimension_semantics=("parallel", "arbitrary"),
        ),
    )(patches, stem_w, stem_b, head_w, head_b, dense_w, dense_b)

    return out[:, 0, :NUM_CLASSES]


# ---------------------------------------------------------------------------
# Forward pass
# ---------------------------------------------------------------------------
def classifier_effnet_green_forward(x_nchw, params):
    """x_nchw: (B, 3, H, W) float32 image, PyTorch NCHW convention."""
    # layout: transpose NCHW -> NHWC for TPU kernels (lane = channels).
    x = jnp.transpose(x_nchw, (0, 2, 3, 1)).astype(jnp.float32)
    B, H, W, Cin = x.shape

    # ---- EfficientNet stem: im2col for a 3x3 stride-2 TF-"same" conv ----
    # TODO(synk): this SAME padding assumes even H, W (odd sizes need ceil(H/2) + asym pad).
    Ho, Wo = H // 2, W // 2
    xp = jnp.pad(x, ((0, 0), (0, 1), (0, 1), (0, 0)))
    taps = [xp[:, dy:dy + 2 * Ho:2, dx:dx + 2 * Wo:2, :]
            for dy in range(3) for dx in range(3)]
    patches = jnp.concatenate(taps, axis=-1).reshape(B, Ho * Wo, 9 * Cin)
    k = 9 * Cin
    patches = jnp.pad(patches, ((0, 0), (0, 0), (0, STEM_K_PAD - k)))
    patches = patches.astype(jnp.bfloat16)

    # Weights: pad stem K to 32, pad dense output to 128 lanes; matmul operands -> bf16.
    stem_w = jnp.pad(params["stem_w"], ((0, STEM_K_PAD - k), (0, 0))).astype(jnp.bfloat16)
    stem_b = params["stem_b"].reshape(1, STEM_CH).astype(jnp.float32)
    head_w = params["head_w"].astype(jnp.bfloat16)
    head_b = params["head_b"].reshape(1, FEAT_CH).astype(jnp.float32)
    dense_w = jnp.pad(params["dense_w"],
                      ((0, 0), (0, NUM_CLASSES_PAD - NUM_CLASSES))).astype(jnp.float32)
    dense_b = jnp.pad(params["dense_b"],
                      (0, NUM_CLASSES_PAD - NUM_CLASSES)).reshape(1, NUM_CLASSES_PAD)
    dense_b = dense_b.astype(jnp.float32)

    # TODO(synk): the 16 MBConv blocks of EfficientNet-b0 (depthwise convs, SE blocks,
    # residuals from the external `efficientnet_pytorch` library) are not reproduced here.

    S = Ho * Wo
    tile_s = _pick_spatial_tile(S)

    # ---- stem + head(1x1) + swish + global-average-pool + dense(1280->19), one kernel ----
    logits = fused_effnet_green(patches, stem_w, stem_b, head_w, head_b,
                                dense_w, dense_b, tile_s=tile_s)
    return logits


def init_params(key):
    k1, k2, k3, k4 = jax.random.split(key, 4)
    params = {
        # stem conv weights flattened as (ky*kx*cin, cout) to match im2col ordering
        "stem_w": 0.05 * jax.random.normal(k1, (STEM_K, STEM_CH), jnp.float32),
        "stem_b": jnp.zeros((STEM_CH,), jnp.float32),
        # head 1x1 conv: (cin, cout)
        "head_w": 0.05 * jax.random.normal(k2, (STEM_CH, FEAT_CH), jnp.float32),
        "head_b": jnp.zeros((FEAT_CH,), jnp.float32),
        # self.dense = nn.Linear(1280, 19); stored as (in, out) so logits = x @ W + b
        "dense_w": 0.05 * jax.random.normal(k3, (FEAT_CH, NUM_CLASSES), jnp.float32),
        "dense_b": 0.01 * jax.random.normal(k4, (NUM_CLASSES,), jnp.float32),
    }
    return params


if __name__ == "__main__":
    root = jax.random.PRNGKey(0)
    k_params, k_input = jax.random.split(root)
    params = init_params(k_params)
    x = jax.random.normal(k_input, (2, 3, 16, 16), jnp.float32)   # NCHW image

    forward = jax.jit(classifier_effnet_green_forward)
    logits = forward(x, params)
    logits = jax.block_until_ready(logits)

    assert logits.shape == (2, NUM_CLASSES), logits.shape
    assert logits.dtype == jnp.float32
    assert bool(jnp.all(jnp.isfinite(logits)))
    print("KERNEL_OK")
</pallas_src>

<mosaic_0001>
module attributes {stable_mosaic.version = 11 : i64} {
  func.func @_fused_effnet_green_kernel(%arg0: i32, %arg1: i32, %arg2: memref<1x64x32xbf16, #tpu.memory_space<vmem>>, %arg3: memref<32x32xbf16, #tpu.memory_space<vmem>>, %arg4: memref<1x32xf32, #tpu.memory_space<vmem>>, %arg5: memref<32x1280xbf16, #tpu.memory_space<vmem>>, %arg6: memref<1x1280xf32, #tpu.memory_space<vmem>>, %arg7: memref<1280x128xf32, #tpu.memory_space<vmem>>, %arg8: memref<1x128xf32, #tpu.memory_space<vmem>>, %arg9: memref<1x1x128xf32, #tpu.memory_space<vmem>>, %arg10: memref<1x1280xf32, #tpu.memory_space<vmem>>) attributes {dimension_semantics = [#tpu.dimension_semantics<parallel>, #tpu.dimension_semantics<arbitrary>], iteration_bounds = array<i64: 2, 1>, scalar_prefetch = 0 : i64, scratch_operands = 1 : i64, tpu.core_type = #tpu.core_type<tc>, window_params = [{transform_indices = @transform_0, window_bounds = array<i64: 1, 64, 32>}, {pipeline_mode = #tpu.pipeline_mode<synchronous>, transform_indices = @transform_1, window_bounds = array<i64: 32, 32>}, {pipeline_mode = #tpu.pipeline_mode<synchronous>, transform_indices = @transform_2, window_bounds = array<i64: 1, 32>}, {pipeline_mode = #tpu.pipeline_mode<synchronous>, transform_indices = @transform_3, window_bounds = array<i64: 32, 1280>}, {pipeline_mode = #tpu.pipeline_mode<synchronous>, transform_indices = @transform_4, window_bounds = array<i64: 1, 1280>}, {pipeline_mode = #tpu.pipeline_mode<synchronous>, transform_indices = @transform_5, window_bounds = array<i64: 1280, 128>}, {pipeline_mode = #tpu.pipeline_mode<synchronous>, transform_indices = @transform_6, window_bounds = array<i64: 1, 128>}, {transform_indices = @transform_7, window_bounds = array<i64: 1, 1, 128>}]} {
    %c0_i32 = arith.constant 0 : i32
    %0 = arith.cmpi eq, %arg1, %c0_i32 : i32
    %1 = arith.extui %0 : i1 to i32
    %c0_i32_0 = arith.constant 0 : i32
    %2 = arith.cmpi ne, %1, %c0_i32_0 : i32
    scf.if %2 {
      %cst_21 = arith.constant 0.000000e+00 : f32
      %36 = vector.broadcast %cst_21 : f32 to vector<1x1280xf32>
      %c0_22 = arith.constant 0 : index
      %c0_23 = arith.constant 0 : index
      %37 = vector.load %arg10[%c0_22, %c0_23] : memref<1x1280xf32, #tpu.memory_space<vmem>>, vector<1x1280xf32>
      tpu.vector_store %arg10[%c0_22, %c0_23], %36 {strides = array<i32>} : memref<1x1280xf32, #tpu.memory_space<vmem>>, vector<1x1280xf32>,
    } else {
    }
    %c0 = arith.constant 0 : index
    %c0_1 = arith.constant 0 : index
    %c0_2 = arith.constant 0 : index
    %3 = vector.load %arg2[%c0, %c0_1, %c0_2] : memref<1x64x32xbf16, #tpu.memory_space<vmem>>, vector<1x64x32xbf16>
    %4 = vector.shape_cast %3 : vector<1x64x32xbf16> to vector<64x32xbf16>
    %c0_3 = arith.constant 0 : index
    %c0_4 = arith.constant 0 : index
    %5 = vector.load %arg3[%c0_3, %c0_4] : memref<32x32xbf16, #tpu.memory_space<vmem>>, vector<32x32xbf16>
    %cst = arith.constant dense<0.000000e+00> : vector<64x32xf32>
    %6 = tpu.matmul %4, %5, %cst {dimension_numbers = #tpu.dot_dimension_numbers<[1], [0], [0], [1], [0, 0, 1, 1], [], []>} : vector<64x32xbf16>, vector<32x32xbf16>, vector<64x32xf32> -> vector<64x32xf32>
    %c0_5 = arith.constant 0 : index
    %c0_6 = arith.constant 0 : index
    %7 = vector.load %arg4[%c0_5, %c0_6] : memref<1x32xf32, #tpu.memory_space<vmem>>, vector<1x32xf32>
    %8 = vector.broadcast %7 : vector<1x32xf32> to vector<64x32xf32>
    %9 = arith.addf %6, %8 : vector<64x32xf32>
    %10 = arith.negf %9 : vector<64x32xf32>
    %11 = math.exp %10 : vector<64x32xf32>
    %cst_7 = arith.constant 1.000000e+00 : f32
    %12 = vector.broadcast %cst_7 : f32 to vector<64x32xf32>
    %13 = arith.addf %12, %11 : vector<64x32xf32>
    %14 = arith.divf %12, %13 : vector<64x32xf32>
    %15 = arith.mulf %9, %14 : vector<64x32xf32>
    %16 = arith.truncf %15 : vector<64x32xf32> to vector<64x32xbf16>
    %c0_8 = arith.constant 0 : index
    %c0_9 = arith.constant 0 : index
    %17 = vector.load %arg5[%c0_8, %c0_9] : memref<32x1280xbf16, #tpu.memory_space<vmem>>, vector<32x1280xbf16>
    %cst_10 = arith.constant dense<0.000000e+00> : vector<64x1280xf32>
    %18 = tpu.matmul %16, %17, %cst_10 {dimension_numbers = #tpu.dot_dimension_numbers<[1], [0], [0], [1], [0, 0, 1, 1], [], []>} : vector<64x32xbf16>, vector<32x1280xbf16>, vector<64x1280xf32> -> vector<64x1280xf32>
    %c0_11 = arith.constant 0 : index
    %c0_12 = arith.constant 0 : index
    %19 = vector.load %arg6[%c0_11, %c0_12] : memref<1x1280xf32, #tpu.memory_space<vmem>>, vector<1x1280xf32>
    %20 = vector.broadcast %19 : vector<1x1280xf32> to vector<64x1280xf32>
    %21 = arith.addf %18, %20 : vector<64x1280xf32>
    %22 = arith.negf %21 : vector<64x1280xf32>
    %23 = math.exp %22 : vector<64x1280xf32>
    %cst_13 = arith.constant 1.000000e+00 : f32
    %24 = vector.broadcast %cst_13 : f32 to vector<64x1280xf32>
    %25 = arith.addf %24, %23 : vector<64x1280xf32>
    %26 = arith.divf %24, %25 : vector<64x1280xf32>
    %27 = arith.mulf %21, %26 : vector<64x1280xf32>
    %c0_14 = arith.constant 0 : index
    %c0_15 = arith.constant 0 : index
    %28 = vector.load %arg10[%c0_14, %c0_15] : memref<1x1280xf32, #tpu.memory_space<vmem>>, vector<1x1280xf32>
    %cst_16 = arith.constant dense<0.000000e+00> : vector<1280xf32>
    %29 = vector.multi_reduction <add>, %27, %cst_16 [0] : vector<64x1280xf32> to vector<1280xf32>
    %30 = vector.shape_cast %29 : vector<1280xf32> to vector<1x1280xf32>
    %31 = arith.addf %28, %30 : vector<1x1280xf32>
    %c0_17 = arith.constant 0 : index
    %c0_18 = arith.constant 0 : index
    %32 = vector.load %arg10[%c0_17, %c0_18] : memref<1x1280xf32, #tpu.memory_space<vmem>>, vector<1x1280xf32>
    tpu.vector_store %arg10[%c0_17, %c0_18], %31 {strides = array<i32>} : memref<1x1280xf32, #tpu.memory_space<vmem>>, vector<1x1280xf32>,
    %c0_i32_19 = arith.constant 0 : i32
    %33 = arith.cmpi eq, %arg1, %c0_i32_19 : i32
    %34 = arith.extui %33 : i1 to i32
    %c0_i32_20 = arith.constant 0 : i32
    %35 = arith.cmpi ne, %34, %c0_i32_20 : i32
    scf.if %35 {
      %c0_21 = arith.constant 0 : index
      %c0_22 = arith.constant 0 : index
      %36 = vector.load %arg10[%c0_21, %c0_22] : memref<1x1280xf32, #tpu.memory_space<vmem>>, vector<1x1280xf32>
      %cst_23 = arith.constant 1.562500e-02 : f32
      %37 = vector.broadcast %cst_23 : f32 to vector<1x1280xf32>
      %38 = arith.mulf %36, %37 : vector<1x1280xf32>
      %c0_24 = arith.constant 0 : index
      %c0_25 = arith.constant 0 : index
      %39 = vector.load %arg7[%c0_24, %c0_25] : memref<1280x128xf32, #tpu.memory_space<vmem>>, vector<1280x128xf32>
      %cst_26 = arith.constant dense<0.000000e+00> : vector<1x128xf32>
      %40 = tpu.matmul %38, %39, %cst_26 {dimension_numbers = #tpu.dot_dimension_numbers<[1], [0], [0], [1], [0, 0, 1, 1], [], []>} : vector<1x1280xf32>, vector<1280x128xf32>, vector<1x128xf32> -> vector<1x128xf32>
      %c0_27 = arith.constant 0 : index
      %c0_28 = arith.constant 0 : index
      %41 = vector.load %arg8[%c0_27, %c0_28] : memref<1x128xf32, #tpu.memory_space<vmem>>, vector<1x128xf32>
      %42 = arith.addf %40, %41 : vector<1x128xf32>
      %c0_29 = arith.constant 0 : index
      %c0_30 = arith.constant 0 : index
      %c0_31 = arith.constant 0 : index
      %43 = vector.load %arg9[%c0_29, %c0_30, %c0_31] : memref<1x1x128xf32, #tpu.memory_space<vmem>>, vector<1x1x128xf32>
      %44 = vector.shape_cast %43 : vector<1x1x128xf32> to vector<1x128xf32>
      %45 = vector.shape_cast %42 : vector<1x128xf32> to vector<1x1x128xf32>
      tpu.vector_store %arg9[%c0_29, %c0_30, %c0_31], %45 {strides = array<i32>} : memref<1x1x128xf32, #tpu.memory_space<vmem>>, vector<1x1x128xf32>,
    } else {
    }
    return
  }
  func.func @transform_0(%arg0: i32, %arg1: i32) -> (i32, i32, i32) {
    %c0_i32 = arith.constant 0 : i32
    %c0_i32_0 = arith.constant 0 : i32
    return %arg0, %arg1, %c0_i32 : i32, i32, i32
  }
  func.func @transform_1(%arg0: i32, %arg1: i32) -> (i32, i32) {
    %c0_i32 = arith.constant 0 : i32
    %c0_i32_0 = arith.constant 0 : i32
    %c0_i32_1 = arith.constant 0 : i32
    return %c0_i32, %c0_i32_0 : i32, i32
  }
  func.func @transform_2(%arg0: i32, %arg1: i32) -> (i32, i32) {
    %c0_i32 = arith.constant 0 : i32
    %c0_i32_0 = arith.constant 0 : i32
    %c0_i32_1 = arith.constant 0 : i32
    return %c0_i32, %c0_i32_0 : i32, i32
  }
  func.func @transform_3(%arg0: i32, %arg1: i32) -> (i32, i32) {
    %c0_i32 = arith.constant 0 : i32
    %c0_i32_0 = arith.constant 0 : i32
    %c0_i32_1 = arith.constant 0 : i32
    return %c0_i32, %c0_i32_0 : i32, i32
  }
  func.func @transform_4(%arg0: i32, %arg1: i32) -> (i32, i32) {
    %c0_i32 = arith.constant 0 : i32
    %c0_i32_0 = arith.constant 0 : i32
    %c0_i32_1 = arith.constant 0 : i32
    return %c0_i32, %c0_i32_0 : i32, i32
  }
  func.func @transform_5(%arg0: i32, %arg1: i32) -> (i32, i32) {
    %c0_i32 = arith.constant 0 : i32
    %c0_i32_0 = arith.constant 0 : i32
    %c0_i32_1 = arith.constant 0 : i32
    return %c0_i32, %c0_i32_0 : i32, i32
  }
  func.func @transform_6(%arg0: i32, %arg1: i32) -> (i32, i32) {
    %c0_i32 = arith.constant 0 : i32
    %c0_i32_0 = arith.constant 0 : i32
    %c0_i32_1 = arith.constant 0 : i32
    return %c0_i32, %c0_i32_0 : i32, i32
  }
  func.func @transform_7(%arg0: i32, %arg1: i32) -> (i32, i32, i32) {
    %c0_i32 = arith.constant 0 : i32
    %c0_i32_0 = arith.constant 0 : i32
    %c0_i32_1 = arith.constant 0 : i32
    return %arg0, %c0_i32, %c0_i32_0 : i32, i32, i32
  }
}

</mosaic_0001>

<bundles_post_ra>
// kernel: classifier_effnet_green_forward.1
= control target key start
LH: loop header
LB: loop body
LE: loop exit
PB: predicated region body
PF: predicated region fallthrough
CT: control target
= control target key end

     0   :  { %12 = vsyncpa [#allocation4], 0  ;;  %s7453_s0 = inlined_call_operand.vmem [shape: bf16[2,64,32], index: 0, kind: input, shape index: {}]   ;;  %s7454_s1 = inlined_call_operand.vmem [shape: bf16[32,32], index: 1, kind: input, shape index: {}]   ;;  %s7455_s2 = inlined_call_operand.vmem [shape: f32[1,32], index: 2, kind: input, shape index: {}]   ;;  %s7456_s3 = inlined_call_operand.vmem [shape: bf16[32,1280], index: 3, kind: input, shape index: {}]   ;;  %s7457_s4 = inlined_call_operand.vmem [shape: f32[1,1280], index: 4, kind: input, shape index: {}]   ;;  %s7458_s5 = inlined_call_operand.vmem [shape: f32[1280,128], index: 5, kind: input, shape index: {}]   ;;  %s7459_s6 = inlined_call_operand.vmem [shape: f32[1,128], index: 6, kind: input, shape index: {}]   ;;  %s7460_s7 = inlined_call_operand.hbm [shape: f32[2,1,128], index: 7, kind: output, shape index: {}]  }
   0x1   :  { %14 = vsyncpa [#allocation4 + $0x1], 0  ;;  %s4066_s24 = smov 0   ;;  %s4068_s25 = smov 0  }
   0x2   :  { %s4070_s26 = smov 0   ;;  %s4072_s27 = smov 0  }
   0x3   :  { %s4074_s28 = smov 0   ;;  %s4076_s29 = smov 0  }
   0x4 LB: > { %s3263_s30 = sadd.s32 4294967295, %s4023_s29   ;;  %s3264_s8 = sadd.s32 4294967294, %s4023_s29   ;;  %s4023_s29 = sphi %s4076_s29, %s20_s29   ;;  %s4019_s28 = sphi %s4074_s28, %s7697_s28   ;;  %s4015_s27 = sphi %s4072_s27, %s7696_s27   ;;  %s4011_s26 = sphi %s4070_s26, %s7695_s26   ;;  %s4007_s25 = sphi %s4068_s25, %s7694_s25   ;;  %s4003_s24 = sphi %s4066_s24, %s7693_s24  }
   0x5   : > { %s32_s9 = sadd.s32 1, %s4019_s28  ;;  %s193_s10 = sadd.s32 1, %s4011_s26 }
   0x6   : > { %p34_p0 = scmp.ge.s32.totalorder %s32_s9, 2  ;;  %p203_p1 = scmp.ne.s32.totalorder %s4011_s26, %s4007_s25 }
   0x7   : > { %p204_p2 = scmp.eq.s32.totalorder %s3263_s30, 1  ;;  %p209_p3 = scmp.ne.s32.totalorder %s4007_s25, %s4003_s24 }
   0x8   : > { %s7699_s9 = smov (%p34_p0, %s32_s9), 0  ;;  %p210_p5 = scmp.eq.s32.totalorder %s3264_s8, 1 }
   0x9   : > { %p4106_p4 = por %p204_p2, %p203_p1  ;;  %s190_s12 = ssub.s32 %s4019_s28, %s7699_s9 }
   0xa   : > { %p3267_p6 = scmp.ge.s32.totalorder %s4023_s29, 1  ;;  %p191_p7 = scmp.eq.s32.totalorder %s190_s12, 0 }
   0xb   : > { %p4113_p8 = por %p210_p5, %p209_p3  ;;  %p259_p9 = scmp.lt.s32.totalorder %s4023_s29, 3 }
   0xc   : > { %s4119_s14 = scalar_select %p191_p7, %s4011_s26, %s193_s10  }
   0xd   : > { %p260_p10 = pnand %p3267_p6, %p259_p9 }
   0xf   : > { %263 = sbr.rel (%p260_p10) target bundleno = 905 (0x389), region = 48 }
  0x14   : > { %v3514_v0 = vld [vmem:[%s7454_s1 + $0x8] sm:$0xff]  ;;  %p295_p11 = scmp.lt.s32.totalorder %s4015_s27, 1  ;;  %v3513_v1 = vld [vmem:[%s7454_s1] sm:$0xff]  ;;  %vm363_vm0 = vcmask 261120   ;;  %v3526_v9 = vld [vmem:[%s7456_s3 + $0x5c] sm:$0xf]  ;;  %s3190_s21 = scalar_lea.hbm %s7460_s7, %s4015_s27 }
  0x15   : > { %382 = vmatpush.bf16.msra.mxu0 %v3514_v0  ;;  %v4139_v6 = vld [vmem:[%s7455_s2] ss:$0 sm:$0xff]  ;;  %v3358_v10 = vld [vmem:[%s7456_s3 + $0x80] sm:$0xf0]  ;;  %v3348_v12 = vld [vmem:[%s7456_s3 + $0x50] sm:$0xf] }
  0x16   : > { %s296_s19 = scalar_select %p295_p11, %s4015_s27, 1  ;;  %v3361_v11 = vor.u32 %v3526_v9, %v3358_v10  ;;  %v3530_v13 = vld [vmem:[%s7456_s3 + $0x74] sm:$0xf0]  ;;  %v3525_v14 = vld [vmem:[%s7456_s3 + $0x54] sm:$0xf] }
  0x17   : > { %v3349_v16 = vor.u32 %v3530_v13, %v3348_v12  ;;  %v3350_v17 = vld [vmem:[%s7456_s3 + $0x78] sm:$0xf0]  ;;  %v3356_v18 = vld [vmem:[%s7456_s3 + $0x58] sm:$0xf]  ;;  %v3531_v20 = vld [vmem:[%s7456_s3 + $0x7c] sm:$0xf0] }
  0x18   : > { %s3508_s20 = sshll.u32 %s296_s19, 5  ;;  %v3353_v19 = vor.u32 %v3525_v14, %v3350_v17  ;;  %v3357_v21 = vor.u32 %v3531_v20, %v3356_v18  ;;  %v3308_v22 = vld [vmem:[%s7456_s3] sm:$0xf]  ;;  %v3520_v23 = vld [vmem:[%s7456_s3 + $0x24] sm:$0xf0]  ;;  %s292_s18 = sand.u32 1, %s4007_s25  }
  0x19   : > { %s302_s23 = scalar_lea.vmem %s7453_s0, %s3508_s20  ;;  %383 = vmatpush.bf16.msra.mxu0 %v3513_v1  ;;  %731 = vmatpush.bf16.msra.mxu1 %v3349_v16  ;;  %v3515_v24 = vld [vmem:[%s7456_s3 + $0x4] sm:$0xf]  ;;  %v3309_v25 = vor.u32 %v3520_v23, %v3308_v22  ;;  %v3310_v26 = vld [vmem:[%s7456_s3 + $0x28] sm:$0xf0]  ;;  %v3316_v27 = vld [vmem:[%s7456_s3 + $0x8] sm:$0xf] }
  0x1a   : > { %v3509_v2 = vld [vmem:[%s302_s23] sm:$0xff]  ;;  %v3510_v3 = vld [vmem:[%s302_s23 + $0x8] sm:$0xff]  ;;  %v3511_v4 = vld [vmem:[%s302_s23 + $0x10] sm:$0xff]  ;;  %760 = vmatpush.bf16.msra.mxu2 %v3353_v19  ;;  %789 = vmatpush.bf16.msra.mxu3 %v3357_v21  ;;  %v3313_v30 = vor.u32 %v3515_v24, %v3310_v26  ;;  %s293_s22 = scalar_lea.vmem [#allocation3], %s292_s18  ;;  %s3194_s30 = sshll.u32 %s3190_s21, 4  ;;  %s3195_s30 = int_to_ptr.hbm [resolvable:$true] %s3194_s30 }
  0x1b   : > { %v3512_v5 = vld [vmem:[%s302_s23 + $0x18] sm:$0xff]  ;;  %v3521_v28 = vld [vmem:[%s7456_s3 + $0x2c] sm:$0xf0]  ;;  %v3516_v32 = vld [vmem:[%s7456_s3 + $0xc] sm:$0xf]  ;;  %s3192_s23 = sshll.u32 %s293_s22, 4  ;;  %s3193_s23 = int_to_ptr.vmem [resolvable:$true] %s3192_s23 }
  0x1c   : > { %3294 = vmatmul.msk.bf16.vlgmr.msra.gmra.mxu0 %vm363_vm0, %v3509_v2  ;;  %v3317_v31 = vor.u32 %v3521_v28, %v3316_v27  ;;  %v3318_v33 = vld [vmem:[%s7456_s3 + $0x30] sm:$0xf0]  ;;  %v3527_v22 = vld [vmem:[%s7456_s3 + $0x64] sm:$0xf]  ;;  %v3366_v23 = vld [vmem:[%s7456_s3 + $0x88] sm:$0xf0] }
  0x1d   : > { %818 = vmatpush.bf16.msrb.mxu0 %v3361_v11  ;;  %732 = vmatpush.bf16.msra.mxu1 %v3309_v25  ;;  %v3321_v35 = vor.u32 %v3516_v32, %v3318_v33  ;;  %v3369_v24 = vor.u32 %v3527_v22, %v3366_v23  ;;  %v3364_v33 = vld [vmem:[%s7456_s3 + $0x60] sm:$0xf]  ;;  %s3182_s8 = scalar_lea.sflag [#allocation4], %s292_s18  ;;  %s3959_s10 = sshra.s32 %s3195_s30, 4  ;;  %s3960_s10 = int_to_ptr.hbm [resolvable:$true] %s3959_s10 }
  0x1e   : > { %761 = vmatpush.bf16.msra.mxu2 %v3313_v30  ;;  %790 = vmatpush.bf16.msra.mxu3 %v3317_v31  ;;  %s3961_s12 = scalar_lea.hbm %s3960_s10, 1  ;;  %s3965_s16 = scalar_lea.hbm %s7460_s7, 2 }
  0x1f   : > { %p3962_p12 = scmp.ne.s32.totalorder %s3960_s10, %s3961_s12  ;;  %p3966_p1 = scmp.lt.s32.totalorder %s3960_s10, %s7460_s7 }
  0x20   : > { %p3967_p2 = scmp.lt.s32.totalorder %s3965_s16, %s3961_s12 }
  0x21   : > { %819 = vmatpush.bf16.msrb.mxu0 %v3321_v35  ;;  %p3963_p13 = pnand %p3962_p12, %p4106_p4 }
  0x22   : > { %876 = vmatpush.bf16.msrb.mxu2 %v3369_v24  ;;  %p3968_p3 = por %p3967_p2, %p3966_p1 }
  0x23   : > { %p3964_p0 = pneg %p3963_p13 }
  0x25   : > { %p3969_p5 = pnand %p3968_p3, %p3964_p0 }
  0x2c   : > { %3295 = vmatmul.msk.bf16.gmra.mxu0 %vm363_vm0, %v3510_v3 }
  0x3c   : > { %3296 = vmatmul.msk.bf16.gmra.mxu0 %vm363_vm0, %v3511_v4 }
  0x4c   : > { %3297 = vmatmul.msk.bf16.gmra.mxu0 %vm363_vm0, %v3512_v5 }
  0x99   : > { %v385_v7 = vpop.f32.mrf.mxu0 }
  0x9a   : > { %v4142_v8 = vadd.f32 %v4139_v6, %v385_v7 }
  0x9c   : > { %v3298_v15 = vmul.f32 -1.442695, %v4142_v8 }
  0x9e   : > { %3592 = vpow2.f32 %v3298_v15 }
  0xa1   : > { %v387_v29 = vpop.f32.mrf.mxu0 }
  0xa2   : > { %v4194_v34 = vadd.f32 %v4139_v6, %v387_v29 }
  0xa4   : > { %v3593_v36 = vpop.eup %3592  ;;  %v3299_v37 = vmul.f32 -1.442695, %v4194_v34 }
  0xa5   : > { %v429_v38 = vadd.f32 1.0, %v3593_v36 }
  0xa6   : > { %3594 = vpow2.f32 %v3299_v37 }
  0xa7   : > { %3596 = vrcp.f32 %v429_v38  ;;  %v448_v56 = vand.u32 2147483648, %v429_v38  ;;  %vm442_vm2 = vweird.f32 %v429_v38  ;;  %v446_v57 = vand.u32 2147483647, %v429_v38 }
  0xa9   : > { %v390_v39 = vpop.f32.mrf.mxu0  ;;  %v449_v2 = vor.u32 1.1754944e-38, %v448_v56  ;;  %vm447_vm5 = vcmp.eq.f32.partialorder %v446_v57, 8.507059e+37 }
  0xaa   : > { %v4198_v40 = vadd.f32 %v4139_v6, %v390_v39 }
  0xac   : > { %v3595_v41 = vpop.eup %3594  ;;  %v3300_v42 = vmul.f32 -1.442695, %v4198_v40 }
  0xad   : > { %v3597_v43 = vpop.eup %3596  ;;  %v430_v44 = vadd.f32 1.0, %v3595_v41 }
  0xae   : > { %v438_v45 = vmul.f32 %v3597_v43, %v429_v38  ;;  %3598 = vpow2.f32 %v3300_v42  ;;  %vm443_vm1 = vweird.f32 %v3597_v43 }
  0xaf   : > { %3600 = vrcp.f32 %v430_v44  ;;  %vm4208_vm3 = vmor %vm442_vm2, %vm443_vm1  ;;  %v461_v60 = vand.u32 2147483647, %v430_v44  ;;  %v463_v61 = vand.u32 2147483648, %v430_v44  ;;  %vm457_vm6 = vweird.f32 %v430_v44 }
  0xb0   : > { %v439_v46 = vsub.f32 1.0, %v438_v45 }
  0xb1   : > { %v392_v47 = vpop.f32.mrf.mxu0  ;;  %v464_v10 = vor.u32 1.1754944e-38, %v463_v61  ;;  %vm462_vm8 = vcmp.eq.f32.partialorder %v461_v60, 8.507059e+37 }
  0xb2   : > { %v440_v48 = vmul.f32 %v3597_v43, %v439_v46  ;;  %v4202_v49 = vadd.f32 %v4139_v6, %v392_v47 }
  0xb4   : > { %v3599_v50 = vpop.eup %3598  ;;  %v3301_v51 = vmul.f32 -1.442695, %v4202_v49  ;;  %v441_v54 = vadd.f32 %v3597_v43, %v440_v48 }
  0xb5   : > { %v3601_v52 = vpop.eup %3600  ;;  %v4205_v53 = vadd.f32 1.0, %v3599_v50 }
  0xb6   : > { %v453_v55 = vmul.f32 %v3601_v52, %v430_v44  ;;  %3602 = vpow2.f32 %v3301_v51  ;;  %v445_v63 = vsel %vm4208_vm3, %v3597_v43, %v441_v54  ;;  %vm458_vm4 = vweird.f32 %v3601_v52 }
  0xb7   : > { %3604 = vrcp.f32 %v4205_v53  ;;  %v450_v9 = vsel %vm447_vm5, %v449_v2, %v445_v63  ;;  %vm459_vm7 = vmor %vm457_vm6, %vm458_vm4  ;;  %v476_v30 = vand.u32 2147483647, %v4205_v53  ;;  %v478_v31 = vand.u32 2147483648, %v4205_v53  ;;  %v3372_v63 = vld [vmem:[%s7456_s3 + $0x68] sm:$0xf] }
  0xb8   : > { %v454_v58 = vsub.f32 1.0, %v453_v55  ;;  %v557_v15 = vmul.f32 %v450_v9, %v4142_v8  ;;  %vm472_vm10 = vweird.f32 %v4205_v53  ;;  %v3374_v2 = vld [vmem:[%s7456_s3 + $0x90] sm:$0xf0]  ;;  %v3324_v9 = vld [vmem:[%s7456_s3 + $0x10] sm:$0xf] }
  0xb9   : > { %v395_v62 = vpop.f32.mrf.mxu0  ;;  %v479_v44 = vor.u32 1.1754944e-38, %v478_v31  ;;  %vm477_vm13 = vcmp.eq.f32.partialorder %v476_v30, 8.507059e+37 }
  0xba   : > { %v455_v0 = vmul.f32 %v3601_v52, %v454_v58  ;;  %v4215_v1 = vadd.f32 %v4139_v6, %v395_v62 }
  0xbc   : > { %v3603_v3 = vpop.eup %3602  ;;  %v456_v4 = vadd.f32 %v3601_v52, %v455_v0  ;;  %v3302_v5 = vmul.f32 -1.442695, %v4215_v1  ;;  %v3533_v0 = vld [vmem:[%s7456_s3 + $0x8c] sm:$0xf0] }
  0xbd   : > { %v3605_v7 = vpop.eup %3604  ;;  %v432_v11 = vadd.f32 1.0, %v3603_v3 }
  0xbe   : > { %v460_v12 = vsel %vm459_vm7, %v3601_v52, %v456_v4  ;;  %v468_v13 = vmul.f32 %v3605_v7, %v4205_v53  ;;  %3606 = vpow2.f32 %v3302_v5  ;;  %vm473_vm9 = vweird.f32 %v3605_v7 }
  0xbf   : > { %v465_v14 = vsel %vm462_vm8, %v464_v10, %v460_v12  ;;  %3608 = vrcp.f32 %v432_v11  ;;  %vm4253_vm11 = vmor %vm472_vm10, %vm473_vm9  ;;  %v491_v36 = vand.u32 2147483647, %v432_v11  ;;  %v493_v37 = vand.u32 2147483648, %v432_v11 }
  0xc0   : > { %v558_v16 = vmul.f32 %v465_v14, %v4194_v34  ;;  %v469_v17 = vsub.f32 1.0, %v468_v13  ;;  %v3532_v34 = vld [vmem:[%s7456_s3 + $0x84] sm:$0xf0]  ;;  %vm487_vm14 = vweird.f32 %v432_v11  ;;  %v3522_v13 = vld [vmem:[%s7456_s3 + $0x34] sm:$0xf0] }
  0xc1   : > { %v397_v18 = vpop.f32.mrf.mxu0  ;;  %v3365_v39 = vor.u32 %v3532_v34, %v3364_v33  ;;  %v494_v51 = vor.u32 1.1754944e-38, %v493_v37  ;;  %vm492_vm1 = vcmp.eq.f32.partialorder %v491_v36, 8.507059e+37  ;;  %v3332_v14 = vld [vmem:[%s7456_s3 + $0x18] sm:$0xf] }
  0xc2   : > { %v4221_v19 = vpack.c.bf16 %v558_v16, %v557_v15  ;;  %v470_v20 = vmul.f32 %v3605_v7, %v469_v17  ;;  %v4224_v21 = vadd.f32 %v4139_v6, %v397_v18  ;;  %v3523_v17 = vld [vmem:[%s7456_s3 + $0x3c] sm:$0xf0]  ;;  %v3518_v18 = vld [vmem:[%s7456_s3 + $0x1c] sm:$0xf] }
  0xc3   : > { %847 = vmatpush.bf16.msrb.mxu1 %v3365_v39 }
  0xc4   : > { %v3607_v8 = vpop.eup %3606  ;;  %v3303_v25 = vmul.f32 -1.442695, %v4224_v21  ;;  %3386 = vmatmul.msk.bf16.vlgmr.msra.gmra.mxu1 %vm363_vm0, %v4221_v19  ;;  %3390 = vmatmul.msk.bf16.vlgmr.msra.gmra.mxu2 %vm363_vm0, %v4221_v19  ;;  %v471_v28 = vadd.f32 %v3605_v7, %v470_v20  ;;  %v3334_v20 = vld [vmem:[%s7456_s3 + $0x40] sm:$0xf0] }
  0xc5   : > { %v3609_v26 = vpop.eup %3608  ;;  %v4237_v27 = vadd.f32 1.0, %v3607_v8  ;;  %3394 = vmatmul.msk.bf16.vlgmr.msra.gmra.mxu3 %vm363_vm0, %v4221_v19  ;;  %3398 = vmatmul.msk.bf16.vlgmr.msrb.gmra.mxu0 %vm363_vm0, %v4221_v19  ;;  %v3325_v8 = vor.u32 %v3522_v13, %v3324_v9  ;;  %v3524_v13 = vld [vmem:[%s7456_s3 + $0x44] sm:$0xf0] }
  0xc6   : > { %v483_v29 = vmul.f32 %v3609_v26, %v432_v11  ;;  %3610 = vpow2.f32 %v3303_v25  ;;  %v475_v41 = vsel %vm4253_vm11, %v3605_v7, %v471_v28  ;;  %vm488_vm12 = vweird.f32 %v3609_v26  ;;  %v3326_v7 = vld [vmem:[%s7456_s3 + $0x38] sm:$0xf0] }
  0xc7   : > { %3612 = vrcp.f32 %v4237_v27  ;;  %v480_v50 = vsel %vm477_vm13, %v479_v44, %v475_v41  ;;  %vm489_vm15 = vmor %vm487_vm14, %vm488_vm12  ;;  %v508_v22 = vand.u32 2147483648, %v4237_v27  ;;  %vm502_vm3 = vweird.f32 %v4237_v27  ;;  %848 = vmatpush.bf16.msrb.mxu1 %v3325_v8 }
  0xc8   : > { %v484_v32 = vsub.f32 1.0, %v483_v29  ;;  %v559_v56 = vmul.f32 %v480_v50, %v4198_v40  ;;  %v3373_v40 = vor.u32 %v3533_v0, %v3372_v63  ;;  %v506_v23 = vand.u32 2147483647, %v4237_v27 }
  0xc9   : > { %v400_v38 = vpop.f32.mrf.mxu0  ;;  %v3333_v28 = vor.u32 %v3523_v17, %v3332_v14  ;;  %v3337_v29 = vor.u32 %v3518_v18, %v3334_v20 }
  0xca   : > { %v485_v42 = vmul.f32 %v3609_v26, %v484_v32  ;;  %v4260_v43 = vadd.f32 %v4139_v6, %v400_v38  ;;  %905 = vmatpush.bf16.msrb.mxu3 %v3373_v40  ;;  %v509_v32 = vor.u32 1.1754944e-38, %v508_v22  ;;  %vm507_vm6 = vcmp.eq.f32.partialorder %v506_v23, 8.507059e+37 }
  0xcc   : > { %v3611_v45 = vpop.eup %3610  ;;  %v486_v46 = vadd.f32 %v3609_v26, %v485_v42  ;;  %v3304_v47 = vmul.f32 -1.442695, %v4260_v43 }
  0xcd   : > { %v4263_v48 = vpop.eup %3612  ;;  %v4265_v52 = vadd.f32 1.0, %v3611_v45 }
  0xce   : > { %v490_v53 = vsel %vm489_vm15, %v3609_v26, %v486_v46  ;;  %v498_v54 = vmul.f32 %v4263_v48, %v4237_v27  ;;  %3614 = vpow2.f32 %v3304_v47  ;;  %vm503_vm2 = vweird.f32 %v4263_v48  ;;  %906 = vmatpush.bf16.msrb.mxu3 %v3333_v28 }
  0xcf   : > { %v495_v55 = vsel %vm492_vm1, %v494_v51, %v490_v53  ;;  %3616 = vrcp.f32 %v4265_v52  ;;  %vm4334_vm4 = vmor %vm502_vm3, %vm503_vm2  ;;  %v523_v26 = vand.u32 2147483648, %v4265_v52  ;;  %v521_v27 = vand.u32 2147483647, %v4265_v52  ;;  %v3380_v51 = vld [vmem:[%s7456_s3 + $0x70] sm:$0xf] }
  0xd0   : > { %v560_v57 = vmul.f32 %v495_v55, %v4202_v49  ;;  %v499_v58 = vsub.f32 1.0, %v498_v54  ;;  %v3528_v49 = vld [vmem:[%s7456_s3 + $0x6c] sm:$0xf]  ;;  %vm517_vm7 = vweird.f32 %v4265_v52  ;;  %v3534_v55 = vld [vmem:[%s7456_s3 + $0x94] sm:$0xf0] }
  0xd1   : > { %v402_v59 = vpop.f32.mrf.mxu0  ;;  %v3377_v5 = vor.u32 %v3528_v49, %v3374_v2  ;;  %v524_v37 = vor.u32 1.1754944e-38, %v523_v26  ;;  %vm522_vm9 = vcmp.eq.f32.partialorder %v521_v27, 8.507059e+37 }
  0xd2   : > { %v4272_v60 = vpack.c.bf16 %v560_v57, %v559_v56  ;;  %v500_v61 = vmul.f32 %v4263_v48, %v499_v58  ;;  %v4276_v62 = vadd.f32 %v4139_v6, %v402_v59  ;;  %v3517_v6 = vld [vmem:[%s7456_s3 + $0x14] sm:$0xf]  ;;  %v3381_v57 = vor.u32 %v3534_v55, %v3380_v51 }
  0xd3   : > { %v3329_v12 = vor.u32 %v3517_v6, %v3326_v7  ;;  %934 = vmatpush.bf16.msra.mxu0 %v3377_v5 }
  0xd4   : > { %v3615_v3 = vpop.eup %3614  ;;  %v3305_v4 = vmul.f32 -1.442695, %v4276_v62  ;;  %3387 = vmatmul.msk.bf16.gmra.mxu1 %vm363_vm0, %v4272_v60  ;;  %3391 = vmatmul.msk.bf16.gmra.mxu2 %vm363_vm0, %v4272_v60  ;;  %v501_v15 = vadd.f32 %v4263_v48, %v500_v61 }
  0xd5   : > { %v3617_v10 = vpop.eup %3616  ;;  %v4304_v11 = vadd.f32 1.0, %v3615_v3  ;;  %3395 = vmatmul.msk.bf16.gmra.mxu3 %vm363_vm0, %v4272_v60  ;;  %3399 = vmatmul.msk.bf16.gmra.mxu0 %vm363_vm0, %v4272_v60 }
  0xd6   : > { %v513_v16 = vmul.f32 %v3617_v10, %v4265_v52  ;;  %3618 = vpow2.f32 %v3305_v4  ;;  %877 = vmatpush.bf16.msrb.mxu2 %v3329_v12  ;;  %v505_v30 = vsel %vm4334_vm4, %v4263_v48, %v501_v15  ;;  %vm518_vm5 = vweird.f32 %v3617_v10  ;;  %963 = vmatpush.bf16.msra.mxu1 %v3381_v57  ;;  %v589_v15 = vld [vmem:[%s7457_s4] sm:$0xff] }
  0xd7   : > { %3620 = vrcp.f32 %v4304_v11  ;;  %935 = vmatpush.bf16.msra.mxu0 %v3337_v29  ;;  %v510_v36 = vsel %vm507_vm6, %v509_v32, %v505_v30  ;;  %vm519_vm8 = vmor %vm517_vm7, %vm518_vm5  ;;  %v538_v56 = vand.u32 2147483648, %v4304_v11  ;;  %vm532_vm11 = vweird.f32 %v4304_v11 }
  0xd8   : > { %v514_v24 = vsub.f32 1.0, %v513_v16  ;;  %v561_v44 = vmul.f32 %v510_v36, %v4215_v1  ;;  %v3529_v1 = vld [vmem:[%s7456_s3 + $0x74] sm:$0xf]  ;;  %v536_v58 = vand.u32 2147483647, %v4304_v11  ;;  %v4431_v16 = vperm.slane %v589_v15, 0 }
  0xd9   : > { %v539_v49 = vor.u32 1.1754944e-38, %v538_v56  ;;  %v4433_v17 = vperm.slane %v589_v15, 3  ;;  %v4446_v8 = vperm.slane %v589_v15, 1  ;;  %v4449_v26 = vperm.slane %v589_v15, 2 }
  0xda   : > { %v515_v31 = vmul.f32 %v3617_v10, %v514_v24  ;;  %vm537_vm14 = vcmp.eq.f32.partialorder %v536_v58, 8.507059e+37 }
  0xdc   : > { %v3619_v33 = vpop.eup %3618  ;;  %v516_v34 = vadd.f32 %v3617_v10, %v515_v31 }
  0xdd   : > { %v3621_v35 = vpop.eup %3620  ;;  %v436_v38 = vadd.f32 1.0, %v3619_v33 }
  0xde   : > { %v520_v39 = vsel %vm519_vm8, %v3617_v10, %v516_v34  ;;  %v528_v41 = vmul.f32 %v3621_v35, %v4304_v11  ;;  %vm533_vm10 = vweird.f32 %v3621_v35  ;;  %v3340_v11 = vld [vmem:[%s7456_s3 + $0x20] sm:$0xf] }
  0xdf   : > { %v525_v42 = vsel %vm522_vm9, %v524_v37, %v520_v39  ;;  %3622 = vrcp.f32 %v436_v38  ;;  %vm534_vm12 = vmor %vm532_vm11, %vm533_vm10  ;;  %v553_v61 = vand.u32 2147483648, %v436_v38  ;;  %v551_v40 = vand.u32 2147483647, %v436_v38 }
  0xe0   : > { %v562_v45 = vmul.f32 %v525_v42, %v4224_v21  ;;  %v529_v46 = vsub.f32 1.0, %v528_v41  ;;  %v3382_v21 = vld [vmem:[%s7456_s3 + $0x98] sm:$0xf0]  ;;  %vm547_vm15 = vweird.f32 %v436_v38  ;;  %v3341_v14 = vor.u32 %v3524_v13, %v3340_v11 }
  0xe1   : > { %v3385_v54 = vor.u32 %v3529_v1, %v3382_v21  ;;  %v554_v3 = vor.u32 1.1754944e-38, %v553_v61  ;;  %vm552_vm2 = vcmp.eq.f32.partialorder %v551_v40, 8.507059e+37 }
  0xe2   : > { %v4347_v47 = vpack.c.bf16 %v562_v45, %v561_v44  ;;  %v530_v48 = vmul.f32 %v3621_v35, %v529_v46  ;;  %964 = vmatpush.bf16.msra.mxu1 %v3341_v14 }
  0xe3   : > { %992 = vmatpush.bf16.msra.mxu2 %v3385_v54 }
  0xe4   : > { %3388 = vmatmul.msk.bf16.gmra.mxu1 %vm363_vm0, %v4347_v47  ;;  %3392 = vmatmul.msk.bf16.gmra.mxu2 %vm363_vm0, %v4347_v47  ;;  %v531_v52 = vadd.f32 %v3621_v35, %v530_v48 }
  0xe5   : > { %v3623_v50 = vpop.eup %3622  ;;  %3396 = vmatmul.msk.bf16.gmra.mxu3 %vm363_vm0, %v4347_v47  ;;  %3400 = vmatmul.msk.bf16.gmra.mxu0 %vm363_vm0, %v4347_v47 }
  0xe6   : > { %v543_v53 = vmul.f32 %v3623_v50, %v436_v38  ;;  %v535_v63 = vsel %vm534_vm12, %v3621_v35, %v531_v52  ;;  %vm548_vm13 = vweird.f32 %v3623_v50 }
  0xe7   : > { %v540_v6 = vsel %vm537_vm14, %v539_v49, %v535_v63  ;;  %vm549_vm1 = vmor %vm547_vm15, %vm548_vm13 }
  0xe8   : > { %v544_v59 = vsub.f32 1.0, %v543_v53  ;;  %v563_v7 = vmul.f32 %v540_v6, %v4260_v43  ;;  %v3519_v43 = vld [vmem:[%s7456_s3 + $0x24] sm:$0xf] }
  0xea   : > { %v545_v0 = vmul.f32 %v3623_v50, %v544_v59 }
  0xec   : > { %v546_v2 = vadd.f32 %v3623_v50, %v545_v0 }
  0xee   : > { %v550_v4 = vsel %vm549_vm1, %v3623_v50, %v546_v2 }
  0xef   : > { %v555_v5 = vsel %vm552_vm2, %v554_v3, %v550_v4 }
  0xf0   : > { %v564_v9 = vmul.f32 %v555_v5, %v4276_v62  ;;  %v3342_v62 = vld [vmem:[%s7456_s3 + $0x48] sm:$0xf0] }
  0xf1   : > { %v3345_v12 = vor.u32 %v3519_v43, %v3342_v62 }
  0xf2   : > { %v4374_v10 = vpack.c.bf16 %v564_v9, %v563_v7 }
  0xf3   : > { %993 = vmatpush.bf16.msra.mxu2 %v3345_v12 }
  0xf4   : > { %3389 = vmatmul.msk.bf16.gmra.mxu1 %vm363_vm0, %v4374_v10  ;;  %3393 = vmatmul.msk.bf16.gmra.mxu2 %vm363_vm0, %v4374_v10 }
  0xf5   : > { %3397 = vmatmul.msk.bf16.gmra.mxu3 %vm363_vm0, %v4374_v10  ;;  %3401 = vmatmul.msk.bf16.gmra.mxu0 %vm363_vm0, %v4374_v10 }
 0x104   : > { %3402 = vmatmul.msk.bf16.vlgmr.msrb.gmra.mxu1 %vm363_vm0, %v4221_v19  ;;  %3406 = vmatmul.msk.bf16.vlgmr.msrb.gmra.mxu2 %vm363_vm0, %v4221_v19 }
 0x105   : > { %3410 = vmatmul.msk.bf16.vlgmr.msrb.gmra.mxu3 %vm363_vm0, %v4221_v19  ;;  %3414 = vmatmul.msk.bf16.vlgmr.msra.gmra.mxu0 %vm363_vm0, %v4221_v19 }
 0x114   : > { %3403 = vmatmul.msk.bf16.gmra.mxu1 %vm363_vm0, %v4272_v60  ;;  %3407 = vmatmul.msk.bf16.gmra.mxu2 %vm363_vm0, %v4272_v60 }
 0x115   : > { %3411 = vmatmul.msk.bf16.gmra.mxu3 %vm363_vm0, %v4272_v60  ;;  %3415 = vmatmul.msk.bf16.gmra.mxu0 %vm363_vm0, %v4272_v60 }
 0x124   : > { %3404 = vmatmul.msk.bf16.gmra.mxu1 %vm363_vm0, %v4347_v47  ;;  %3408 = vmatmul.msk.bf16.gmra.mxu2 %vm363_vm0, %v4347_v47 }
 0x125   : > { %3412 = vmatmul.msk.bf16.gmra.mxu3 %vm363_vm0, %v4347_v47  ;;  %3416 = vmatmul.msk.bf16.gmra.mxu0 %vm363_vm0, %v4347_v47 }
 0x134   : > { %3405 = vmatmul.msk.bf16.gmra.mxu1 %vm363_vm0, %v4374_v10  ;;  %3409 = vmatmul.msk.bf16.gmra.mxu2 %vm363_vm0, %v4374_v10 }
 0x135   : > { %3413 = vmatmul.msk.bf16.gmra.mxu3 %vm363_vm0, %v4374_v10  ;;  %3417 = vmatmul.msk.bf16.gmra.mxu0 %vm363_vm0, %v4374_v10 }
 0x141   : > { %v734_v18 = vpop.f32.mrf.mxu1 }
 0x142   : > { %v4436_v20 = vadd.f32 %v734_v18, %v4431_v16  ;;  %v821_v22 = vpop.f32.mrf.mxu0 }
 0x143   : > { %v4439_v23 = vadd.f32 %v821_v22, %v4433_v17 }
 0x144   : > { %v3426_v24 = vmul.f32 -1.442695, %v4436_v20  ;;  %3418 = vmatmul.msk.bf16.vlgmr.msra.gmra.mxu1 %vm363_vm0, %v4221_v19  ;;  %3422 = vmatmul.msk.bf16.vlgmr.msra.gmra.mxu2 %vm363_vm0, %v4221_v19 }
 0x145   : > { %v3429_v25 = vmul.f32 -1.442695, %v4439_v23 }
 0x146   : > { %3624 = vpow2.f32 %v3426_v24 }
 0x147   : > { %3626 = vpow2.f32 %v3429_v25  ;;  %v763_v28 = vpop.f32.mrf.mxu2 }
 0x148   : > { %v4452_v29 = vadd.f32 %v763_v28, %v4446_v8  ;;  %v792_v30 = vpop.f32.mrf.mxu3 }
 0x149   : > { %v4455_v31 = vadd.f32 %v792_v30, %v4449_v26  ;;  %v736_v27 = vpop.f32.mrf.mxu1 }
 0x14a   : > { %v3427_v32 = vmul.f32 -1.442695, %v4452_v29  ;;  %v4459_v19 = vadd.f32 %v736_v27, %v4431_v16  ;;  %v823_v33 = vpop.f32.mrf.mxu0 }
 0x14b   : > { %v3428_v34 = vmul.f32 -1.442695, %v4455_v31  ;;  %v4463_v35 = vadd.f32 %v823_v33, %v4433_v17 }
 0x14c   : > { %v3625_v36 = vpop.eup %3624  ;;  %3628 = vpow2.f32 %v3427_v32  ;;  %v3436_v37 = vmul.f32 -1.442695, %v4459_v19 }
 0x14d   : > { %v3627_v38 = vpop.eup %3626  ;;  %v4466_v39 = vadd.f32 1.0, %v3625_v36  ;;  %3630 = vpow2.f32 %v3428_v34  ;;  %v3439_v41 = vmul.f32 -1.442695, %v4463_v35 }
 0x14e   : > { %v1258_v42 = vadd.f32 1.0, %v3627_v38  ;;  %3632 = vpow2.f32 %v3436_v37 }
 0x14f   : > { %3634 = vrcp.f32 %v4466_v39  ;;  %v765_v44 = vpop.f32.mrf.mxu2  ;;  %v1346_v56 = vand.u32 2147483648, %v4466_v39  ;;  %vm1340_vm3 = vweird.f32 %v4466_v39 }
 0x150   : > { %3636 = vrcp.f32 %v1258_v42  ;;  %v4471_v45 = vadd.f32 %v765_v44, %v4446_v8  ;;  %v794_v53 = vpop.f32.mrf.mxu3  ;;  %v1389_v57 = vand.u32 2147483647, %v1258_v42  ;;  %v1391_v63 = vand.u32 2147483648, %v1258_v42 }
 0x151   : > { %3638 = vpow2.f32 %v3439_v41  ;;  %v739_v58 = vpop.f32.mrf.mxu1  ;;  %vm1385_vm4 = vweird.f32 %v1258_v42  ;;  %v4497_v49 = vadd.f32 %v794_v53, %v4449_v26  ;;  %v1347_v7 = vor.u32 1.1754944e-38, %v1346_v56 }
 0x152   : > { %v3629_v46 = vpop.eup %3628  ;;  %v3437_v52 = vmul.f32 -1.442695, %v4471_v45  ;;  %v826_v2 = vpop.f32.mrf.mxu0  ;;  %v4502_v4 = vadd.f32 %v739_v58, %v4431_v16  ;;  %vm4505_vm5 = vcmp.eq.f32.partialorder %v1389_v57, 8.507059e+37  ;;  %v1392_v11 = vor.u32 1.1754944e-38, %v1391_v63 }
 0x153   : > { %v3631_v48 = vpop.eup %3630  ;;  %v4473_v50 = vadd.f32 1.0, %v3629_v46  ;;  %v4515_v13 = vadd.f32 %v826_v2, %v4433_v17  ;;  %v3438_v28 = vmul.f32 -1.442695, %v4497_v49 }
 0x154   : > { %v3633_v1 = vpop.eup %3632  ;;  %v4475_v21 = vadd.f32 1.0, %v3631_v48  ;;  %3419 = vmatmul.msk.bf16.gmra.mxu1 %vm363_vm0, %v4272_v60  ;;  %3423 = vmatmul.msk.bf16.gmra.mxu2 %vm363_vm0, %v4272_v60  ;;  %v1344_v60 = vand.u32 2147483647, %v4466_v39  ;;  %v3446_v30 = vmul.f32 -1.442695, %v4502_v4 }
 0x155   : > { %v4481_v51 = vpop.eup %3634  ;;  %3640 = vrcp.f32 %v4473_v50  ;;  %v4494_v40 = vadd.f32 1.0, %v3633_v1  ;;  %v1361_v12 = vand.u32 2147483648, %v4473_v50  ;;  %v1359_v33 = vand.u32 2147483647, %v4473_v50 }
 0x156   : > { %v4485_v54 = vpop.eup %3636  ;;  %v1336_v55 = vmul.f32 %v4481_v51, %v4466_v39  ;;  %3642 = vrcp.f32 %v4475_v21  ;;  %vm4519_vm6 = vcmp.eq.f32.partialorder %v1344_v60, 8.507059e+37  ;;  %v1376_v22 = vand.u32 2147483648, %v4475_v21 }
 0x157   : > { %v3639_v59 = vpop.eup %3638  ;;  %v1381_v61 = vmul.f32 %v4485_v54, %v1258_v42  ;;  %3644 = vpow2.f32 %v3437_v52  ;;  %vm1386_vm7 = vweird.f32 %v4485_v54  ;;  %vm1341_vm8 = vweird.f32 %v4481_v51 }
 0x158   : > { %v1337_v0 = vsub.f32 1.0, %v1336_v55  ;;  %v4499_v3 = vadd.f32 1.0, %v3639_v59  ;;  %3646 = vrcp.f32 %v4494_v40  ;;  %vm4537_vm9 = vmor %vm1385_vm4, %vm1386_vm7  ;;  %vm1355_vm10 = vweird.f32 %v4473_v50 }
 0x159   : > { %v1382_v6 = vsub.f32 1.0, %v1381_v61  ;;  %v4542_v37 = vor.u32 1.1754944e-38, %v1361_v12  ;;  %v1374_v38 = vand.u32 2147483647, %v4475_v21  ;;  %v3449_v41 = vmul.f32 -1.442695, %v4515_v13  ;;  %vm4556_vm11 = vmor %vm1340_vm3, %vm1341_vm8 }
 0x15a   : > { %v1338_v5 = vmul.f32 %v4481_v51, %v1337_v0  ;;  %3648 = vrcp.f32 %v4499_v3  ;;  %v4551_v42 = vor.u32 1.1754944e-38, %v1376_v22  ;;  %v1496_v1 = vand.u32 2147483648, %v4494_v40 }
 0x15b   : > { %v4510_v43 = vpop.eup %3640  ;;  %v1383_v62 = vmul.f32 %v4485_v54, %v1382_v6  ;;  %vm1490_vm13 = vweird.f32 %v4494_v40  ;;  %vm1370_vm14 = vweird.f32 %v4475_v21  ;;  %v1539_v57 = vand.u32 2147483647, %v4499_v3 }
 0x15c   : > { %v4517_v14 = vpop.eup %3642  ;;  %v1351_v18 = vmul.f32 %v4510_v43, %v4473_v50  ;;  %v1339_v27 = vadd.f32 %v4481_v51, %v1338_v5  ;;  %vm1356_vm12 = vweird.f32 %v4510_v43  ;;  %v1497_v0 = vor.u32 1.1754944e-38, %v1496_v1 }
 0x15d   : > { %v1384_v24 = vadd.f32 %v4485_v54, %v1383_v62  ;;  %v1366_v25 = vmul.f32 %v4517_v14, %v4475_v21  ;;  %v3645_v34 = vpop.eup %3644  ;;  %vm1371_vm15 = vweird.f32 %v4517_v14  ;;  %vm1535_vm1 = vweird.f32 %v4499_v3  ;;  %v768_v62 = vpop.f32.mrf.mxu2  ;;  %vm4608_vm7 = vmor %vm1355_vm10, %vm1356_vm12 }
 0x15e   : > { %v1352_v32 = vsub.f32 1.0, %v1351_v18  ;;  %v4546_v44 = vpop.eup %3646  ;;  %v1343_v56 = vsel %vm4556_vm11, %v4481_v51, %v1339_v27  ;;  %v4571_v58 = vadd.f32 1.0, %v3645_v34  ;;  %v1541_v9 = vand.u32 2147483648, %v4499_v3  ;;  %vm4651_vm11 = vmor %vm1370_vm14, %vm1371_vm15 }
 0x15f   : > { %v1388_v46 = vsel %vm4537_vm9, %v4485_v54, %v1384_v24  ;;  %v1367_v48 = vsub.f32 1.0, %v1366_v25  ;;  %v1486_v53 = vmul.f32 %v4546_v44, %v4494_v40  ;;  %v1494_v54 = vand.u32 2147483647, %v4494_v40  ;;  %v828_v25 = vpop.f32.mrf.mxu0 }
 0x160   : > { %v3649_v55 = vpop.eup %3648  ;;  %v1353_v39 = vmul.f32 %v4510_v43, %v1352_v32  ;;  %v1393_v59 = vsel %vm4505_vm5, %v1392_v11, %v1388_v46  ;;  %3650 = vrcp.f32 %v4571_v58  ;;  %v1348_v51 = vsel %vm4519_vm6, %v1347_v7, %v1343_v56  ;;  %v797_v11 = vpop.f32.mrf.mxu3 }
 0x161   : > { %v1487_v60 = vsub.f32 1.0, %v1486_v53  ;;  %v1531_v61 = vmul.f32 %v3649_v55, %v4499_v3  ;;  %v1368_v63 = vmul.f32 %v4517_v14, %v1367_v48  ;;  %vm4587_vm2 = vcmp.eq.f32.partialorder %v1494_v54, 8.507059e+37  ;;  %v741_v7 = vpop.f32.mrf.mxu1 }
 0x162   : > { %v2538_v12 = vmul.f32 %v1393_v59, %v4439_v23  ;;  %v1354_v18 = vadd.f32 %v4510_v43, %v1353_v39  ;;  %vm1491_vm3 = vweird.f32 %v4546_v44  ;;  %vm4595_vm4 = vcmp.eq.f32.partialorder %v1539_v57, 8.507059e+37 }
 0x163   : > { %v1488_v2 = vmul.f32 %v4546_v44, %v1487_v60  ;;  %v1532_v5 = vsub.f32 1.0, %v1531_v61  ;;  %vm4599_vm5 = vcmp.eq.f32.partialorder %v1359_v33, 8.507059e+37  ;;  %vm1536_vm6 = vweird.f32 %v3649_v55  ;;  %vm4627_vm9 = vmor %vm1490_vm13, %vm1491_vm3 }
 0x164   : > { %3420 = vmatmul.msk.bf16.gmra.mxu1 %vm363_vm0, %v4347_v47  ;;  %3424 = vmatmul.msk.bf16.gmra.mxu2 %vm363_vm0, %v4347_v47  ;;  %3652 = vpow2.f32 %v3438_v28  ;;  %v1369_v27 = vadd.f32 %v4517_v14, %v1368_v63  ;;  %vm4613_vm8 = vcmp.eq.f32.partialorder %v1374_v38, 8.507059e+37  ;;  %v4618_v33 = vadd.f32 %v768_v62, %v4446_v8  ;;  %vm1537_vm10 = vmor %vm1535_vm1, %vm1536_vm6 }
 0x165   : > { %v1489_v22 = vadd.f32 %v4546_v44, %v1488_v2  ;;  %v1533_v24 = vmul.f32 %v3649_v55, %v1532_v5  ;;  %3654 = vpow2.f32 %v3446_v30  ;;  %v4621_v28 = vadd.f32 %v797_v11, %v4449_v26 }
 0x166   : > { %v1542_v36 = vor.u32 1.1754944e-38, %v1541_v9  ;;  %3656 = vpow2.f32 %v3449_v41  ;;  %v4632_v38 = vadd.f32 %v741_v7, %v4431_v16  ;;  %v4634_v30 = vpop.eup %3650  ;;  %v1358_v46 = vsel %vm4608_vm7, %v4510_v43, %v1354_v18 }
 0x167   : > { %v1534_v34 = vadd.f32 %v3649_v55, %v1533_v24  ;;  %v3447_v40 = vmul.f32 -1.442695, %v4618_v33  ;;  %v3448_v48 = vmul.f32 -1.442695, %v4621_v28  ;;  %v4645_v1 = vadd.f32 %v828_v25, %v4433_v17 }
 0x168   : > { %v1493_v3 = vsel %vm4627_vm9, %v4546_v44, %v1489_v22  ;;  %v1501_v52 = vmul.f32 %v4634_v30, %v4571_v58  ;;  %v1509_v53 = vand.u32 2147483647, %v4571_v58  ;;  %v1373_v54 = vsel %vm4651_vm11, %v4517_v14, %v1369_v27 }
 0x169   : > { %v1538_v43 = vsel %vm1537_vm10, %v3649_v55, %v1534_v34  ;;  %3658 = vpow2.f32 %v3447_v40  ;;  %v3456_v56 = vmul.f32 -1.442695, %v4632_v38  ;;  %v1511_v55 = vand.u32 2147483648, %v4571_v58 }
 0x16a   : > { %v1543_v21 = vsel %vm4595_vm4, %v1542_v36, %v1538_v43  ;;  %v3653_v39 = vpop.eup %3652  ;;  %v1502_v44 = vsub.f32 1.0, %v1501_v52  ;;  %3660 = vpow2.f32 %v3448_v48  ;;  %v1498_v60 = vsel %vm4587_vm2, %v1497_v0, %v1493_v3 }
 0x16b   : > { %v2548_v57 = vmul.f32 %v1543_v21, %v4463_v35  ;;  %v3655_v59 = vpop.eup %3654  ;;  %vm1506_vm12 = vweird.f32 %v4634_v30  ;;  %v4672_v14 = vadd.f32 1.0, %v3653_v39  ;;  %v3459_v61 = vmul.f32 -1.442695, %v4645_v1 }
 0x16c   : > { %v3657_v63 = vpop.eup %3656  ;;  %v1503_v5 = vmul.f32 %v4634_v30, %v1502_v44  ;;  %v4678_v35 = vadd.f32 1.0, %v3655_v59  ;;  %3662 = vpow2.f32 %v3456_v56  ;;  %v2535_v9 = vmul.f32 %v1348_v51, %v4436_v20  ;;  %v770_v20 = vpop.f32.mrf.mxu2 }
 0x16d   : > { %v4675_v2 = vadd.f32 %v2548_v57, %v2538_v12  ;;  %v4684_v0 = vsel %vm4599_vm5, %v4542_v37, %v1358_v46  ;;  %vm1505_vm13 = vweird.f32 %v4571_v58  ;;  %3664 = vrcp.f32 %v4672_v14 }
 0x16e   : > { %v1378_v6 = vsel %vm4613_vm8, %v4551_v42, %v1373_v54  ;;  %v2545_v62 = vmul.f32 %v1498_v60, %v4459_v19  ;;  %v1504_v11 = vadd.f32 %v4634_v30, %v1503_v5  ;;  %3666 = vrcp.f32 %v4678_v35  ;;  %vm4696_vm14 = vmor %vm1505_vm13, %vm1506_vm12  ;;  %v799_v19 = vpop.f32.mrf.mxu3 }
 0x16f   : > { %v3659_v51 = vpop.eup %3658  ;;  %vm4700_vm15 = vcmp.eq.f32.partialorder %v1509_v53, 8.507059e+37  ;;  %v1512_v12 = vor.u32 1.1754944e-38, %v1511_v55  ;;  %v4704_v42 = vadd.f32 1.0, %v3657_v63  ;;  %3668 = vpow2.f32 %v3459_v61 }
 0x170   : > { %v3661_v18 = vpop.eup %3660  ;;  %v1508_v47 = vsel %vm4696_vm14, %v4634_v30, %v1504_v11  ;;  %v1524_v7 = vand.u32 2147483647, %v4672_v14  ;;  %v1526_v15 = vand.u32 2147483648, %v4672_v14  ;;  %v4711_v22 = vadd.f32 1.0, %v3659_v51 }
 0x171   : > { %v1644_v24 = vand.u32 2147483647, %v4678_v35  ;;  %v1646_v25 = vand.u32 2147483648, %v4678_v35  ;;  %3670 = vrcp.f32 %v4704_v42  ;;  %v4717_v23 = vadd.f32 %v770_v20, %v4446_v8 }
 0x172   : > { %v3663_v27 = vpop.eup %3662  ;;  %v4724_v32 = vmul.f32 %v1378_v6, %v4455_v31  ;;  %v4726_v50 = vadd.f32 %v2545_v62, %v2535_v9  ;;  %3672 = vrcp.f32 %v4711_v22  ;;  %v4730_v34 = vadd.f32 %v799_v19, %v4449_v26 }
 0x173   : > { %v3665_v36 = vpop.eup %3664  ;;  %v1513_v30 = vsel %vm4700_vm15, %v1512_v12, %v1508_v47  ;;  %vm1520_vm1 = vweird.f32 %v4672_v14  ;;  %vm1640_vm2 = vweird.f32 %v4678_v35  ;;  %v1527_v48 = vor.u32 1.1754944e-38, %v1526_v15 }
 0x174   : > { %3421 = vmatmul.msk.bf16.gmra.mxu1 %vm363_vm0, %v4374_v10  ;;  %3425 = vmatmul.msk.bf16.gmra.mxu2 %vm363_vm0, %v4374_v10  ;;  %v4736_v10 = vadd.f32 1.0, %v3661_v18  ;;  %v3667_v46 = vpop.eup %3666  ;;  %v1516_v31 = vmul.f32 %v3665_v36, %v4672_v14  ;;  %vm4739_vm0 = vcmp.eq.f32.partialorder %v1524_v7, 8.507059e+37  ;;  %v1689_v41 = vand.u32 2147483647, %v4704_v42 }
 0x175   : > { %v1691_v3 = vand.u32 2147483648, %v4704_v42  ;;  %v3669_v43 = vpop.eup %3668  ;;  %v1636_v52 = vmul.f32 %v3667_v46, %v4678_v35  ;;  %vm4746_vm3 = vcmp.eq.f32.partialorder %v1644_v24, 8.507059e+37  ;;  %v1647_v54 = vor.u32 1.1754944e-38, %v1646_v25 }
 0x176   : > { %v1661_v21 = vand.u32 2147483648, %v4711_v22  ;;  %v4752_v56 = vmul.f32 -1.442695, %v4717_v23  ;;  %v4755_v39 = vmul.f32 %v1513_v30, %v4471_v45  ;;  %v1517_v57 = vsub.f32 1.0, %v1516_v31  ;;  %v802_v12 = vpop.f32.mrf.mxu3 }
 0x177   : > { %vm1685_vm4 = vweird.f32 %v4704_v42  ;;  %v1659_v44 = vand.u32 2147483647, %v4711_v22  ;;  %3674 = vrcp.f32 %v4736_v10  ;;  %v3671_v55 = vpop.eup %3670  ;;  %vm1521_vm5 = vweird.f32 %v3665_v36 }
 0x178   : > { %v1637_v59 = vsub.f32 1.0, %v1636_v52  ;;  %vm1641_vm6 = vweird.f32 %v3667_v46  ;;  %vm1655_vm7 = vweird.f32 %v4711_v22  ;;  %v4761_v60 = vadd.f32 1.0, %v3663_v27  ;;  %v3673_v61 = vpop.eup %3672  ;;  %vm1522_vm10 = vmor %vm1520_vm1, %vm1521_vm5 }
 0x179   : > { %v1518_v63 = vmul.f32 %v3665_v36, %v1517_v57  ;;  %v1681_v45 = vmul.f32 %v3671_v55, %v4704_v42  ;;  %vm4764_vm8 = vcmp.eq.f32.partialorder %v1689_v41, 8.507059e+37  ;;  %v1692_v9 = vor.u32 1.1754944e-38, %v1691_v3  ;;  %vm1642_vm14 = vmor %vm1640_vm2, %vm1641_vm6  ;;  %v831_v42 = vpop.f32.mrf.mxu0 }
 0x17a   : > { %v4768_v6 = vadd.f32 1.0, %v3669_v43  ;;  %v1638_v62 = vmul.f32 %v3667_v46, %v1637_v59  ;;  %v1651_v11 = vmul.f32 %v3673_v61, %v4711_v22  ;;  %v1662_v20 = vor.u32 1.1754944e-38, %v1661_v21  ;;  %v744_v43 = vpop.f32.mrf.mxu1 }
 0x17b   : > { %v1674_v51 = vand.u32 2147483647, %v4736_v10  ;;  %v1519_v37 = vadd.f32 %v3665_v36, %v1518_v63  ;;  %v1682_v58 = vsub.f32 1.0, %v1681_v45  ;;  %vm4772_vm9 = vcmp.eq.f32.partialorder %v1659_v44, 8.507059e+37 }
 0x17c   : > { %v1676_v19 = vand.u32 2147483648, %v4736_v10  ;;  %3676 = vrcp.f32 %v4761_v60  ;;  %v1639_v18 = vadd.f32 %v3667_v46, %v1638_v62  ;;  %vm1686_vm11 = vweird.f32 %v3671_v55 }
 0x17d   : > { %v1652_v47 = vsub.f32 1.0, %v1651_v11  ;;  %vm1656_vm12 = vweird.f32 %v3673_v61  ;;  %vm1670_vm13 = vweird.f32 %v4736_v10  ;;  %v3675_v7 = vpop.eup %3674  ;;  %v1523_v15 = vsel %vm1522_vm10, %v3665_v36, %v1519_v37  ;;  %vm1687_vm15 = vmor %vm1685_vm4, %vm1686_vm11 }
 0x17e   : > { %v1683_v24 = vmul.f32 %v3671_v55, %v1682_v58  ;;  %v1794_v25 = vand.u32 2147483647, %v4761_v60  ;;  %3678 = vrcp.f32 %v4768_v6  ;;  %v1528_v14 = vsel %vm4739_vm0, %v1527_v48, %v1523_v15  ;;  %vm4806_vm2 = vmor %vm1655_vm7, %vm1656_vm12 }
 0x17f   : > { %v1643_v27 = vsel %vm1642_vm14, %v3667_v46, %v1639_v18  ;;  %v1653_v30 = vmul.f32 %v3673_v61, %v1652_v47  ;;  %v1666_v31 = vmul.f32 %v3675_v7, %v4736_v10  ;;  %v2547_v41 = vmul.f32 %v1528_v14, %v4497_v49 }
 0x180   : > { %v1648_v36 = vsel %vm4746_vm3, %v1647_v54, %v1643_v27  ;;  %v1684_v3 = vadd.f32 %v3671_v55, %v1683_v24  ;;  %v1796_v35 = vand.u32 2147483648, %v4761_v60  ;;  %vm4798_vm1 = vcmp.eq.f32.partialorder %v1674_v51, 8.507059e+37 }
 0x181   : > { %v2555_v52 = vmul.f32 %v1648_v36, %v4502_v4  ;;  %v1654_v40 = vadd.f32 %v3673_v61, %v1653_v30  ;;  %v1667_v46 = vsub.f32 1.0, %v1666_v31  ;;  %v2643_v53 = vadd.f32 %v2547_v41, %v4724_v32 }
 0x182   : > { %v3677_v49 = vpop.eup %3676  ;;  %v1688_v54 = vsel %vm1687_vm15, %v3671_v55, %v1684_v3  ;;  %v1677_v4 = vor.u32 1.1754944e-38, %v1676_v19  ;;  %vm1790_vm0 = vweird.f32 %v4761_v60  ;;  %vm1671_vm3 = vweird.f32 %v3675_v7  ;;  %v746_v27 = vpop.f32.mrf.mxu1 }
 0x183   : > { %v1693_v57 = vsel %vm4764_vm8, %v1692_v9, %v1688_v54  ;;  %v1658_v44 = vsel %vm4806_vm2, %v3673_v61, %v1654_v40  ;;  %v1668_v59 = vmul.f32 %v3675_v7, %v1667_v46  ;;  %v1786_v22 = vmul.f32 %v3677_v49, %v4761_v60  ;;  %vm1672_vm6 = vmor %vm1670_vm13, %vm1671_vm3 }
 0x184   : > { %v3679_v32 = vpop.eup %3678  ;;  %v2558_v55 = vmul.f32 %v1693_v57, %v4515_v13  ;;  %vm4817_vm4 = vcmp.eq.f32.partialorder %v1794_v25, 8.507059e+37  ;;  %v1797_v45 = vor.u32 1.1754944e-38, %v1796_v35  ;;  %vm1835_vm5 = vweird.f32 %v4768_v6 }
 0x185   : > { %v2618_v5 = vadd.f32 %v4726_v50, %v2555_v52  ;;  %v1663_v9 = vsel %vm4772_vm9, %v1662_v20, %v1658_v44  ;;  %v1669_v61 = vadd.f32 %v3675_v7, %v1668_v59  ;;  %v1831_v62 = vmul.f32 %v3679_v32, %v4768_v6  ;;  %v773_v50 = vpop.f32.mrf.mxu2 }
 0x186   : > { %v2657_v11 = vadd.f32 %v4675_v2, %v2558_v55  ;;  %v1787_v13 = vsub.f32 1.0, %v1786_v22  ;;  %vm1791_vm7 = vweird.f32 %v3677_v49  ;;  %v1839_v51 = vand.u32 2147483647, %v4768_v6 }
 0x187   : > { %v1673_v37 = vsel %vm1672_vm6, %v3675_v7, %v1669_v61  ;;  %v1832_v58 = vsub.f32 1.0, %v1831_v62  ;;  %vm1836_vm8 = vweird.f32 %v3679_v32  ;;  %3680 = vpow2.f32 %v4752_v56  ;;  %vm1792_vm10 = vmor %vm1790_vm0, %vm1791_vm7 }
 0x188   : > { %v1678_v20 = vsel %vm4798_vm1, %v1677_v4, %v1673_v37  ;;  %v1788_v19 = vmul.f32 %v3677_v49, %v1787_v13  ;;  %vm4833_vm9 = vcmp.eq.f32.partialorder %v1839_v51, 8.507059e+37  ;;  %v1841_v10 = vand.u32 2147483648, %v4768_v6  ;;  %vm1837_vm11 = vmor %vm1835_vm5, %vm1836_vm8 }
 0x189   : > { %v2557_v18 = vmul.f32 %v1678_v20, %v4621_v28  ;;  %v1833_v47 = vmul.f32 %v3679_v32, %v1832_v58  ;;  %v3458_v7 = vmul.f32 -1.442695, %v4730_v34  ;;  %v4841_v15 = vadd.f32 %v744_v43, %v4431_v16  ;;  %v833_v43 = vpop.f32.mrf.mxu0 }
 0x18a   : > { %v1789_v56 = vadd.f32 %v3677_v49, %v1788_v19  ;;  %v4844_v24 = vadd.f32 %v831_v42, %v4433_v17  ;;  %v4847_v25 = vadd.f32 %v773_v50, %v4446_v8  ;;  %v4850_v14 = vadd.f32 %v802_v12, %v4449_v26 }
 0x18b   : > { %v4852_v30 = vadd.f32 %v2643_v53, %v2557_v18  ;;  %v1834_v28 = vadd.f32 %v3679_v32, %v1833_v47  ;;  %3682 = vpow2.f32 %v3458_v7  ;;  %v3466_v31 = vmul.f32 -1.442695, %v4841_v15 }
 0x18c   : > { %v1793_v41 = vsel %vm1792_vm10, %v3677_v49, %v1789_v56  ;;  %v1842_v36 = vor.u32 1.1754944e-38, %v1841_v10  ;;  %v3469_v3 = vmul.f32 -1.442695, %v4844_v24  ;;  %v3467_v35 = vmul.f32 -1.442695, %v4847_v25 }
 0x18d   : > { %v3681_v52 = vpop.eup %3680  ;;  %v1798_v60 = vsel %vm4817_vm4, %v1797_v45, %v1793_v41  ;;  %v1838_v40 = vsel %vm1837_vm11, %v3679_v32, %v1834_v28  ;;  %3684 = vpow2.f32 %v3466_v31  ;;  %v4866_v46 = vadd.f32 %v746_v27, %v4431_v16  ;;  %v775_v22 = vpop.f32.mrf.mxu2 }
 0x18e   : > { %v2565_v48 = vmul.f32 %v1798_v60, %v4632_v38  ;;  %v1843_v6 = vsel %vm4833_vm9, %v1842_v36, %v1838_v40  ;;  %v4871_v49 = vadd.f32 1.0, %v3681_v52  ;;  %3686 = vpow2.f32 %v3469_v3 }
 0x18f   : > { %v2568_v53 = vmul.f32 %v1843_v6, %v4645_v1  ;;  %3688 = vpow2.f32 %v3467_v35  ;;  %v3468_v54 = vmul.f32 -1.442695, %v4850_v14  ;;  %v4876_v21 = vadd.f32 %v833_v43, %v4433_v17 }
 0x190   : > { %v2536_v4 = vmul.f32 %v4684_v0, %v4452_v29  ;;  %v2556_v42 = vmul.f32 %v1663_v9, %v4618_v33  ;;  %v4881_v38 = vadd.f32 %v2618_v5, %v2565_v48  ;;  %3690 = vrcp.f32 %v4871_v49  ;;  %v804_v29 = vpop.f32.mrf.mxu3 }
 0x191   : > { %v3683_v57 = vpop.eup %3682  ;;  %v4884_v44 = vadd.f32 %v2657_v11, %v2568_v53  ;;  %v3476_v1 = vmul.f32 -1.442695, %v4866_v46  ;;  %v3479_v55 = vmul.f32 -1.442695, %v4876_v21  ;;  %3692 = vpow2.f32 %v3468_v54  ;;  %v749_v11 = vpop.f32.mrf.mxu1 }
 0x192   : > { %v2630_v59 = vadd.f32 %v4755_v39, %v2536_v4  ;;  %v4888_v32 = vadd.f32 1.0, %v3683_v57  ;;  %v1809_v45 = vand.u32 2147483647, %v4871_v49  ;;  %v1811_v5 = vand.u32 2147483648, %v4871_v49 }
 0x193   : > { %v3685_v63 = vpop.eup %3684  ;;  %v4901_v62 = vadd.f32 %v775_v22, %v4446_v8  ;;  %v4907_v58 = vadd.f32 %v804_v29, %v4449_v26  ;;  %vm1805_vm12 = vweird.f32 %v4871_v49  ;;  %v4919_v2 = vadd.f32 %v749_v11, %v4431_v16 }
 0x194   : > { %v3687_v33 = vpop.eup %3686  ;;  %v4891_v0 = vadd.f32 %v2630_v59, %v2556_v42  ;;  %3694 = vrcp.f32 %v4888_v32  ;;  %v4896_v61 = vadd.f32 1.0, %v3685_v63  ;;  %v1826_v51 = vand.u32 2147483648, %v4888_v32 }
 0x195   : > { %v3689_v9 = vpop.eup %3688  ;;  %v4898_v39 = vadd.f32 1.0, %v3687_v33  ;;  %3696 = vpow2.f32 %v3476_v1  ;;  %v1824_v12 = vand.u32 2147483647, %v4888_v32  ;;  %vm4913_vm13 = vcmp.eq.f32.partialorder %v1809_v45, 8.507059e+37 }
 0x196   : > { %v3691_v13 = vpop.eup %3690  ;;  %v4904_v37 = vadd.f32 1.0, %v3689_v9  ;;  %3698 = vpow2.f32 %v3479_v55  ;;  %v1812_v19 = vor.u32 1.1754944e-38, %v1811_v5  ;;  %vm1820_vm14 = vweird.f32 %v4888_v32 }
 0x197   : > { %v1801_v50 = vmul.f32 %v3691_v13, %v4871_v49  ;;  %3700 = vrcp.f32 %v4896_v61  ;;  %v3693_v10 = vpop.eup %3692  ;;  %v1946_v47 = vand.u32 2147483648, %v4896_v61  ;;  %v4925_v7 = vmul.f32 -1.442695, %v4901_v62 }
 0x198   : > { %3702 = vrcp.f32 %v4898_v39  ;;  %v1827_v27 = vor.u32 1.1754944e-38, %v1826_v51  ;;  %v1944_v28 = vand.u32 2147483647, %v4896_v61  ;;  %v1991_v31 = vand.u32 2147483648, %v4898_v39 }
 0x199   : > { %v1802_v18 = vsub.f32 1.0, %v1801_v50  ;;  %3704 = vrcp.f32 %v4904_v37  ;;  %v4930_v41 = vmul.f32 -1.442695, %v4907_v58  ;;  %vm1806_vm15 = vweird.f32 %v3691_v13 }
 0x19a   : > { %v3695_v56 = vpop.eup %3694  ;;  %vm4933_vm1 = vcmp.eq.f32.partialorder %v1824_v12, 8.507059e+37  ;;  %v1989_v52 = vand.u32 2147483647, %v4898_v39  ;;  %vm1940_vm2 = vweird.f32 %v4896_v61  ;;  %v1959_v40 = vand.u32 2147483647, %v4904_v37  ;;  %vm1807_vm3 = vmor %vm1805_vm12, %vm1806_vm15 }
 0x19b   : > { %v3697_v36 = vpop.eup %3696  ;;  %v1803_v3 = vmul.f32 %v3691_v13, %v1802_v18  ;;  %v1816_v35 = vmul.f32 %v3695_v56, %v4888_v32  ;;  %v4942_v48 = vadd.f32 1.0, %v3693_v10  ;;  %v4945_v6 = vmul.f32 -1.442695, %v4919_v2 }
 0x19c   : > { %v4938_v60 = vpop.eup %3698  ;;  %v1947_v42 = vor.u32 1.1754944e-38, %v1946_v47  ;;  %vm1985_vm0 = vweird.f32 %v4898_v39  ;;  %vm1821_vm4 = vweird.f32 %v3695_v56  ;;  %vm4952_vm5 = vcmp.eq.f32.partialorder %v1944_v28, 8.507059e+37 }
 0x19d   : > { %v3701_v53 = vpop.eup %3700  ;;  %v1804_v54 = vadd.f32 %v3691_v13, %v1803_v3  ;;  %v1817_v4 = vsub.f32 1.0, %v1816_v35  ;;  %v1992_v55 = vor.u32 1.1754944e-38, %v1991_v31  ;;  %vm1955_vm6 = vweird.f32 %v4904_v37  ;;  %vm1822_vm9 = vmor %vm1820_vm14, %vm1821_vm4 }
 0x19e   : > { %v3703_v57 = vpop.eup %3702  ;;  %v1936_v1 = vmul.f32 %v3701_v53, %v4896_v61  ;;  %3706 = vrcp.f32 %v4942_v48  ;;  %vm4959_vm7 = vcmp.eq.f32.partialorder %v1989_v52, 8.507059e+37  ;;  %v4963_v45 = vadd.f32 1.0, %v3697_v36 }
 0x19f   : > { %v3705_v22 = vpop.eup %3704  ;;  %v1808_v63 = vsel %vm1807_vm3, %v3691_v13, %v1804_v54  ;;  %v1818_v29 = vmul.f32 %v3695_v56, %v1817_v4  ;;  %v1981_v33 = vmul.f32 %v3703_v57, %v4898_v39  ;;  %vm4968_vm8 = vcmp.eq.f32.partialorder %v1959_v40, 8.507059e+37 }
 0x1a0   : > { %v1813_v5 = vsel %vm4913_vm13, %v1812_v19, %v1808_v63  ;;  %v1937_v9 = vsub.f32 1.0, %v1936_v1  ;;  %v1951_v11 = vmul.f32 %v3705_v22, %v4904_v37  ;;  %v1961_v10 = vand.u32 2147483648, %v4904_v37 }
 0x1a1   : > { %v2566_v13 = vmul.f32 %v1813_v5, %v4717_v23  ;;  %v1819_v50 = vadd.f32 %v3695_v56, %v1818_v29  ;;  %v1982_v12 = vsub.f32 1.0, %v1981_v33  ;;  %vm1941_vm10 = vweird.f32 %v3701_v53  ;;  %v778_v33 = vpop.f32.mrf.mxu2 }
 0x1a2   : > { %v1938_v18 = vmul.f32 %v3701_v53, %v1937_v9  ;;  %vm1986_vm11 = vweird.f32 %v3703_v57  ;;  %v1952_v20 = vsub.f32 1.0, %v1951_v11  ;;  %3708 = vrcp.f32 %v4963_v45  ;;  %vm1942_vm13 = vmor %vm1940_vm2, %vm1941_vm10 }
 0x1a3   : > { %v2632_v19 = vadd.f32 %v4891_v0, %v2566_v13  ;;  %v1823_v47 = vsel %vm1822_vm9, %v3695_v56, %v1819_v50  ;;  %v1983_v28 = vmul.f32 %v3703_v57, %v1982_v12  ;;  %vm1956_vm12 = vweird.f32 %v3705_v22  ;;  %vm1987_vm14 = vmor %vm1985_vm0, %vm1986_vm11 }
 0x1a4   : > { %v3707_v31 = vpop.eup %3706  ;;  %v1828_v23 = vsel %vm4933_vm1, %v1827_v27, %v1823_v47  ;;  %v1939_v36 = vadd.f32 %v3701_v53, %v1938_v18  ;;  %v1953_v3 = vmul.f32 %v3705_v22, %v1952_v20  ;;  %v1962_v52 = vor.u32 1.1754944e-38, %v1961_v10  ;;  %vm1957_vm15 = vmor %vm1955_vm6, %vm1956_vm12 }
 0x1a5   : > { %v2567_v32 = vmul.f32 %v1828_v23, %v4730_v34  ;;  %v1984_v35 = vadd.f32 %v3703_v57, %v1983_v28  ;;  %v1966_v0 = vmul.f32 %v3707_v31, %v4942_v48  ;;  %v1974_v27 = vand.u32 2147483647, %v4942_v48 }
 0x1a6   : > { %v1943_v56 = vsel %vm1942_vm13, %v3701_v53, %v1939_v36  ;;  %v1954_v40 = vadd.f32 %v3705_v22, %v1953_v3  ;;  %v1976_v43 = vand.u32 2147483648, %v4942_v48  ;;  %v4999_v63 = vadd.f32 1.0, %v4938_v60 }
 0x1a7   : > { %v2645_v54 = vadd.f32 %v4852_v30, %v2567_v32  ;;  %v1948_v34 = vsel %vm4952_vm5, %v1947_v42, %v1943_v56  ;;  %v1988_v61 = vsel %vm1987_vm14, %v3703_v57, %v1984_v35  ;;  %v1967_v4 = vsub.f32 1.0, %v1966_v0 }
 0x1a8   : > { %v2575_v53 = vmul.f32 %v1948_v34, %v4841_v15  ;;  %v1993_v39 = vsel %vm4959_vm7, %v1992_v55, %v1988_v61  ;;  %v1958_v1 = vsel %vm1957_vm15, %v3705_v22, %v1954_v40  ;;  %v3709_v29 = vpop.eup %3708  ;;  %vm1971_vm1 = vweird.f32 %v3707_v31  ;;  %v836_v55 = vpop.f32.mrf.mxu0 }
 0x1a9   : > { %v2578_v30 = vmul.f32 %v1993_v39, %v4844_v24  ;;  %v1963_v42 = vsel %vm4968_vm8, %v1962_v52, %v1958_v1  ;;  %v1968_v57 = vmul.f32 %v3707_v31, %v1967_v4  ;;  %vm1970_vm2 = vweird.f32 %v4942_v48  ;;  %v780_v40 = vpop.f32.mrf.mxu2 }
 0x1aa   : > { %v2620_v37 = vadd.f32 %v4881_v38, %v2575_v53  ;;  %v2576_v59 = vmul.f32 %v1963_v42, %v4847_v25  ;;  %v2086_v15 = vmul.f32 %v3709_v29, %v4963_v45  ;;  %vm1975_vm0 = vcmp.eq.f32.partialorder %v1974_v27, 8.507059e+37  ;;  %vm1972_vm3 = vmor %vm1970_vm2, %vm1971_vm1 }
 0x1ab   : > { %v5009_v60 = vadd.f32 %v4884_v44, %v2578_v30  ;;  %v1969_v22 = vadd.f32 %v3707_v31, %v1968_v57  ;;  %v1977_v24 = vor.u32 1.1754944e-38, %v1976_v43  ;;  %v2094_v38 = vand.u32 2147483647, %v4963_v45  ;;  %v807_v44 = vpop.f32.mrf.mxu3 }
 0x1ac   : > { %v5011_v49 = vadd.f32 %v2632_v19, %v2576_v59  ;;  %v2087_v5 = vsub.f32 1.0, %v2086_v15  ;;  %3710 = vrcp.f32 %v4999_v63  ;;  %vm2091_vm4 = vweird.f32 %v3709_v29 }
 0x1ad   : > { %v1973_v25 = vsel %vm1972_vm3, %v3707_v31, %v1969_v22  ;;  %v2096_v48 = vand.u32 2147483648, %v4963_v45  ;;  %3712 = vpow2.f32 %v4925_v7  ;;  %v5019_v51 = vadd.f32 %v836_v55, %v4433_v17 }
 0x1ae   : > { %v1978_v9 = vsel %vm1975_vm0, %v1977_v24, %v1973_v25  ;;  %v2088_v11 = vmul.f32 %v3709_v29, %v2087_v5  ;;  %3714 = vpow2.f32 %v4930_v41  ;;  %vm2090_vm5 = vweird.f32 %v4963_v45 }
 0x1af   : > { %v2577_v13 = vmul.f32 %v1978_v9, %v4850_v14  ;;  %3716 = vpow2.f32 %v4945_v6  ;;  %v3489_v12 = vmul.f32 -1.442695, %v5019_v51  ;;  %v5026_v10 = vadd.f32 %v778_v33, %v4446_v8  ;;  %vm2092_vm6 = vmor %vm2090_vm5, %vm2091_vm4  ;;  %v751_v14 = vpop.f32.mrf.mxu1 }
 0x1b0   : > { %v2089_v50 = vadd.f32 %v3709_v29, %v2088_v11  ;;  %v5029_v7 = vadd.f32 %v807_v44, %v4449_v26  ;;  %vm2095_vm7 = vcmp.eq.f32.partialorder %v2094_v38, 8.507059e+37  ;;  %v2097_v41 = vor.u32 1.1754944e-38, %v2096_v48  ;;  %v838_v35 = vpop.f32.mrf.mxu0 }
 0x1b1   : > { %v5031_v18 = vadd.f32 %v2645_v54, %v2577_v13  ;;  %3718 = vpow2.f32 %v3489_v12  ;;  %v3487_v6 = vmul.f32 -1.442695, %v5026_v10  ;;  %v5041_v32 = vadd.f32 %v751_v14, %v4431_v16 }
 0x1b2   : > { %v3711_v20 = vpop.eup %3710  ;;  %v2093_v45 = vsel %vm2092_vm6, %v3709_v29, %v2089_v50  ;;  %v3488_v19 = vmul.f32 -1.442695, %v5029_v7  ;;  %v2139_v43 = vand.u32 2147483647, %v4999_v63  ;;  %v2141_v54 = vand.u32 2147483648, %v4999_v63 }
 0x1b3   : > { %v3713_v47 = vpop.eup %3712  ;;  %v2098_v28 = vsel %vm2095_vm7, %v2097_v41, %v2093_v45  ;;  %v2131_v31 = vmul.f32 %v3711_v20, %v4999_v63  ;;  %3720 = vpow2.f32 %v3487_v6  ;;  %vm2136_vm8 = vweird.f32 %v3711_v20 }
 0x1b4   : > { %v3715_v23 = vpop.eup %3714  ;;  %v2585_v36 = vmul.f32 %v2098_v28, %v4866_v46  ;;  %v5038_v3 = vadd.f32 1.0, %v3713_v47  ;;  %3722 = vpow2.f32 %v3488_v19  ;;  %v5052_v16 = vadd.f32 %v838_v35, %v4433_v17 }
 0x1b5   : > { %v3717_v52 = vpop.eup %3716  ;;  %v2132_v0 = vsub.f32 1.0, %v2131_v31  ;;  %v5043_v56 = vadd.f32 1.0, %v3715_v23  ;;  %vm2135_vm9 = vweird.f32 %v4999_v63  ;;  %v3496_v4 = vmul.f32 -1.442695, %v5041_v32 }
 0x1b6   : > { %v5045_v27 = vadd.f32 %v2620_v37, %v2585_v36  ;;  %3724 = vrcp.f32 %v5038_v3  ;;  %v5055_v61 = vadd.f32 1.0, %v3717_v52  ;;  %v5059_v53 = vadd.f32 %v780_v40, %v4446_v8  ;;  %vm2137_vm10 = vmor %vm2135_vm9, %vm2136_vm8 }
 0x1b7   : > { %v2133_v46 = vmul.f32 %v3711_v20, %v2132_v0  ;;  %3726 = vrcp.f32 %v5043_v56  ;;  %v3719_v34 = vpop.eup %3718  ;;  %v2109_v1 = vand.u32 2147483647, %v5038_v3  ;;  %v2111_v29 = vand.u32 2147483648, %v5038_v3 }
 0x1b8   : > { %v5063_v30 = vadd.f32 1.0, %v3719_v34  ;;  %v2142_v17 = vor.u32 1.1754944e-38, %v2141_v54  ;;  %v2124_v57 = vand.u32 2147483647, %v5043_v56  ;;  %v2126_v63 = vand.u32 2147483648, %v5043_v56 }
 0x1b9   : > { %v2134_v39 = vadd.f32 %v3711_v20, %v2133_v46  ;;  %v3721_v42 = vpop.eup %3720  ;;  %3728 = vrcp.f32 %v5055_v61  ;;  %vm2140_vm11 = vcmp.eq.f32.partialorder %v2139_v43, 8.507059e+37  ;;  %v3499_v8 = vmul.f32 -1.442695, %v5052_v16 }
 0x1ba   : > { %v3723_v37 = vpop.eup %3722  ;;  %3730 = vrcp.f32 %v5063_v30  ;;  %vm2105_vm12 = vweird.f32 %v5038_v3  ;;  %vm2120_vm13 = vweird.f32 %v5043_v56  ;;  %v5073_v22 = vmul.f32 -1.442695, %v5059_v53 }
 0x1bb   : > { %v2138_v59 = vsel %vm2137_vm10, %v3711_v20, %v2134_v39  ;;  %vm5077_vm14 = vcmp.eq.f32.partialorder %v2109_v1, 8.507059e+37  ;;  %v2112_v25 = vor.u32 1.1754944e-38, %v2111_v29  ;;  %3732 = vpow2.f32 %v3496_v4 }
 0x1bc   : > { %v3725_v15 = vpop.eup %3724  ;;  %v2143_v55 = vsel %vm2140_vm11, %v2142_v17, %v2138_v59  ;;  %vm5082_vm15 = vcmp.eq.f32.partialorder %v2124_v57, 8.507059e+37  ;;  %v2127_v9 = vor.u32 1.1754944e-38, %v2126_v63  ;;  %v2244_v11 = vand.u32 2147483647, %v5055_v61 }
 0x1bd   : > { %v3727_v24 = vpop.eup %3726  ;;  %v2588_v33 = vmul.f32 %v2143_v55, %v4876_v21  ;;  %v2101_v5 = vmul.f32 %v3725_v15, %v5038_v3  ;;  %vm2240_vm1 = vweird.f32 %v5055_v61  ;;  %v2246_v50 = vand.u32 2147483648, %v5055_v61 }
 0x1be   : > { %v2116_v48 = vmul.f32 %v3727_v24, %v5043_v56  ;;  %v5092_v12 = vadd.f32 1.0, %v3721_v42  ;;  %vm2285_vm2 = vweird.f32 %v5063_v30  ;;  %v2289_v20 = vand.u32 2147483647, %v5063_v30 }
 0x1bf   : > { %v5088_v13 = vadd.f32 %v5009_v60, %v2588_v33  ;;  %v2102_v21 = vsub.f32 1.0, %v2101_v5  ;;  %v3729_v41 = vpop.eup %3728  ;;  %v5096_v45 = vadd.f32 1.0, %v3723_v37  ;;  %vm2106_vm0 = vweird.f32 %v3725_v15 }
 0x1c0   : > { %v2117_v14 = vsub.f32 1.0, %v2116_v48  ;;  %v3731_v6 = vpop.eup %3730  ;;  %v2236_v60 = vmul.f32 %v3729_v41, %v5055_v61  ;;  %3734 = vrcp.f32 %v5092_v12  ;;  %vm2121_vm3 = vweird.f32 %v3727_v24  ;;  %vm2107_vm5 = vmor %vm2105_vm12, %vm2106_vm0 }
 0x1c1   : > { %v2103_v19 = vmul.f32 %v3725_v15, %v2102_v21  ;;  %v2281_v28 = vmul.f32 %v3731_v6, %v5063_v30  ;;  %v2291_v31 = vand.u32 2147483648, %v5063_v30  ;;  %v3733_v23 = vpop.eup %3732  ;;  %vm5102_vm4 = vcmp.eq.f32.partialorder %v2244_v11, 8.507059e+37  ;;  %vm2122_vm7 = vmor %vm2120_vm13, %vm2121_vm3 }
 0x1c2   : > { %v2118_v47 = vmul.f32 %v3727_v24, %v2117_v14  ;;  %v2237_v35 = vsub.f32 1.0, %v2236_v60  ;;  %v2247_v0 = vor.u32 1.1754944e-38, %v2246_v50  ;;  %vm5108_vm6 = vcmp.eq.f32.partialorder %v2289_v20, 8.507059e+37 }
 0x1c3   : > { %v2104_v36 = vadd.f32 %v3725_v15, %v2103_v19  ;;  %v2282_v43 = vsub.f32 1.0, %v2281_v28  ;;  %3736 = vrcp.f32 %v5096_v45  ;;  %vm2241_vm8 = vweird.f32 %v3729_v41 }
 0x1c4   : > { %v2119_v40 = vadd.f32 %v3727_v24, %v2118_v47  ;;  %v2238_v34 = vmul.f32 %v3729_v41, %v2237_v35  ;;  %3738 = vpow2.f32 %v3499_v8  ;;  %vm2286_vm9 = vweird.f32 %v3731_v6  ;;  %vm2242_vm10 = vmor %vm2240_vm1, %vm2241_vm8 }
 0x1c5   : > { %v2108_v46 = vsel %vm2107_vm5, %v3725_v15, %v2104_v36  ;;  %v2283_v39 = vmul.f32 %v3731_v6, %v2282_v43  ;;  %v2292_v57 = vor.u32 1.1754944e-38, %v2291_v31  ;;  %v5124_v59 = vadd.f32 1.0, %v3733_v23  ;;  %vm2287_vm11 = vmor %vm2285_vm2, %vm2286_vm9 }
 0x1c6   : > { %v2113_v4 = vsel %vm5077_vm14, %v2112_v25, %v2108_v46  ;;  %v2123_v3 = vsel %vm2122_vm7, %v3727_v24, %v2119_v40  ;;  %v3735_v1 = vpop.eup %3734  ;;  %v2239_v17 = vadd.f32 %v3729_v41, %v2238_v34  ;;  %vm2255_vm12 = vweird.f32 %v5092_v12  ;;  %v850_v46 = vpop.f32.mrf.mxu1 }
 0x1c7   : > { %v2586_v29 = vmul.f32 %v2113_v4, %v4901_v62  ;;  %v2128_v42 = vsel %vm5082_vm15, %v2127_v9, %v2123_v3  ;;  %v2284_v63 = vadd.f32 %v3731_v6, %v2283_v39  ;;  %v2251_v37 = vmul.f32 %v3735_v1, %v5092_v12 }
 0x1c8   : > { %v2587_v56 = vmul.f32 %v2128_v42, %v4907_v58  ;;  %v2243_v15 = vsel %vm2242_vm10, %v3729_v41, %v2239_v17  ;;  %v2261_v62 = vand.u32 2147483648, %v5092_v12  ;;  %v2259_v30 = vand.u32 2147483647, %v5092_v12  ;;  %v937_v42 = vpop.f32.mrf.mxu0 }
 0x1c9   : > { %v2634_v8 = vadd.f32 %v5011_v49, %v2586_v29  ;;  %v3737_v55 = vpop.eup %3736  ;;  %v2248_v61 = vsel %vm5102_vm4, %v2247_v0, %v2243_v15  ;;  %v2288_v24 = vsel %vm2287_vm11, %v3731_v6, %v2284_v63  ;;  %v2252_v33 = vsub.f32 1.0, %v2251_v37 }
 0x1ca   : > { %v2647_v58 = vadd.f32 %v5031_v18, %v2587_v56  ;;  %v3739_v5 = vpop.eup %3738  ;;  %v2595_v38 = vmul.f32 %v2248_v61, %v4919_v2  ;;  %v2293_v49 = vsel %vm5108_vm6, %v2292_v57, %v2288_v24  ;;  %v2266_v25 = vmul.f32 %v3737_v55, %v5096_v45  ;;  %v809_v18 = vpop.f32.mrf.mxu3 }
 0x1cb   : > { %v2598_v48 = vmul.f32 %v2293_v49, %v5019_v51  ;;  %v2253_v44 = vmul.f32 %v3735_v1, %v2252_v33  ;;  %vm2256_vm13 = vweird.f32 %v3735_v1  ;;  %3740 = vrcp.f32 %v5124_v59 }
 0x1cc   : > { %v5142_v9 = vadd.f32 %v5045_v27, %v2595_v38  ;;  %v2262_v11 = vor.u32 1.1754944e-38, %v2261_v62  ;;  %v2267_v21 = vsub.f32 1.0, %v2266_v25  ;;  %v2276_v2 = vand.u32 2147483648, %v5096_v45  ;;  %vm2257_vm14 = vmor %vm2255_vm12, %vm2256_vm13 }
 0x1cd   : > { %v5146_v50 = vadd.f32 %v5088_v13, %v2598_v48  ;;  %v2254_v41 = vadd.f32 %v3735_v1, %v2253_v44  ;;  %v5148_v14 = vadd.f32 1.0, %v3739_v5  ;;  %3742 = vpow2.f32 %v5073_v22  ;;  %v879_v48 = vpop.f32.mrf.mxu2 }
 0x1ce   : > { %v2268_v51 = vmul.f32 %v3737_v55, %v2267_v21  ;;  %vm2271_vm15 = vweird.f32 %v3737_v55  ;;  %v2274_v27 = vand.u32 2147483647, %v5096_v45  ;;  %v5155_v20 = vadd.f32 %v809_v18, %v4449_v26 }
 0x1cf   : > { %v2258_v6 = vsel %vm2257_vm14, %v3735_v1, %v2254_v41  ;;  %vm2260_vm1 = vcmp.eq.f32.partialorder %v2259_v30, 8.507059e+37  ;;  %3744 = vrcp.f32 %v5148_v14  ;;  %vm2270_vm2 = vweird.f32 %v5096_v45 }
 0x1d0   : > { %v2263_v13 = vsel %vm2260_vm1, %v2262_v11, %v2258_v6  ;;  %v2269_v19 = vadd.f32 %v3737_v55, %v2268_v51  ;;  %v3498_v22 = vmul.f32 -1.442695, %v5155_v20  ;;  %vm2272_vm0 = vmor %vm2270_vm2, %vm2271_vm15  ;;  %v2277_v47 = vor.u32 1.1754944e-38, %v2276_v2  ;;  %v852_v51 = vpop.f32.mrf.mxu1 }
 0x1d1   : > { %v3741_v60 = vpop.eup %3740  ;;  %v2596_v12 = vmul.f32 %v2263_v13, %v5026_v10  ;;  %vm2275_vm3 = vcmp.eq.f32.partialorder %v2274_v27, 8.507059e+37  ;;  %v3944_v10 = vld [vmem:[%s7457_s4] sm:$0xff]  ;;  %v2394_v43 = vand.u32 2147483647, %v5124_v59  ;;  %v2396_v54 = vand.u32 2147483648, %v5124_v59 }
 0x1d2   : > { %v2273_v28 = vsel %vm2272_vm0, %v3737_v55, %v2269_v19  ;;  %v2386_v26 = vmul.f32 %v3741_v60, %v5124_v59  ;;  %3746 = vpow2.f32 %v3498_v22  ;;  %v5170_v0 = vperm.slane %v3944_v10, 4 }
 0x1d3   : > { %v3743_v31 = vpop.eup %3742  ;;  %v5162_v23 = vadd.f32 %v2634_v8, %v2596_v12  ;;  %v2278_v36 = vsel %vm2275_vm3, %v2277_v47, %v2273_v28  ;;  %vm2391_vm4 = vweird.f32 %v3741_v60  ;;  %v5178_v3 = vperm.slane %v3944_v10, 7 }
 0x1d4   : > { %v2597_v35 = vmul.f32 %v2278_v36, %v5029_v7  ;;  %v2387_v52 = vsub.f32 1.0, %v2386_v26  ;;  %v5165_v45 = vadd.f32 1.0, %v3743_v31  ;;  %vm2390_vm5 = vweird.f32 %v5124_v59 }
 0x1d5   : > { %v3745_v40 = vpop.eup %3744  ;;  %v5182_v29 = vadd.f32 %v850_v46, %v5170_v0  ;;  %vm2392_vm6 = vmor %vm2390_vm5, %vm2391_vm4  ;;  %vm2395_vm7 = vcmp.eq.f32.partialorder %v2394_v43, 8.507059e+37  ;;  %v2397_v57 = vor.u32 1.1754944e-38, %v2396_v54  ;;  %v2439_v56 = vand.u32 2147483647, %v5148_v14 }
 0x1d6   : > { %v5174_v34 = vadd.f32 %v2647_v58, %v2597_v35  ;;  %v2388_v4 = vmul.f32 %v3741_v60, %v2387_v52  ;;  %v2431_v7 = vmul.f32 %v3745_v40, %v5148_v14  ;;  %3748 = vrcp.f32 %v5165_v45 }
 0x1d7   : > { %v2441_v63 = vand.u32 2147483648, %v5148_v14  ;;  %vm2436_vm8 = vweird.f32 %v3745_v40  ;;  %vm2435_vm9 = vweird.f32 %v5148_v14  ;;  %v5190_v59 = vadd.f32 %v937_v42, %v5178_v3 }
 0x1d8   : > { %v2389_v39 = vadd.f32 %v3741_v60, %v2388_v4  ;;  %v2432_v1 = vsub.f32 1.0, %v2431_v7  ;;  %v3747_v17 = vpop.eup %3746  ;;  %v3430_v61 = vmul.f32 -1.442695, %v5182_v29  ;;  %vm2437_vm10 = vmor %vm2435_vm9, %vm2436_vm8  ;;  %vm2440_vm11 = vcmp.eq.f32.partialorder %v2439_v56, 8.507059e+37  ;;  %v939_v4 = vpop.f32.mrf.mxu0 }
 0x1d9   : > { %v5186_v15 = vadd.f32 1.0, %v3747_v17  ;;  %v2442_v33 = vor.u32 1.1754944e-38, %v2441_v63  ;;  %v5197_v30 = vperm.slane %v3944_v10, 5  ;;  %v3433_v18 = vmul.f32 -1.442695, %v5190_v59 }
 0x1da   : > { %v2393_v37 = vsel %vm2392_vm6, %v3741_v60, %v2389_v39  ;;  %v2433_v8 = vmul.f32 %v3745_v40, %v2432_v1  ;;  %v2409_v11 = vand.u32 2147483647, %v5165_v45  ;;  %v2411_v21 = vand.u32 2147483648, %v5165_v45 }
 0x1db   : > { %v2398_v62 = vsel %vm2395_vm7, %v2397_v57, %v2393_v37  ;;  %3750 = vrcp.f32 %v5186_v15  ;;  %v5205_v14 = vadd.f32 %v879_v48, %v5197_v30  ;;  %vm2405_vm13 = vweird.f32 %v5165_v45 }
 0x1dc   : > { %v2605_v55 = vmul.f32 %v2398_v62, %v5041_v32  ;;  %v2434_v58 = vadd.f32 %v3745_v40, %v2433_v8  ;;  %v3749_v24 = vpop.eup %3748  ;;  %3752 = vpow2.f32 %v3430_v61  ;;  %v2412_v22 = vor.u32 1.1754944e-38, %v2411_v21 }
 0x1dd   : > { %v2401_v49 = vmul.f32 %v3749_v24, %v5165_v45  ;;  %vm2406_vm12 = vweird.f32 %v3749_v24  ;;  %3754 = vpow2.f32 %v3433_v18  ;;  %v5212_v12 = vadd.f32 %v852_v51, %v5170_v0 }
 0x1de   : > { %v2623_v5 = vadd.f32 %v5142_v9, %v2605_v55  ;;  %v2438_v38 = vsel %vm2437_vm10, %v3745_v40, %v2434_v58  ;;  %vm2407_vm14 = vmor %vm2405_vm13, %vm2406_vm12  ;;  %vm2410_vm15 = vcmp.eq.f32.partialorder %v2409_v11, 8.507059e+37  ;;  %v2426_v26 = vand.u32 2147483648, %v5186_v15 }
 0x1df   : > { %v2443_v25 = vsel %vm2440_vm11, %v2442_v33, %v2438_v38  ;;  %v2402_v44 = vsub.f32 1.0, %v2401_v49  ;;  %v3431_v31 = vmul.f32 -1.442695, %v5205_v14  ;;  %v2424_v52 = vand.u32 2147483647, %v5186_v15  ;;  %v881_v49 = vpop.f32.mrf.mxu2 }
 0x1e0   : > { %v2608_v32 = vmul.f32 %v2443_v25, %v5052_v16  ;;  %v5208_v16 = vperm.slane %v3944_v10, 6  ;;  %v2624_v6 = vrot.slane %v2623_v5, 4  ;;  %vm2420_vm2 = vweird.f32 %v5186_v15 }
 0x1e1   : > { %v3751_v2 = vpop.eup %3750  ;;  %v2403_v41 = vmul.f32 %v3749_v24, %v2402_v44  ;;  %v2427_v1 = vor.u32 1.1754944e-38, %v2426_v26  ;;  %3756 = vpow2.f32 %v3431_v31  ;;  %v3440_v42 = vmul.f32 -1.442695, %v5212_v12  ;;  %v855_v26 = vpop.f32.mrf.mxu1 }
 0x1e2   : > { %v2662_v9 = vadd.f32 %v5146_v50, %v2608_v32  ;;  %v2416_v27 = vmul.f32 %v3751_v2, %v5186_v15  ;;  %v908_v50 = vpop.f32.mrf.mxu3  ;;  %v3753_v47 = vpop.eup %3752  ;;  %vm2421_vm1 = vweird.f32 %v3751_v2  ;;  %v2625_v45 = vadd.f32 %v2624_v6, %v2623_v5 }
 0x1e3   : > { %v2404_v13 = vadd.f32 %v3749_v24, %v2403_v41  ;;  %v5219_v40 = vadd.f32 %v908_v50, %v5208_v16  ;;  %v5222_v46 = vadd.f32 1.0, %v3753_v47  ;;  %v3755_v7 = vpop.eup %3754  ;;  %vm2422_vm0 = vmor %vm2420_vm2, %vm2421_vm1  ;;  %vm2425_vm3 = vcmp.eq.f32.partialorder %v2424_v52, 8.507059e+37 }
 0x1e4   : > { %v2663_v19 = vrot.slane %v2662_v9, 4  ;;  %v2417_v60 = vsub.f32 1.0, %v2416_v27  ;;  %v5227_v63 = vadd.f32 %v939_v4, %v5178_v3  ;;  %v5231_v15 = vadd.f32 1.0, %v3755_v7 }
 0x1e5   : > { %v2408_v28 = vsel %vm2407_vm14, %v3749_v24, %v2404_v13  ;;  %3758 = vrcp.f32 %v5222_v46  ;;  %v3432_v62 = vmul.f32 -1.442695, %v5219_v40  ;;  %vm2765_vm4 = vcmask 1040384  }
 0x1e6   : > { %v2413_v36 = vsel %vm2410_vm15, %v2412_v22, %v2408_v28  ;;  %v2418_v35 = vmul.f32 %v3751_v2, %v2417_v60  ;;  %v2664_v43 = vadd.f32 %v2663_v19, %v2662_v9  ;;  %3760 = vpow2.f32 %v3440_v42  ;;  %v942_v42 = vpop.f32.mrf.mxu0 }
 0x1e7   : > { %v2606_v10 = vmul.f32 %v2413_v36, %v5059_v53  ;;  %v2626_v53 = vrot.slane %v2625_v45, 2  ;;  %v3757_v58 = vpop.eup %3756  ;;  %3762 = vrcp.f32 %v5231_v15  ;;  %v3443_v38 = vmul.f32 -1.442695, %v5227_v63 }
 0x1e8   : > { %v2419_v54 = vadd.f32 %v3751_v2, %v2418_v35  ;;  %v2665_v37 = vrot.slane %v2664_v43, 2  ;;  %3764 = vpow2.f32 %v3432_v62  ;;  %v5239_v32 = vadd.f32 1.0, %v3757_v58 }
 0x1e9   : > { %v2636_v39 = vadd.f32 %v5162_v23, %v2606_v10  ;;  %v2627_v61 = vadd.f32 %v2626_v53, %v2625_v45  ;;  %3766 = vpow2.f32 %v3443_v38  ;;  %vm2767_vm5 = vcmask 1042434  }
 0x1ea   : > { %v2423_v17 = vsel %vm2422_vm0, %v3751_v2, %v2419_v54  ;;  %v2666_v33 = vadd.f32 %v2665_v37, %v2664_v43  ;;  %v5242_v2 = vadd.f32 %v881_v49, %v5197_v30  ;;  %3768 = vrcp.f32 %v5239_v32  ;;  %v910_v13 = vpop.f32.mrf.mxu3  ;;  %v857_v49 = vpop.f32.mrf.mxu1 }
 0x1eb   : > { %v2637_v57 = vrot.slane %v2636_v39, 4  ;;  %v2428_v56 = vsel %vm2425_vm3, %v2427_v1, %v2423_v17  ;;  %v5237_v25 = vpop.eup %3758  ;;  %v2628_v18 = vrot.slane %v2627_v61, 1  ;;  %vm2769_vm6 = vcmask 1041408  }
 0x1ec   : > { %v2607_v8 = vmul.f32 %v2428_v56, %v5155_v20  ;;  %v3761_v44 = vpop.eup %3760  ;;  %v2667_v11 = vrot.slane %v2666_v33, 1  ;;  %v1396_v41 = vmul.f32 %v5237_v25, %v5222_v46  ;;  %v3441_v28 = vmul.f32 -1.442695, %v5242_v2 }
 0x1ed   : > { %v2638_v23 = vadd.f32 %v2637_v57, %v2636_v39  ;;  %v5246_v51 = vpop.eup %3762  ;;  %v5249_v6 = vadd.f32 1.0, %v3761_v44  ;;  %v2629_v22 = vadd.f32 %v2628_v18, %v2627_v61  ;;  %v5263_v39 = vadd.f32 %v910_v13, %v5208_v16 }
 0x1ee   : > { %v2649_v55 = vadd.f32 %v5174_v34, %v2607_v8  ;;  %v3765_v19 = vpop.eup %3764  ;;  %v2668_v50 = vadd.f32 %v2667_v11, %v2666_v33  ;;  %v1397_v36 = vsub.f32 1.0, %v1396_v41  ;;  %v1441_v45 = vmul.f32 %v5246_v51, %v5231_v15 }
 0x1ef   : > { %v2639_v24 = vrot.slane %v2638_v23, 2  ;;  %v3767_v35 = vpop.eup %3766  ;;  %v5255_v10 = vadd.f32 1.0, %v3765_v19  ;;  %3770 = vrcp.f32 %v5249_v6  ;;  %v3442_v57 = vmul.f32 -1.442695, %v5263_v39 }
 0x1f0   : > { %v2650_v5 = vrot.slane %v2649_v55, 4  ;;  %v5258_v43 = vadd.f32 1.0, %v3767_v35  ;;  %v5260_v54 = vpop.eup %3768  ;;  %v2759_v4 = vrot.slane %v2668_v50, 5  ;;  %3772 = vpow2.f32 %v3441_v28 }
 0x1f1   : > { %v2640_v20 = vadd.f32 %v2639_v24, %v2638_v23  ;;  %v1398_v1 = vmul.f32 %v5237_v25, %v1397_v36  ;;  %v1442_v53 = vsub.f32 1.0, %v1441_v45  ;;  %3774 = vrcp.f32 %v5255_v10  ;;  %v884_v23 = vpop.f32.mrf.mxu2 }
 0x1f2   : > { %v2651_v48 = vadd.f32 %v2650_v5, %v2649_v55  ;;  %v1411_v37 = vmul.f32 %v5260_v54, %v5239_v32  ;;  %3776 = vrcp.f32 %v5258_v43  ;;  %v5274_v8 = vadd.f32 %v855_v26, %v5170_v0  ;;  %v913_v24 = vpop.f32.mrf.mxu3 }
 0x1f3   : > { %v2641_v34 = vrot.slane %v2640_v20, 1  ;;  %v1404_v55 = vand.u32 2147483647, %v5222_v46  ;;  %v1406_v58 = vand.u32 2147483648, %v5222_v46  ;;  %v5281_v61 = vadd.f32 %v942_v42, %v5178_v3 }
 0x1f4   : > { %v2652_v21 = vrot.slane %v2651_v48, 2  ;;  %vm1400_vm7 = vweird.f32 %v5222_v46  ;;  %vm1401_vm8 = vweird.f32 %v5237_v25  ;;  %v1399_v5 = vadd.f32 %v5237_v25, %v1398_v1 }
 0x1f5   : > { %v2642_v9 = vadd.f32 %v2641_v34, %v2640_v20  ;;  %v5276_v62 = vpop.eup %3770  ;;  %v1443_v38 = vmul.f32 %v5246_v51, %v1442_v53  ;;  %3778 = vpow2.f32 %v3442_v57  ;;  %v5288_v20 = vadd.f32 %v884_v23, %v5197_v30  ;;  %vm5310_vm10 = vmor %vm1400_vm7, %vm1401_vm8 }
 0x1f6   : > { %v2653_v27 = vadd.f32 %v2652_v21, %v2651_v48  ;;  %v3773_v33 = vpop.eup %3772  ;;  %v1412_v48 = vsub.f32 1.0, %v1411_v37  ;;  %v1546_v44 = vmul.f32 %v5276_v62, %v5249_v6  ;;  %v3450_v18 = vmul.f32 -1.442695, %v5274_v8 }
 0x1f7   : > { %v2757_v60 = vrot.slane %v2642_v9, 7  ;;  %v5294_v34 = vadd.f32 %v913_v24, %v5208_v16  ;;  %v5296_v11 = vpop.eup %3774  ;;  %vm5298_vm9 = vcmp.eq.f32.partialorder %v1404_v55, 8.507059e+37  ;;  %v1407_v9 = vor.u32 1.1754944e-38, %v1406_v58 }
 0x1f8   : > { %v2654_v47 = vrot.slane %v2653_v27, 1  ;;  %v1449_v41 = vand.u32 2147483647, %v5231_v15  ;;  %v5304_v13 = vpop.eup %3776  ;;  %vm1445_vm11 = vweird.f32 %v5231_v15  ;;  %v5319_v50 = vadd.f32 %v857_v49, %v5170_v0 }
 0x1f9   : > { %v2766_v31 = vsel %vm2765_vm4, %v2629_v22, %v2757_v60  ;;  %v1451_v22 = vand.u32 2147483648, %v5231_v15  ;;  %v5316_v60 = vadd.f32 1.0, %v3773_v33  ;;  %v1444_v28 = vadd.f32 %v5246_v51, %v1443_v38 }
 0x1fa   : > { %v2655_v52 = vadd.f32 %v2654_v47, %v2653_v27  ;;  %v3453_v27 = vmul.f32 -1.442695, %v5281_v61  ;;  %v1403_v47 = vsel %vm5310_vm10, %v5237_v25, %v1399_v5  ;;  %vm1446_vm12 = vweird.f32 %v5246_v51 }
 0x1fb   : > { %v3451_v46 = vmul.f32 -1.442695, %v5288_v20  ;;  %v1413_v26 = vmul.f32 %v5260_v54, %v1412_v48  ;;  %3780 = vpow2.f32 %v3450_v18  ;;  %v3452_v36 = vmul.f32 -1.442695, %v5294_v34  ;;  %v3779_v35 = vpop.eup %3778  ;;  %vm5339_vm14 = vmor %vm1445_vm11, %vm1446_vm12 }
 0x1fc   : > { %v2758_v7 = vrot.slane %v2655_v52, 6  ;;  %vm5329_vm13 = vcmp.eq.f32.partialorder %v1449_v41, 8.507059e+37  ;;  %v1426_v25 = vmul.f32 %v5296_v11, %v5255_v10  ;;  %v1591_v45 = vmul.f32 %v5304_v13, %v5258_v43 }
 0x1fd   : > { %3782 = vpow2.f32 %v3453_v27  ;;  %v1421_v1 = vand.u32 2147483648, %v5239_v32  ;;  %v3460_v42 = vmul.f32 -1.442695, %v5319_v50  ;;  %v1448_v53 = vsel %vm5339_vm14, %v5246_v51, %v1444_v28 }
 0x1fe   : > { %v2768_v17 = vsel %vm2767_vm5, %v2758_v7, %v2759_v4  ;;  %v1419_v7 = vand.u32 2147483647, %v5239_v32  ;;  %3784 = vrcp.f32 %v5316_v60  ;;  %vm1416_vm15 = vweird.f32 %v5260_v54 }
 0x1ff   : > { %v5268_v56 = vsel %vm2769_vm6, %v2766_v31, %v2768_v17  ;;  %v1547_v31 = vsub.f32 1.0, %v1546_v44  ;;  %v1408_v17 = vsel %vm5298_vm9, %v1407_v9, %v1403_v47  ;;  %3786 = vpow2.f32 %v3451_v46 }
 0x200   : > { %7529 = vst [vmem:[#allocation6_spill] sm:$0xff] %v5268_v56  ;;  %v1414_v15 = vadd.f32 %v5260_v54, %v1413_v26  ;;  %v5355_v37 = vadd.f32 1.0, %v3779_v35  ;;  %3788 = vpow2.f32 %v3452_v36  ;;  %v1452_v23 = vor.u32 1.1754944e-38, %v1451_v22 }
 0x201   : > { %v1548_v57 = vmul.f32 %v5276_v62, %v1547_v31  ;;  %v1427_v55 = vsub.f32 1.0, %v1426_v25  ;;  %v1554_v58 = vand.u32 2147483647, %v5249_v6  ;;  %v1592_v24 = vsub.f32 1.0, %v1591_v45  ;;  %v3781_v33 = vpop.eup %3780 }
 0x202   : > { %vm1415_vm1 = vweird.f32 %v5239_v32  ;;  %vm5359_vm2 = vcmp.eq.f32.partialorder %v1419_v7, 8.507059e+37  ;;  %v1556_v5 = vand.u32 2147483648, %v5249_v6  ;;  %3790 = vpow2.f32 %v3460_v42 }
 0x203   : > { %v3783_v38 = vpop.eup %3782  ;;  %v5365_v49 = vmul.f32 %v1408_v17, %v5182_v29  ;;  %v1453_v48 = vsel %vm5329_vm13, %v1452_v23, %v1448_v53  ;;  %vm5371_vm0 = vmor %vm1415_vm1, %vm1416_vm15  ;;  %v1422_v32 = vor.u32 1.1754944e-38, %v1421_v1  ;;  %v1434_v18 = vand.u32 2147483647, %v5255_v10 }
 0x204   : > { %v5376_v21 = vpop.eup %3784  ;;  %v1418_v9 = vsel %vm5371_vm0, %v5260_v54, %v1414_v15  ;;  %v1549_v29 = vadd.f32 %v5276_v62, %v1548_v57  ;;  %vm1551_vm3 = vweird.f32 %v5276_v62  ;;  %3792 = vrcp.f32 %v5355_v37 }
 0x205   : > { %v3787_v41 = vpop.eup %3786  ;;  %v1428_v27 = vmul.f32 %v5296_v11, %v1427_v55  ;;  %vm1550_vm5 = vweird.f32 %v5249_v6  ;;  %vm5386_vm6 = vcmp.eq.f32.partialorder %v1554_v58, 8.507059e+37  ;;  %v1593_v22 = vmul.f32 %v5304_v13, %v1592_v24 }
 0x206   : > { %v3789_v47 = vpop.eup %3788  ;;  %v5392_v54 = vmul.f32 %v1453_v48, %v5190_v59  ;;  %vm1430_vm7 = vweird.f32 %v5255_v10  ;;  %v1557_v28 = vor.u32 1.1754944e-38, %v1556_v5  ;;  %v5395_v46 = vadd.f32 1.0, %v3781_v33  ;;  %vm5400_vm8 = vmor %vm1550_vm5, %vm1551_vm3  ;;  %v886_v5 = vpop.f32.mrf.mxu2 }
 0x207   : > { %v1423_v26 = vsel %vm5359_vm2, %v1422_v32, %v1418_v9  ;;  %v1436_v6 = vand.u32 2147483648, %v5255_v10  ;;  %v1561_v36 = vmul.f32 %v5376_v21, %v5316_v60  ;;  %v5406_v35 = vadd.f32 1.0, %v3783_v38 }
 0x208   : > { %v3791_v59 = vpop.eup %3790  ;;  %vm1431_vm9 = vweird.f32 %v5296_v11  ;;  %vm5409_vm10 = vcmp.eq.f32.partialorder %v1434_v18, 8.507059e+37  ;;  %v1553_v25 = vsel %vm5400_vm8, %v5276_v62, %v1549_v29  ;;  %v5416_v45 = vadd.f32 1.0, %v3787_v41 }
 0x209   : > { %v1429_v4 = vadd.f32 %v5296_v11, %v1428_v27  ;;  %v1594_v7 = vadd.f32 %v5304_v13, %v1593_v22  ;;  %vm1596_vm11 = vweird.f32 %v5304_v13  ;;  %v5421_v1 = vadd.f32 1.0, %v3789_v47  ;;  %vm5433_vm13 = vmor %vm1430_vm7, %vm1431_vm9  ;;  %v915_v27 = vpop.f32.mrf.mxu3 }
 0x20a   : > { %v5423_v42 = vpop.eup %3792  ;;  %v5426_v17 = vmul.f32 %v1423_v26, %v5205_v14  ;;  %vm1595_vm12 = vweird.f32 %v5258_v43  ;;  %v1601_v53 = vand.u32 2147483648, %v5258_v43  ;;  %3794 = vrcp.f32 %v5395_v46  ;;  %v944_v14 = vpop.f32.mrf.mxu0 }
 0x20b   : > { %v1599_v15 = vand.u32 2147483647, %v5258_v43  ;;  %v1562_v57 = vsub.f32 1.0, %v1561_v36  ;;  %3796 = vrcp.f32 %v5406_v35  ;;  %v5439_v23 = vadd.f32 1.0, %v3791_v59  ;;  %vm5445_vm14 = vmor %vm1595_vm12, %vm1596_vm11 }
 0x20c   : > { %v1437_v55 = vor.u32 1.1754944e-38, %v1436_v6  ;;  %v1558_v58 = vsel %vm5386_vm6, %v1557_v28, %v1553_v25  ;;  %v1571_v24 = vand.u32 2147483648, %v5316_v60  ;;  %3798 = vrcp.f32 %v5416_v45 }
 0x20d   : > { %v1433_v43 = vsel %vm5433_vm13, %v5296_v11, %v1429_v4  ;;  %v1598_v33 = vsel %vm5445_vm14, %v5304_v13, %v1594_v7  ;;  %v1576_v51 = vmul.f32 %v5423_v42, %v5355_v37  ;;  %3800 = vrcp.f32 %v5421_v1 }
 0x20e   : > { %v1602_v38 = vor.u32 1.1754944e-38, %v1601_v53  ;;  %v1569_v48 = vand.u32 2147483647, %v5316_v60  ;;  %v1586_v44 = vand.u32 2147483648, %v5355_v37  ;;  %v5463_v32 = vadd.f32 %v944_v14, %v5178_v3 }
 0x20f   : > { %v5466_v11 = vmul.f32 %v1558_v58, %v5212_v12  ;;  %vm1600_vm15 = vcmp.eq.f32.partialorder %v1599_v15, 8.507059e+37  ;;  %v1563_v13 = vmul.f32 %v5376_v21, %v1562_v57  ;;  %3802 = vrcp.f32 %v5439_v23  ;;  %v860_v57 = vpop.f32.mrf.mxu1 }
 0x210   : > { %v5470_v18 = vpop.eup %3794  ;;  %v5474_v9 = vsel %vm5409_vm10, %v1437_v55, %v1433_v43  ;;  %v1603_v29 = vsel %vm1600_vm15, %v1602_v38, %v1598_v33  ;;  %vm1565_vm1 = vweird.f32 %v5316_v60  ;;  %v1572_v41 = vor.u32 1.1754944e-38, %v1571_v24 }
 0x211   : > { %v5477_v19 = vpop.eup %3796  ;;  %v1577_v12 = vsub.f32 1.0, %v1576_v51  ;;  %v1584_v22 = vand.u32 2147483647, %v5355_v37  ;;  %v1706_v47 = vand.u32 2147483648, %v5395_v46  ;;  %v1751_v28 = vand.u32 2147483648, %v5406_v35 }
 0x212   : > { %v5482_v26 = vpop.eup %3798  ;;  %vm1566_vm2 = vweird.f32 %v5376_v21  ;;  %vm5485_vm0 = vcmp.eq.f32.partialorder %v1569_v48, 8.507059e+37  ;;  %v5489_v31 = vor.u32 1.1754944e-38, %v1586_v44  ;;  %v3463_v36 = vmul.f32 -1.442695, %v5463_v32  ;;  %v947_v24 = vpop.f32.mrf.mxu0 }
 0x213   : > { %v5493_v59 = vadd.f32 %v886_v5, %v5197_v30  ;;  %v5495_v52 = vpop.eup %3800  ;;  %v5498_v25 = vmul.f32 %v1603_v29, %v5227_v63  ;;  %v1564_v4 = vadd.f32 %v5376_v21, %v1563_v13  ;;  %v1696_v7 = vmul.f32 %v5470_v18, %v5395_v46  ;;  %vm5522_vm6 = vmor %vm1565_vm1, %vm1566_vm2  ;;  %v889_v29 = vpop.f32.mrf.mxu2 }
 0x214   : > { %v1704_v53 = vand.u32 2147483647, %v5395_v46  ;;  %vm1580_vm3 = vweird.f32 %v5355_v37  ;;  %vm1581_vm5 = vweird.f32 %v5423_v42  ;;  %v1741_v62 = vmul.f32 %v5477_v19, %v5406_v35 }
 0x215   : > { %v1749_v15 = vand.u32 2147483647, %v5406_v35  ;;  %3804 = vpow2.f32 %v3463_v36  ;;  %v5509_v63 = vpop.eup %3802  ;;  %v1578_v14 = vmul.f32 %v5423_v42, %v1577_v12  ;;  %v5512_v55 = vor.u32 1.1754944e-38, %v1706_v47  ;;  %vm5571_vm12 = vmor %vm1580_vm3, %vm1581_vm5 }
 0x216   : > { %v5514_v58 = vor.u32 1.1754944e-38, %v1751_v28  ;;  %v1711_v10 = vmul.f32 %v5482_v26, %v5416_v45  ;;  %v1719_v33 = vand.u32 2147483647, %v5416_v45  ;;  %v1726_v51 = vmul.f32 %v5495_v52, %v5421_v1 }
 0x217   : > { %v3461_v5 = vmul.f32 -1.442695, %v5493_v59  ;;  %v5531_v38 = vadd.f32 %v915_v27, %v5208_v16  ;;  %v1568_v48 = vsel %vm5522_vm6, %v5376_v21, %v1564_v4  ;;  %v1697_v44 = vsub.f32 1.0, %v1696_v7 }
 0x218   : > { %v1721_v60 = vand.u32 2147483648, %v5416_v45  ;;  %v5538_v13 = vadd.f32 %v860_v57, %v5170_v0  ;;  %vm5540_vm7 = vcmp.eq.f32.partialorder %v1584_v22, 8.507059e+37  ;;  %v1742_v47 = vsub.f32 1.0, %v1741_v62 }
 0x219   : > { %v1846_v27 = vmul.f32 %v5509_v63, %v5439_v23  ;;  %v3462_v28 = vmul.f32 -1.442695, %v5531_v38  ;;  %v5548_v36 = vadd.f32 %v947_v24, %v5178_v3  ;;  %v1579_v21 = vadd.f32 %v5423_v42, %v1578_v14  ;;  %v918_v24 = vpop.f32.mrf.mxu3 }
 0x21a   : > { %vm1700_vm8 = vweird.f32 %v5395_v46  ;;  %v1712_v4 = vsub.f32 1.0, %v1711_v10  ;;  %3806 = vpow2.f32 %v3461_v5  ;;  %v3470_v22 = vmul.f32 -1.442695, %v5538_v13 }
 0x21b   : > { %v3805_v7 = vpop.eup %3804  ;;  %vm1745_vm9 = vweird.f32 %v5406_v35  ;;  %v1727_v62 = vsub.f32 1.0, %v1726_v51  ;;  %3808 = vpow2.f32 %v3462_v28  ;;  %v3473_v57 = vmul.f32 -1.442695, %v5548_v36 }
 0x21c   : > { %v5556_v43 = vadd.f32 %v889_v29, %v5197_v30  ;;  %v1573_v14 = vsel %vm5485_vm0, %v1572_v41, %v1568_v48  ;;  %v1698_v56 = vmul.f32 %v5470_v18, %v1697_v44  ;;  %vm1701_vm10 = vweird.f32 %v5470_v18 }
 0x21d   : > { %vm1715_vm11 = vweird.f32 %v5416_v45  ;;  %v5563_v10 = vadd.f32 1.0, %v3805_v7  ;;  %v1743_v51 = vmul.f32 %v5477_v19, %v1742_v47  ;;  %v1847_v5 = vsub.f32 1.0, %v1846_v27  ;;  %vm5616_vm3 = vmor %vm1700_vm8, %vm1701_vm10 }
 0x21e   : > { %3810 = vpow2.f32 %v3470_v22  ;;  %v3471_v28 = vmul.f32 -1.442695, %v5556_v43  ;;  %vm5575_vm13 = vcmp.eq.f32.partialorder %v1704_v53, 8.507059e+37  ;;  %vm1746_vm14 = vweird.f32 %v5477_v19 }
 0x21f   : > { %v1713_v48 = vmul.f32 %v5482_v26, %v1712_v4  ;;  %3812 = vrcp.f32 %v5563_v10  ;;  %v5583_v44 = vadd.f32 %v918_v24, %v5208_v16  ;;  %v1583_v37 = vsel %vm5571_vm12, %v5423_v42, %v1579_v21 }
 0x220   : > { %vm5588_vm15 = vcmp.eq.f32.partialorder %v1749_v15, 8.507059e+37  ;;  %v1728_v53 = vmul.f32 %v5495_v52, %v1727_v62  ;;  %v1734_v47 = vand.u32 2147483647, %v5421_v1  ;;  %3814 = vpow2.f32 %v3473_v57  ;;  %v3807_v27 = vpop.eup %3806 }
 0x221   : > { %v5595_v4 = vmul.f32 %v1573_v14, %v5242_v2  ;;  %v1699_v22 = vadd.f32 %v5470_v18, %v1698_v56  ;;  %vm5598_vm1 = vcmp.eq.f32.partialorder %v1719_v33, 8.507059e+37  ;;  %v1722_v42 = vor.u32 1.1754944e-38, %v1721_v60  ;;  %v3809_v21 = vpop.eup %3808 }
 0x222   : > { %v1736_v15 = vand.u32 2147483648, %v5421_v1  ;;  %v1744_v24 = vadd.f32 %v5477_v19, %v1743_v51  ;;  %vm1730_vm2 = vweird.f32 %v5421_v1  ;;  %v1848_v62 = vmul.f32 %v5509_v63, %v1847_v5 }
 0x223   : > { %3816 = vpow2.f32 %v3471_v28  ;;  %v1588_v2 = vsel %vm5540_vm7, %v5489_v31, %v1583_v37  ;;  %v1714_v56 = vadd.f32 %v5482_v26, %v1713_v48  ;;  %vm1716_vm0 = vweird.f32 %v5482_v26  ;;  %vm5637_vm7 = vmor %vm1745_vm9, %vm1746_vm14 }
 0x224   : > { %v3472_v33 = vmul.f32 -1.442695, %v5583_v44  ;;  %v3811_v60 = vpop.eup %3810  ;;  %v1729_v14 = vadd.f32 %v5495_v52, %v1728_v53  ;;  %vm1731_vm5 = vweird.f32 %v5495_v52  ;;  %vm5622_vm6 = vcmp.eq.f32.partialorder %v1734_v47, 8.507059e+37  ;;  %vm5651_vm10 = vmor %vm1715_vm11, %vm1716_vm0  ;;  %v862_v47 = vpop.f32.mrf.mxu1 }
 0x225   : > { %v5626_v12 = vadd.f32 1.0, %v3807_v27  ;;  %v5628_v51 = vpop.eup %3812  ;;  %v1703_v46 = vsel %vm5616_vm3, %v5470_v18, %v1699_v22  ;;  %v1737_v28 = vor.u32 1.1754944e-38, %v1736_v15  ;;  %vm1850_vm8 = vweird.f32 %v5439_v23  ;;  %vm5666_vm12 = vmor %vm1730_vm2, %vm1731_vm5 }
 0x226   : > { %v5642_v41 = vadd.f32 1.0, %v3809_v21  ;;  %v3815_v48 = vpop.eup %3814  ;;  %v1748_v37 = vsel %vm5637_vm7, %v5477_v19, %v1744_v24  ;;  %v1849_v18 = vadd.f32 %v5509_v63, %v1848_v62  ;;  %vm1851_vm9 = vweird.f32 %v5509_v63 }
 0x227   : > { %v5657_v53 = vadd.f32 1.0, %v3811_v60  ;;  %v1718_v27 = vsel %vm5651_vm10, %v5482_v26, %v1714_v56  ;;  %v1856_v19 = vand.u32 2147483648, %v5439_v23  ;;  %v1891_v22 = vmul.f32 %v5628_v51, %v5563_v10  ;;  %vm5686_vm11 = vmor %vm1850_vm8, %vm1851_vm9 }
 0x228   : > { %3818 = vpow2.f32 %v3472_v33  ;;  %v1708_v21 = vsel %vm5575_vm13, %v5512_v55, %v1703_v46  ;;  %v1733_v26 = vsel %vm5666_vm12, %v5495_v52, %v1729_v14  ;;  %v1854_v1 = vand.u32 2147483647, %v5439_v23 }
 0x229   : > { %v3817_v15 = vpop.eup %3816  ;;  %3820 = vrcp.f32 %v5626_v12  ;;  %v1753_v24 = vsel %vm5588_vm15, %v5514_v58, %v1748_v37  ;;  %v5691_v55 = vadd.f32 1.0, %v3815_v48  ;;  %v5694_v52 = vadd.f32 %v862_v47, %v5170_v0  ;;  %v949_v47 = vpop.f32.mrf.mxu0 }
 0x22a   : > { %3822 = vrcp.f32 %v5642_v41  ;;  %v2551_v6 = vmul.f32 %v1588_v2, %v5263_v39  ;;  %v1723_v56 = vsel %vm5598_vm1, %v1722_v42, %v1718_v27  ;;  %v1853_v23 = vsel %vm5686_vm11, %v5509_v63, %v1849_v18  ;;  %v891_v27 = vpop.f32.mrf.mxu2 }
 0x22b   : > { %3824 = vrcp.f32 %v5657_v53  ;;  %v1738_v58 = vsel %vm5622_vm6, %v1737_v28, %v1733_v26  ;;  %v1857_v29 = vor.u32 1.1754944e-38, %v1856_v19  ;;  %v1892_v33 = vsub.f32 1.0, %v1891_v22 }
 0x22c   : > { %v5705_v60 = vadd.f32 1.0, %v3817_v15  ;;  %v2559_v57 = vmul.f32 %v1708_v21, %v5274_v8  ;;  %v2562_v39 = vmul.f32 %v1753_v24, %v5281_v61  ;;  %vm1855_vm13 = vcmp.eq.f32.partialorder %v1854_v1, 8.507059e+37  ;;  %v920_v15 = vpop.f32.mrf.mxu3 }
 0x22d   : > { %3826 = vrcp.f32 %v5691_v55  ;;  %v2541_v63 = vmul.f32 %v5474_v9, %v5219_v40  ;;  %v2560_v42 = vmul.f32 %v1723_v56, %v5288_v20  ;;  %v1858_v2 = vsel %vm1855_vm13, %v1857_v29, %v1853_v23 }
 0x22e   : > { %v3819_v7 = vpop.eup %3818  ;;  %v3480_v14 = vmul.f32 -1.442695, %v5694_v52  ;;  %v2669_v46 = vadd.f32 %v5466_v11, %v5365_v49  ;;  %v2708_v8 = vadd.f32 %v5498_v25, %v5392_v54  ;;  %v2561_v61 = vmul.f32 %v1738_v58, %v5294_v34 }
 0x22f   : > { %v5714_v31 = vpop.eup %3820  ;;  %v1899_v5 = vand.u32 2147483647, %v5563_v10  ;;  %v2682_v40 = vadd.f32 %v5595_v4, %v5426_v17  ;;  %v2695_v20 = vadd.f32 %v2551_v6, %v2541_v63  ;;  %v1893_v9 = vmul.f32 %v5628_v51, %v1892_v33 }
 0x230   : > { %v5722_v28 = vpop.eup %3822  ;;  %3828 = vrcp.f32 %v5705_v60  ;;  %v2670_v49 = vadd.f32 %v2669_v46, %v2559_v57  ;;  %v5730_v11 = vadd.f32 %v2708_v8, %v2562_v39  ;;  %v2569_v54 = vmul.f32 %v1858_v2, %v5319_v50 }
 0x231   : > { %v5728_v48 = vpop.eup %3824  ;;  %v1901_v34 = vand.u32 2147483648, %v5563_v10  ;;  %v5734_v25 = vadd.f32 %v2682_v40, %v2560_v42  ;;  %vm1895_vm14 = vweird.f32 %v5563_v10  ;;  %v5737_v37 = vadd.f32 1.0, %v3819_v7 }
 0x232   : > { %3830 = vpow2.f32 %v3480_v14  ;;  %v5741_v4 = vadd.f32 %v2695_v20, %v2561_v61  ;;  %vm5743_vm15 = vcmp.eq.f32.partialorder %v1899_v5, 8.507059e+37  ;;  %v1861_v50 = vmul.f32 %v5714_v31, %v5626_v12  ;;  %v894_v58 = vpop.f32.mrf.mxu2 }
 0x233   : > { %v5739_v17 = vpop.eup %3826  ;;  %v1871_v18 = vand.u32 2147483648, %v5626_v12  ;;  %v1894_v45 = vadd.f32 %v5628_v51, %v1893_v9  ;;  %vm1896_vm1 = vweird.f32 %v5628_v51  ;;  %v1876_v19 = vmul.f32 %v5722_v28, %v5642_v41 }
 0x234   : > { %v1996_v22 = vmul.f32 %v5728_v48, %v5657_v53  ;;  %v5756_v21 = vadd.f32 %v2670_v49, %v2569_v54  ;;  %v1902_v26 = vor.u32 1.1754944e-38, %v1901_v34  ;;  %v1869_v1 = vand.u32 2147483647, %v5626_v12  ;;  %vm5773_vm2 = vmor %vm1895_vm14, %vm1896_vm1 }
 0x235   : > { %v1886_v24 = vand.u32 2147483648, %v5642_v41  ;;  %v2041_v6 = vmul.f32 %v5739_v17, %v5691_v55  ;;  %3832 = vrcp.f32 %v5737_v37  ;;  %v5766_v56 = vadd.f32 %v949_v47, %v5178_v3 }
 0x236   : > { %v5760_v62 = vpop.eup %3828  ;;  %v5769_v23 = vadd.f32 %v891_v27, %v5197_v30  ;;  %v1862_v29 = vsub.f32 1.0, %v1861_v50  ;;  %v5777_v33 = vor.u32 1.1754944e-38, %v1871_v18  ;;  %v2006_v57 = vand.u32 2147483648, %v5657_v53 }
 0x237   : > { %v5781_v39 = vadd.f32 %v920_v15, %v5208_v16  ;;  %v1898_v63 = vsel %vm5773_vm2, %v5628_v51, %v1894_v45  ;;  %v1877_v42 = vsub.f32 1.0, %v1876_v19  ;;  %v1884_v10 = vand.u32 2147483647, %v5642_v41  ;;  %v865_v45 = vpop.f32.mrf.mxu1 }
 0x238   : > { %v3831_v7 = vpop.eup %3830  ;;  %v1997_v2 = vsub.f32 1.0, %v1996_v22  ;;  %vm1865_vm0 = vweird.f32 %v5626_v12  ;;  %v5788_v14 = vor.u32 1.1754944e-38, %v1886_v24  ;;  %v2004_v46 = vand.u32 2147483647, %v5657_v53 }
 0x239   : > { %v2051_v8 = vand.u32 2147483648, %v5691_v55  ;;  %v2011_v61 = vmul.f32 %v5760_v62, %v5705_v60  ;;  %vm1866_vm3 = vweird.f32 %v5714_v31  ;;  %vm1880_vm5 = vweird.f32 %v5642_v41  ;;  %v2812_v41 = vld [vmem:[%s7458_s5 + $0x78] sm:$0xff] }
 0x23a   : > { %v2042_v51 = vsub.f32 1.0, %v2041_v6  ;;  %v5796_v5 = vadd.f32 1.0, %v3831_v7  ;;  %v3483_v40 = vmul.f32 -1.442695, %v5766_v56  ;;  %v1903_v20 = vsel %vm5743_vm15, %v1902_v26, %v1898_v63  ;;  %v952_v6 = vpop.f32.mrf.mxu0  ;;  %vm5863_vm1 = vmor %vm1865_vm0, %vm1866_vm3  ;;  %2980 = vmatpush.msra.mxu3 %v2812_v41 }
 0x23b   : > { %v1863_v9 = vmul.f32 %v5714_v31, %v1862_v29  ;;  %vm2000_vm6 = vweird.f32 %v5657_v53  ;;  %v5803_v49 = vor.u32 1.1754944e-38, %v2006_v57  ;;  %v2049_v54 = vand.u32 2147483647, %v5691_v55  ;;  %v5806_v34 = vpop.eup %3832 }
 0x23c   : > { %v1878_v50 = vmul.f32 %v5722_v28, %v1877_v42  ;;  %vm1881_vm7 = vweird.f32 %v5722_v28  ;;  %v1998_v18 = vmul.f32 %v5728_v48, %v1997_v2  ;;  %vm2045_vm8 = vweird.f32 %v5691_v55 }
 0x23d   : > { %3834 = vrcp.f32 %v5796_v5  ;;  %vm2001_vm10 = vweird.f32 %v5728_v48  ;;  %v5814_v35 = vor.u32 1.1754944e-38, %v2051_v8  ;;  %v2012_v47 = vsub.f32 1.0, %v2011_v61  ;;  %vm5876_vm2 = vmor %vm1880_vm5, %vm1881_vm7 }
 0x23e   : > { %v2019_v27 = vand.u32 2147483647, %v5705_v60  ;;  %v5818_v19 = vmul.f32 %v1903_v20, %v5463_v32  ;;  %vm5820_vm9 = vcmp.eq.f32.partialorder %v1869_v1, 8.507059e+37  ;;  %vm5824_vm12 = vcmp.eq.f32.partialorder %v1884_v10, 8.507059e+37  ;;  %vm5893_vm5 = vmor %vm2000_vm6, %vm2001_vm10 }
 0x23f   : > { %v2043_v26 = vmul.f32 %v5739_v17, %v2042_v51  ;;  %v2026_v24 = vmul.f32 %v5806_v34, %v5737_v37  ;;  %3836 = vpow2.f32 %v3483_v40  ;;  %v1864_v29 = vadd.f32 %v5714_v31, %v1863_v9 }
 0x240   : > { %vm5832_vm11 = vcmp.eq.f32.partialorder %v2004_v46, 8.507059e+37  ;;  %vm2015_vm13 = vweird.f32 %v5705_v60  ;;  %v2021_v1 = vand.u32 2147483648, %v5705_v60  ;;  %v3481_v57 = vmul.f32 -1.442695, %v5769_v23 }
 0x241   : > { %v3482_v7 = vmul.f32 -1.442695, %v5781_v39  ;;  %v1879_v63 = vadd.f32 %v5722_v28, %v1878_v50  ;;  %v1999_v42 = vadd.f32 %v5728_v48, %v1998_v18  ;;  %vm2046_vm14 = vweird.f32 %v5739_v17 }
 0x242   : > { %vm5843_vm15 = vcmp.eq.f32.partialorder %v2049_v54, 8.507059e+37  ;;  %v5848_v2 = vadd.f32 %v865_v45, %v5170_v0  ;;  %v2013_v46 = vmul.f32 %v5760_v62, %v2012_v47  ;;  %3838 = vpow2.f32 %v3481_v57  ;;  %v923_v45 = vpop.f32.mrf.mxu3  ;;  %vm5907_vm7 = vmor %vm2045_vm8, %vm2046_vm14 }
 0x243   : > { %v5852_v8 = vadd.f32 %v952_v6, %v5178_v3  ;;  %v5855_v61 = vadd.f32 %v894_v58, %v5197_v30  ;;  %v5857_v51 = vpop.eup %3834  ;;  %v2044_v20 = vadd.f32 %v5739_v17, %v2043_v26  ;;  %v2027_v9 = vsub.f32 1.0, %v2026_v24 }
 0x244   : > { %3840 = vpow2.f32 %v3482_v7  ;;  %v3490_v54 = vmul.f32 -1.442695, %v5848_v2  ;;  %v1868_v50 = vsel %vm5863_vm1, %v5714_v31, %v1864_v29  ;;  %vm2016_vm0 = vweird.f32 %v5760_v62 }
 0x245   : > { %vm5881_vm3 = vcmp.eq.f32.partialorder %v2019_v27, 8.507059e+37  ;;  %v3493_v47 = vmul.f32 -1.442695, %v5852_v8  ;;  %v3837_v26 = vpop.eup %3836  ;;  %v1883_v31 = vsel %vm5876_vm2, %v5722_v28, %v1879_v63  ;;  %v2146_v27 = vmul.f32 %v5857_v51, %v5796_v5  ;;  %vm5935_vm6 = vmor %vm2015_vm13, %vm2016_vm0 }
 0x246   : > { %3842 = vpow2.f32 %v3490_v54  ;;  %v3491_v24 = vmul.f32 -1.442695, %v5855_v61  ;;  %v2003_v6 = vsel %vm5893_vm5, %v5728_v48, %v1999_v42  ;;  %v2014_v28 = vadd.f32 %v5760_v62, %v2013_v46 }
 0x247   : > { %v5912_v58 = vadd.f32 1.0, %v3837_v26  ;;  %3844 = vpow2.f32 %v3493_v47  ;;  %v2048_v29 = vsel %vm5907_vm7, %v5739_v17, %v2044_v20  ;;  %v2028_v57 = vmul.f32 %v5806_v34, %v2027_v9 }
 0x248   : > { %3846 = vpow2.f32 %v3491_v24  ;;  %v5919_v48 = vadd.f32 %v923_v45, %v5208_v16  ;;  %v3839_v55 = vpop.eup %3838  ;;  %v1873_v7 = vsel %vm5820_vm9, %v5777_v33, %v1868_v50  ;;  %v1888_v63 = vsel %vm5824_vm12, %v5788_v14, %v1883_v31  ;;  %v867_v50 = vpop.f32.mrf.mxu1 }
 0x249   : > { %v2022_v42 = vor.u32 1.1754944e-38, %v2021_v1  ;;  %3848 = vrcp.f32 %v5912_v58  ;;  %v2008_v17 = vsel %vm5832_vm11, %v5803_v49, %v2003_v6  ;;  %v2034_v33 = vand.u32 2147483647, %v5737_v37 }
 0x24a   : > { %v3841_v46 = vpop.eup %3840  ;;  %v2147_v22 = vsub.f32 1.0, %v2146_v27  ;;  %v5940_v14 = vadd.f32 1.0, %v3839_v55  ;;  %v2053_v15 = vsel %vm5843_vm15, %v5814_v35, %v2048_v29  ;;  %v2018_v49 = vsel %vm5935_vm6, %v5760_v62, %v2014_v28 }
 0x24b   : > { %v2036_v32 = vand.u32 2147483648, %v5737_v37  ;;  %v5949_v60 = vadd.f32 1.0, %v3841_v46  ;;  %v2029_v20 = vadd.f32 %v5806_v34, %v2028_v57  ;;  %vm2031_vm8 = vweird.f32 %v5806_v34 }
 0x24c   : > { %v3843_v1 = vpop.eup %3842  ;;  %3850 = vrcp.f32 %v5940_v14  ;;  %v3492_v9 = vmul.f32 -1.442695, %v5919_v48  ;;  %v2710_v35 = vadd.f32 %v5730_v11, %v5818_v19  ;;  %v2570_v10 = vmul.f32 %v1873_v7, %v5493_v59 }
 0x24d   : > { %v3845_v54 = vpop.eup %3844  ;;  %v2571_v62 = vmul.f32 %v1888_v63, %v5531_v38  ;;  %vm2030_vm10 = vweird.f32 %v5737_v37  ;;  %v2579_v47 = vmul.f32 %v2008_v17, %v5538_v13  ;;  %v2023_v45 = vsel %vm5881_vm3, %v2022_v42, %v2018_v49  ;;  %v2810_v17 = vld [vmem:[%s7458_s5 + $0x68] sm:$0xff] }
 0x24e   : > { %v3847_v12 = vpop.eup %3846  ;;  %v2148_v26 = vmul.f32 %v5857_v51, %v2147_v22  ;;  %3852 = vrcp.f32 %v5949_v60  ;;  %v2582_v11 = vmul.f32 %v2053_v15, %v5548_v36  ;;  %vm5970_vm9 = vmor %vm2030_vm10, %vm2031_vm8  ;;  %vm5974_vm12 = vcmp.eq.f32.partialorder %v2034_v33, 8.507059e+37 }
 0x24f   : > { %v5965_v31 = vpop.eup %3848  ;;  %v2037_v13 = vor.u32 1.1754944e-38, %v2036_v32  ;;  %v5978_v37 = vadd.f32 1.0, %v3843_v1  ;;  %v2033_v19 = vsel %vm5970_vm9, %v5806_v34, %v2029_v20  ;;  %3854 = vpow2.f32 %v3492_v9  ;;  %v896_v32 = vpop.f32.mrf.mxu2 }
 0x250   : > { %v2191_v36 = vmul.f32 %v5965_v31, %v5912_v58  ;;  %v5986_v18 = vadd.f32 %v867_v50, %v5170_v0  ;;  %v2580_v27 = vmul.f32 %v2023_v45, %v5556_v43  ;;  %vm2151_vm11 = vweird.f32 %v5857_v51  ;;  %v2811_v43 = vld [vmem:[%s7458_s5 + $0x70] sm:$0xff]  ;;  %v6152_v59 = vpop.f32.mrf.mxu1 }
 0x251   : > { %v2154_v24 = vand.u32 2147483647, %v5796_v5  ;;  %3856 = vrcp.f32 %v5978_v37  ;;  %v2149_v6 = vadd.f32 %v5857_v51, %v2148_v26  ;;  %v5998_v0 = vadd.f32 1.0, %v3845_v54  ;;  %2981 = vmatpush.msra.mxu3 %v2811_v43 }
 0x252   : > { %v5995_v34 = vpop.eup %3850  ;;  %v2192_v53 = vsub.f32 1.0, %v2191_v36  ;;  %v6000_v28 = vadd.f32 1.0, %v3847_v12  ;;  %v2684_v29 = vadd.f32 %v5734_v25, %v2570_v10  ;;  %v2038_v57 = vsel %vm5974_vm12, %v2037_v13, %v2033_v19 }
 0x253   : > { %v2156_v55 = vand.u32 2147483648, %v5796_v5  ;;  %v2161_v7 = vmul.f32 %v5995_v34, %v5940_v14  ;;  %v2697_v42 = vadd.f32 %v5741_v4, %v2571_v62  ;;  %v6015_v46 = vadd.f32 %v5756_v21, %v2579_v47  ;;  %v954_v21 = vpop.f32.mrf.mxu0  ;;  %2982 = vmatpush.msra.mxu3 %v2810_v17  ;;  %v2843_v17 = vld [vmem:[%s7458_s5 + $0x170] sm:$0xff] }
 0x254   : > { %v6011_v63 = vpop.eup %3852  ;;  %vm2150_vm13 = vweird.f32 %v5796_v5  ;;  %v3500_v25 = vmul.f32 -1.442695, %v5986_v18  ;;  %v6022_v40 = vadd.f32 %v2710_v35, %v2582_v11  ;;  %v6024_v33 = vadd.f32 %v2684_v29, %v2580_v27 }
 0x255   : > { %vm6028_vm14 = vmor %vm2150_vm13, %vm2151_vm11  ;;  %v2193_v4 = vmul.f32 %v5965_v31, %v2192_v53  ;;  %3858 = vrcp.f32 %v5998_v0  ;;  %v3855_v5 = vpop.eup %3854  ;;  %v2581_v15 = vmul.f32 %v2038_v57, %v5583_v44  ;;  %vm2155_vm15 = vcmp.eq.f32.partialorder %v2154_v24, 8.507059e+37  ;;  %v2808_v24 = vld [vmem:[%s7458_s5 + $0x58] sm:$0xff] }
 0x256   : > { %v2153_v49 = vsel %vm6028_vm14, %v5857_v51, %v2149_v6  ;;  %3860 = vrcp.f32 %v6000_v28  ;;  %v2157_v20 = vor.u32 1.1754944e-38, %v2156_v55  ;;  %v2199_v9 = vand.u32 2147483647, %v5912_v58  ;;  %v2844_v6 = vld [vmem:[%s7458_s5 + $0x178] sm:$0xff] }
 0x257   : > { %v6039_v1 = vpop.eup %3856  ;;  %v2162_v54 = vsub.f32 1.0, %v2161_v7  ;;  %v2176_v35 = vmul.f32 %v6011_v63, %v5949_v60  ;;  %vm2196_vm1 = vweird.f32 %v5965_v31  ;;  %v2201_v44 = vand.u32 2147483648, %v5912_v58  ;;  %v2860_v53 = vld [vmem:[%s7458_s5 + $0x1f8] sm:$0xff]  ;;  %3020 = vmatpush.msrb.mxu0 %v2844_v6 }
 0x258   : > { %3862 = vpow2.f32 %v3500_v25  ;;  %v6047_v51 = vadd.f32 %v954_v21, %v5178_v3  ;;  %v2158_v10 = vsel %vm2155_vm15, %v2157_v20, %v2153_v49  ;;  %v2194_v62 = vadd.f32 %v5965_v31, %v2193_v4  ;;  %v2809_v3 = vld [vmem:[%s7458_s5 + $0x60] sm:$0xff]  ;;  %3040 = vmatpush.msrb.mxu1 %v2860_v53  ;;  %v2807_v25 = vld [vmem:[%s7458_s5 + $0x50] sm:$0xff] }
 0x259   : > { %v2296_v50 = vmul.f32 %v6039_v1, %v5978_v37  ;;  %v6053_v12 = vadd.f32 %v896_v32, %v5197_v30  ;;  %v6055_v47 = vadd.f32 %v2697_v42, %v2581_v15  ;;  %vm2195_vm2 = vweird.f32 %v5912_v58  ;;  %2983 = vmatpush.msra.mxu3 %v2809_v3  ;;  %3021 = vmatpush.msrb.mxu0 %v2843_v17 }
 0x25a   : > { %v2169_v45 = vand.u32 2147483647, %v5940_v14  ;;  %v2171_v26 = vand.u32 2147483648, %v5940_v14  ;;  %vm6065_vm0 = vmor %vm2195_vm2, %vm2196_vm1  ;;  %vm6069_vm3 = vcmp.eq.f32.partialorder %v2199_v9, 8.507059e+37  ;;  %v2163_v58 = vmul.f32 %v5995_v34, %v2162_v54  ;;  %v2806_v9 = vld [vmem:[%s7458_s5 + $0x48] sm:$0xff] }
 0x25b   : > { %v6063_v11 = vpop.eup %3858  ;;  %v2177_v38 = vsub.f32 1.0, %v2176_v35  ;;  %v6074_v13 = vadd.f32 1.0, %v3855_v5  ;;  %v2589_v36 = vmul.f32 %v2158_v10, %v5694_v52  ;;  %v2202_v41 = vor.u32 1.1754944e-38, %v2201_v44  ;;  %2984 = vmatpush.msra.mxu3 %v2808_v24  ;;  %v2859_v5 = vld [vmem:[%s7458_s5 + $0x1f0] sm:$0xff]  ;;  %v2842_v54 = vld [vmem:[%s7458_s5 + $0x168] sm:$0xff] }
 0x25c   : > { %v6076_v19 = vpop.eup %3860  ;;  %vm2165_vm5 = vweird.f32 %v5940_v14  ;;  %v2186_v27 = vand.u32 2147483648, %v5949_v60  ;;  %v2198_v52 = vsel %vm6065_vm0, %v5965_v31, %v2194_v62  ;;  %vm2180_vm7 = vweird.f32 %v5949_v60  ;;  %3041 = vmatpush.msrb.mxu1 %v2859_v5  ;;  %3022 = vmatpush.msrb.mxu0 %v2842_v54 }
 0x25d   : > { %v2184_v43 = vand.u32 2147483647, %v5949_v60  ;;  %v2297_v29 = vsub.f32 1.0, %v2296_v50  ;;  %v2341_v57 = vmul.f32 %v6063_v11, %v5998_v0  ;;  %vm2166_vm6 = vweird.f32 %v5995_v34  ;;  %2985 = vmatpush.msra.mxu3 %v2807_v25 }
 0x25e   : > { %v3863_v55 = vpop.eup %3862  ;;  %vm6098_vm8 = vcmp.eq.f32.partialorder %v2169_v45, 8.507059e+37  ;;  %v2172_v42 = vor.u32 1.1754944e-38, %v2171_v26  ;;  %v2304_v31 = vand.u32 2147483647, %v5978_v37  ;;  %v2164_v22 = vadd.f32 %v5995_v34, %v2163_v58  ;;  %vm6144_vm9 = vmor %vm2165_vm5, %vm2166_vm6 }
 0x25f   : > { %v2178_v4 = vmul.f32 %v6011_v63, %v2177_v38  ;;  %v2311_v21 = vmul.f32 %v6076_v19, %v6000_v28  ;;  %3864 = vrcp.f32 %v6074_v13  ;;  %v6118_v15 = vadd.f32 %v6015_v46, %v2589_v36  ;;  %v2858_v46 = vld [vmem:[%s7458_s5 + $0x1e8] sm:$0xff]  ;;  %2986 = vmatpush.msra.mxu3 %v2806_v9 }
 0x260   : > { %v2203_v49 = vsel %vm6069_vm3, %v2202_v41, %v2198_v52  ;;  %v2187_v32 = vor.u32 1.1754944e-38, %v2186_v27  ;;  %v2306_v20 = vand.u32 2147483648, %v5978_v37  ;;  %vm6132_vm10 = vcmp.eq.f32.partialorder %v2184_v43, 8.507059e+37  ;;  %3042 = vmatpush.msrb.mxu1 %v2858_v46  ;;  %v925_v52 = vpop.f32.mrf.mxu3 }
 0x261   : > { %v2298_v44 = vmul.f32 %v6039_v1, %v2297_v29  ;;  %v2342_v10 = vsub.f32 1.0, %v2341_v57  ;;  %v6137_v62 = vadd.f32 1.0, %v3863_v55  ;;  %v3503_v50 = vmul.f32 -1.442695, %v6047_v51 }
 0x262   : > { %vm2181_vm12 = vweird.f32 %v6011_v63  ;;  %vm2300_vm11 = vweird.f32 %v5978_v37  ;;  %v2349_v26 = vand.u32 2147483647, %v5998_v0  ;;  %v2351_v3 = vand.u32 2147483648, %v5998_v0 }
 0x263   : > { %v2168_v30 = vsel %vm6144_vm9, %v5995_v34, %v2164_v22  ;;  %v2179_v14 = vadd.f32 %v6011_v63, %v2178_v4  ;;  %vm6158_vm13 = vcmp.eq.f32.partialorder %v2304_v31, 8.507059e+37  ;;  %v2312_v38 = vsub.f32 1.0, %v2311_v21  ;;  %vm6177_vm15 = vmor %vm2180_vm7, %vm2181_vm12 }
 0x264   : > { %3866 = vrcp.f32 %v6137_v62  ;;  %v2592_v36 = vmul.f32 %v2203_v49, %v5766_v56  ;;  %vm2301_vm14 = vweird.f32 %v6039_v1  ;;  %v2307_v41 = vor.u32 1.1754944e-38, %v2306_v20  ;;  %v995_v20 = vpop.f32.mrf.mxu2 }
 0x265   : > { %v2319_v27 = vand.u32 2147483647, %v6000_v28  ;;  %v6166_v24 = vpop.eup %3864  ;;  %v2299_v34 = vadd.f32 %v6039_v1, %v2298_v44  ;;  %v2343_v6 = vmul.f32 %v6063_v11, %v2342_v10  ;;  %3868 = vpow2.f32 %v3503_v50  ;;  %vm6199_vm3 = vmor %vm2300_vm11, %vm2301_vm14 }
 0x266   : > { %v3501_v53 = vmul.f32 -1.442695, %v6053_v12  ;;  %v2173_v43 = vsel %vm6098_vm8, %v2172_v42, %v2168_v30  ;;  %vm2345_vm1 = vweird.f32 %v5998_v0  ;;  %v2352_v29 = vor.u32 1.1754944e-38, %v2351_v3  ;;  %v590_v42 = vld [vmem:[%s7457_s4 + $0x8] sm:$0x3]  ;;  %v2805_v0 = vld [vmem:[%s7458_s5 + $0x40] sm:$0xff] }
 0x267   : > { %vm2315_vm2 = vweird.f32 %v6000_v28  ;;  %v2183_v57 = vsel %vm6177_vm15, %v6011_v63, %v2179_v14  ;;  %vm6186_vm0 = vcmp.eq.f32.partialorder %v2349_v26, 8.507059e+37  ;;  %v2313_v7 = vmul.f32 %v6076_v19, %v2312_v38  ;;  %v968_v26 = vpop.f32.mrf.mxu1  ;;  %v2841_v3 = vld [vmem:[%s7458_s5 + $0x160] sm:$0xff]  ;;  %2987 = vmatpush.msra.mxu3 %v2805_v0 }
 0x268   : > { %v2321_v60 = vand.u32 2147483648, %v6000_v28  ;;  %3870 = vpow2.f32 %v3501_v53  ;;  %vm2346_vm5 = vweird.f32 %v6063_v11  ;;  %v2326_v63 = vmul.f32 %v6166_v24, %v6074_v13  ;;  %v2857_v30 = vld [vmem:[%s7458_s5 + $0x1e0] sm:$0xff]  ;;  %3023 = vmatpush.msrb.mxu0 %v2841_v3 }
 0x269   : > { %v2334_v25 = vand.u32 2147483647, %v6074_v13  ;;  %v6208_v17 = vadd.f32 %v925_v52, %v5208_v16  ;;  %v6213_v4 = vadd.f32 %v6022_v40, %v2592_v36  ;;  %v6216_v37 = vmul.f32 %v2173_v43, %v5769_v23  ;;  %vm6239_vm8 = vmor %vm2345_vm1, %vm2346_vm5  ;;  %3043 = vmatpush.msrb.mxu1 %v2857_v30 }
 0x26a   : > { %v6210_v22 = vpop.eup %3866  ;;  %v2303_v21 = vsel %vm6199_vm3, %v6039_v1, %v2299_v34  ;;  %v2344_v5 = vadd.f32 %v6063_v11, %v2343_v6  ;;  %vm6222_vm7 = vcmp.eq.f32.partialorder %v2319_v27, 8.507059e+37  ;;  %v6228_v16 = vsel %vm6132_vm10, %v2187_v32, %v2183_v57  ;;  %v2840_v34 = vld [vmem:[%s7458_s5 + $0x158] sm:$0xff] }
 0x26b   : > { %vm2316_vm6 = vweird.f32 %v6076_v19  ;;  %v2446_v23 = vmul.f32 %v6210_v22, %v6137_v62  ;;  %v6233_v40 = vperm.slane %v590_v42, 0  ;;  %v3869_v9 = vpop.eup %3868  ;;  %v2314_v32 = vadd.f32 %v6076_v19, %v2313_v7  ;;  %v2856_v6 = vld [vmem:[%s7458_s5 + $0x1d8] sm:$0xff]  ;;  %3024 = vmatpush.msrb.mxu0 %v2840_v34 }
 0x26c   : > { %v2322_v54 = vor.u32 1.1754944e-38, %v2321_v60  ;;  %v2454_v46 = vand.u32 2147483647, %v6137_v62  ;;  %v3502_v35 = vmul.f32 -1.442695, %v6208_v17  ;;  %v2308_v44 = vsel %vm6158_vm13, %v2307_v41, %v2303_v21  ;;  %vm6266_vm10 = vmor %vm2315_vm2, %vm2316_vm6  ;;  %3044 = vmatpush.msrb.mxu1 %v2856_v6  ;;  %v2799_v6 = vld [vmem:[%s7458_s5 + $0x10] sm:$0xff] }
 0x26d   : > { %v2327_v10 = vsub.f32 1.0, %v2326_v63  ;;  %v2447_v50 = vsub.f32 1.0, %v2446_v23  ;;  %v6248_v45 = vadd.f32 1.0, %v3869_v9  ;;  %v2348_v58 = vsel %vm6239_vm8, %v6063_v11, %v2344_v5  ;;  %v2804_v11 = vld [vmem:[%s7458_s5 + $0x38] sm:$0xff]  ;;  %v2802_v23 = vld [vmem:[%s7458_s5 + $0x28] sm:$0xff] }
 0x26e   : > { %v3871_v14 = vpop.eup %3870  ;;  %v2456_v36 = vand.u32 2147483648, %v6137_v62  ;;  %3872 = vpow2.f32 %v3502_v35  ;;  %v6271_v41 = vperm.slane %v590_v42, 1  ;;  %vm2451_vm9 = vweird.f32 %v6210_v22  ;;  %2988 = vmatpush.msra.mxu3 %v2804_v11  ;;  %v2855_v42 = vld [vmem:[%s7458_s5 + $0x1d0] sm:$0xff]  ;;  %v2838_v9 = vld [vmem:[%s7458_s5 + $0x148] sm:$0xff]  ;;  %v2801_v35 = vld [vmem:[%s7458_s5 + $0x20] sm:$0xff] }
 0x26f   : > { %v2448_v27 = vmul.f32 %v6210_v22, %v2447_v50  ;;  %3874 = vrcp.f32 %v6248_v45  ;;  %v6278_v28 = vadd.f32 %v6152_v59, %v6233_v40  ;;  %v2599_v53 = vmul.f32 %v2308_v44, %v5848_v2  ;;  %v2803_v2 = vld [vmem:[%s7458_s5 + $0x30] sm:$0xff]  ;;  %3045 = vmatpush.msrb.mxu1 %v2855_v42  ;;  %v6380_v30 = vpop.f32.mrf.mxu1 }
 0x270   : > { %v2318_v59 = vsel %vm6266_vm10, %v6076_v19, %v2314_v32  ;;  %v2336_v52 = vand.u32 2147483648, %v6074_v13  ;;  %v6294_v43 = vadd.f32 1.0, %v3871_v14  ;;  %v2353_v56 = vsel %vm6186_vm0, %v2352_v29, %v2348_v58  ;;  %v2839_v19 = vld [vmem:[%s7458_s5 + $0x150] sm:$0xff]  ;;  %2989 = vmatpush.msra.mxu3 %v2803_v2  ;;  %v2854_v32 = vld [vmem:[%s7458_s5 + $0x1c8] sm:$0xff] }
 0x271   : > { %v2449_v57 = vadd.f32 %v6210_v22, %v2448_v27  ;;  %vm2450_vm12 = vweird.f32 %v6137_v62  ;;  %v6301_v7 = vadd.f32 %v968_v26, %v6233_v40  ;;  %v2328_v60 = vmul.f32 %v6166_v24, %v2327_v10  ;;  %3025 = vmatpush.msrb.mxu0 %v2839_v19  ;;  %3046 = vmatpush.msrb.mxu1 %v2854_v32  ;;  %v2852_v27 = vld [vmem:[%s7458_s5 + $0x1b8] sm:$0xff]  ;;  %v2834_v62 = vld [vmem:[%s7458_s5 + $0x128] sm:$0xff] }
 0x272   : > { %vm6312_vm11 = vmor %vm2450_vm12, %vm2451_vm9  ;;  %vm6316_vm13 = vcmp.eq.f32.partialorder %v2454_v46, 8.507059e+37  ;;  %v2457_v55 = vor.u32 1.1754944e-38, %v2456_v36  ;;  %3876 = vrcp.f32 %v6294_v43  ;;  %v2323_v31 = vsel %vm6222_vm7, %v2322_v54, %v2318_v59  ;;  %2990 = vmatpush.msra.mxu3 %v2802_v23  ;;  %v2851_v59 = vld [vmem:[%s7458_s5 + $0x1b0] sm:$0xff] }
 0x273   : > { %v2453_v63 = vsel %vm6312_vm11, %v6210_v22, %v2449_v57  ;;  %v3434_v21 = vmul.f32 -1.442695, %v6278_v28  ;;  %v6331_v5 = vadd.f32 %v995_v20, %v6271_v41  ;;  %v2686_v1 = vadd.f32 %v6024_v33, %v6216_v37  ;;  %3026 = vmatpush.msrb.mxu0 %v2838_v9  ;;  %v2826_v57 = vld [vmem:[%s7458_s5 + $0xe8] sm:$0xff] }
 0x274   : > { %v3873_v49 = vpop.eup %3872  ;;  %v6343_v22 = vmul.f32 %v6228_v16, %v5781_v39  ;;  %vm2330_vm14 = vweird.f32 %v6074_v13  ;;  %v2458_v20 = vsel %vm6316_vm13, %v2457_v55, %v2453_v63  ;;  %v2674_v46 = vadd.f32 %v6118_v15, %v2599_v53  ;;  %v997_v16 = vpop.f32.mrf.mxu2  ;;  %v2837_v15 = vld [vmem:[%s7458_s5 + $0x140] sm:$0xff]  ;;  %2991 = vmatpush.msra.mxu3 %v2801_v35  ;;  %v2835_v53 = vld [vmem:[%s7458_s5 + $0x130] sm:$0xff]  ;;  %v2798_v13 = vld [vmem:[%s7458_s5 + $0x8] sm:$0xff] }
 0x275   : > { %v6351_v54 = vpop.eup %3874  ;;  %vm2331_vm15 = vweird.f32 %v6166_v24  ;;  %vm6357_vm1 = vcmp.eq.f32.partialorder %v2334_v25, 8.507059e+37  ;;  %v2609_v33 = vmul.f32 %v2458_v20, %v5986_v18  ;;  %v3444_v37 = vmul.f32 -1.442695, %v6301_v7  ;;  %v2853_v25 = vld [vmem:[%s7458_s5 + $0x1c0] sm:$0xff]  ;;  %3027 = vmatpush.msrb.mxu0 %v2837_v15  ;;  %v2850_v55 = vld [vmem:[%s7458_s5 + $0x1a8] sm:$0xff] }
 0x276   : > { %v2602_v44 = vmul.f32 %v2353_v56, %v5852_v8  ;;  %v2600_v18 = vmul.f32 %v2323_v31, %v5855_v61  ;;  %v2491_v10 = vmul.f32 %v6351_v54, %v6248_v45  ;;  %v6376_v50 = vadd.f32 1.0, %v3873_v49  ;;  %3047 = vmatpush.msrb.mxu1 %v2853_v25  ;;  %v2800_v8 = vld [vmem:[%s7458_s5 + $0x18] sm:$0xff]  ;;  %vm6421_vm0 = vmor %vm2330_vm14, %vm2331_vm15  ;;  %v2797_v49 = vld [vmem:[%s7458_s5] sm:$0xff] }
 0x277   : > { %v2329_v26 = vadd.f32 %v6166_v24, %v2328_v60  ;;  %v2337_v0 = vor.u32 1.1754944e-38, %v2336_v52  ;;  %3878 = vpow2.f32 %v3434_v21  ;;  %v3435_v3 = vmul.f32 -1.442695, %v6331_v5  ;;  %v2836_v61 = vld [vmem:[%s7458_s5 + $0x138] sm:$0xff]  ;;  %2992 = vmatpush.msra.mxu3 %v2800_v8  ;;  %v2849_v20 = vld [vmem:[%s7458_s5 + $0x1a0] sm:$0xff] }
 0x278   : > { %v6388_v14 = vpop.eup %3876  ;;  %v6390_v58 = vadd.f32 %v2674_v46, %v2609_v33  ;;  %v2492_v38 = vsub.f32 1.0, %v2491_v10  ;;  %3880 = vrcp.f32 %v6376_v50  ;;  %v6394_v36 = vadd.f32 %v997_v16, %v6271_v41  ;;  %3028 = vmatpush.msrb.mxu0 %v2836_v61  ;;  %3048 = vmatpush.msrb.mxu1 %v2852_v27  ;;  %v2876_v16 = vld [vmem:[%s7458_s5 + $0x278] sm:$0xff]  ;;  %v2827_v61 = vld [vmem:[%s7458_s5 + $0xf0] sm:$0xff]  ;;  %v6511_v27 = vpop.f32.mrf.mxu1 }
 0x279   : > { %vm2496_vm2 = vweird.f32 %v6351_v54  ;;  %v2501_v11 = vand.u32 2147483648, %v6248_v45  ;;  %v2461_v34 = vmul.f32 %v6388_v14, %v6294_v43  ;;  %3882 = vpow2.f32 %v3444_v37  ;;  %2993 = vmatpush.msra.mxu3 %v2799_v6  ;;  %v2828_v37 = vld [vmem:[%s7458_s5 + $0xf8] sm:$0xff]  ;;  %3060 = vmatpush.msrb.mxu2 %v2876_v16 }
 0x27a   : > { %v6413_v52 = vadd.f32 %v6213_v4, %v2602_v44  ;;  %v6415_v56 = vadd.f32 %v2686_v1, %v2600_v18  ;;  %v2493_v2 = vmul.f32 %v6351_v54, %v2492_v38  ;;  %v2499_v19 = vand.u32 2147483647, %v6248_v45  ;;  %3029 = vmatpush.msrb.mxu0 %v2835_v53  ;;  %3049 = vmatpush.msrb.mxu1 %v2851_v59  ;;  %v2833_v1 = vld [vmem:[%s7458_s5 + $0x120] sm:$0xff]  ;;  %v2832_v44 = vld [vmem:[%s7458_s5 + $0x118] sm:$0xff] }
 0x27b   : > { %v2333_v4 = vsel %vm6421_vm0, %v6166_v24, %v2329_v26  ;;  %vm2495_vm3 = vweird.f32 %v6248_v45  ;;  %v2462_v60 = vsub.f32 1.0, %v2461_v34  ;;  %v2471_v29 = vand.u32 2147483648, %v6294_v43  ;;  %2994 = vmatpush.msra.mxu3 %v2798_v13  ;;  %v2848_v18 = vld [vmem:[%s7458_s5 + $0x198] sm:$0xff]  ;;  %v2847_v34 = vld [vmem:[%s7458_s5 + $0x190] sm:$0xff]  ;;  %v2846_v13 = vld [vmem:[%s7458_s5 + $0x188] sm:$0xff] }
 0x27c   : > { %v2676_v24 = vrot.slane %v6390_v58, 4  ;;  %v2494_v45 = vadd.f32 %v6351_v54, %v2493_v2  ;;  %vm6445_vm5 = vmor %vm2495_vm3, %vm2496_vm2  ;;  %3884 = vpow2.f32 %v3435_v3  ;;  %v3445_v31 = vmul.f32 -1.442695, %v6394_v36  ;;  %3030 = vmatpush.msrb.mxu0 %v2834_v62  ;;  %3050 = vmatpush.msrb.mxu1 %v2850_v55  ;;  %v6499_v8 = vpop.f32.mrf.mxu2  ;;  %v2874_v2 = vld [vmem:[%s7458_s5 + $0x268] sm:$0xff] }
 0x27d   : > { %v3879_v63 = vpop.eup %3878  ;;  %v2502_v21 = vor.u32 1.1754944e-38, %v2501_v11  ;;  %v2463_v23 = vmul.f32 %v6388_v14, %v2462_v60  ;;  %vm2466_vm7 = vweird.f32 %v6388_v14  ;;  %v2469_v9 = vand.u32 2147483647, %v6294_v43  ;;  %2995 = vmatpush.msra.mxu3 %v2797_v49  ;;  %v2831_v11 = vld [vmem:[%s7458_s5 + $0x110] sm:$0xff]  ;;  %v2824_v49 = vld [vmem:[%s7458_s5 + $0xd8] sm:$0xff] }
 0x27e   : > { %v6462_v32 = vpop.eup %3880  ;;  %v2338_v46 = vsel %vm6357_vm1, %v2337_v0, %v2333_v4  ;;  %v2498_v33 = vsel %vm6445_vm5, %v6351_v54, %v2494_v45  ;;  %vm2500_vm6 = vcmp.eq.f32.partialorder %v2499_v19, 8.507059e+37  ;;  %vm2465_vm8 = vweird.f32 %v6294_v43  ;;  %3031 = vmatpush.msrb.mxu0 %v2833_v1  ;;  %3051 = vmatpush.msrb.mxu1 %v2849_v20  ;;  %v2872_v1 = vld [vmem:[%s7458_s5 + $0x258] sm:$0xff] }
 0x27f   : > { %v3883_v35 = vpop.eup %3882  ;;  %v2503_v39 = vsel %vm2500_vm6, %v2502_v21, %v2498_v33  ;;  %v2464_v15 = vadd.f32 %v6388_v14, %v2463_v23  ;;  %v2472_v25 = vor.u32 1.1754944e-38, %v2471_v29  ;;  %v2476_v54 = vmul.f32 %v6462_v32, %v6376_v50  ;;  %vm6493_vm10 = vmor %vm2465_vm8, %vm2466_vm7  ;;  %3000 = vmatpush.msrb.mxu3 %v2828_v37  ;;  %v2830_v29 = vld [vmem:[%s7458_s5 + $0x108] sm:$0xff]  ;;  %v2908_v20 = vld [vmem:[%s7458_s5 + $0x378] sm:$0xff] }
 0x280   : > { %v6486_v10 = vadd.f32 %v2676_v24, %v6390_v58  ;;  %v2612_v26 = vmul.f32 %v2503_v39, %v6047_v51  ;;  %v6497_v3 = vadd.f32 1.0, %v3879_v63  ;;  %3886 = vpow2.f32 %v3445_v31  ;;  %v2875_v51 = vld [vmem:[%s7458_s5 + $0x270] sm:$0xff]  ;;  %3032 = vmatpush.msrb.mxu0 %v2832_v44  ;;  %3052 = vmatpush.msrb.mxu1 %v2848_v18  ;;  %v2829_v31 = vld [vmem:[%s7458_s5 + $0x100] sm:$0xff] }
 0x281   : > { %v2468_v43 = vsel %vm6493_vm10, %v6388_v14, %v2464_v15  ;;  %vm2470_vm9 = vcmp.eq.f32.partialorder %v2469_v9, 8.507059e+37  ;;  %v2477_v58 = vsub.f32 1.0, %v2476_v54  ;;  %v2486_v38 = vand.u32 2147483648, %v6376_v50  ;;  %3001 = vmatpush.msrb.mxu3 %v2827_v61  ;;  %3061 = vmatpush.msrb.mxu2 %v2875_v51  ;;  %v2823_v39 = vld [vmem:[%s7458_s5 + $0xd0] sm:$0xff]  ;;  %v2870_v61 = vld [vmem:[%s7458_s5 + $0x248] sm:$0xff] }
 0x282   : > { %v3885_v6 = vpop.eup %3884  ;;  %v2714_v53 = vadd.f32 %v6413_v52, %v2612_v26  ;;  %v2473_v14 = vsel %vm2470_vm9, %v2472_v25, %v2468_v43  ;;  %vm2481_vm12 = vweird.f32 %v6462_v32  ;;  %v6521_v59 = vadd.f32 1.0, %v3883_v35  ;;  %3033 = vmatpush.msrb.mxu0 %v2831_v11  ;;  %3053 = vmatpush.msrb.mxu1 %v2847_v34  ;;  %v2907_v15 = vld [vmem:[%s7458_s5 + $0x370] sm:$0xff]  ;;  %v2906_v51 = vld [vmem:[%s7458_s5 + $0x368] sm:$0xff] }
 0x283   : > { %v2601_v19 = vmul.f32 %v2338_v46, %v5919_v48  ;;  %v2610_v4 = vmul.f32 %v2473_v14, %v6053_v12  ;;  %v2478_v52 = vmul.f32 %v6462_v32, %v2477_v58  ;;  %v2484_v60 = vand.u32 2147483647, %v6376_v50  ;;  %3002 = vmatpush.msrb.mxu3 %v2826_v57  ;;  %3062 = vmatpush.msrb.mxu2 %v2874_v2  ;;  %v2825_v48 = vld [vmem:[%s7458_s5 + $0xe0] sm:$0xff]  ;;  %v2923_v18 = vld [vmem:[%s7458_s5 + $0x3f0] sm:$0xff] }
 0x284   : > { %v2678_v62 = vrot.slane %v6486_v10, 2  ;;  %v2715_v55 = vrot.slane %v2714_v53, 4  ;;  %vm2480_vm11 = vweird.f32 %v6376_v50  ;;  %3888 = vrcp.f32 %v6497_v3  ;;  %v2873_v12 = vld [vmem:[%s7458_s5 + $0x260] sm:$0xff]  ;;  %3034 = vmatpush.msrb.mxu0 %v2830_v29  ;;  %3054 = vmatpush.msrb.mxu1 %v2846_v13  ;;  %v1002_v0 = vpop.f32.mrf.mxu2 }
 0x285   : > { %v2688_v24 = vadd.f32 %v6415_v56, %v2610_v4  ;;  %v2479_v45 = vadd.f32 %v6462_v32, %v2478_v52  ;;  %vm6552_vm13 = vmor %vm2480_vm11, %vm2481_vm12  ;;  %v6556_v42 = vadd.f32 1.0, %v3885_v6  ;;  %v2845_v56 = vld [vmem:[%s7458_s5 + $0x180] sm:$0xff]  ;;  %v2699_v21 = vadd.f32 %v6055_v47, %v6343_v22  ;;  %3003 = vmatpush.msrb.mxu3 %v2825_v48  ;;  %3063 = vmatpush.msrb.mxu2 %v2873_v12  ;;  %v2924_v22 = vld [vmem:[%s7458_s5 + $0x3f8] sm:$0xff] }
 0x286   : > { %v3887_v63 = vpop.eup %3886  ;;  %v2716_v23 = vadd.f32 %v2715_v55, %v2714_v53  ;;  %v2487_v9 = vor.u32 1.1754944e-38, %v2486_v38  ;;  %3890 = vrcp.f32 %v6521_v59  ;;  %vm2485_vm14 = vcmp.eq.f32.partialorder %v2484_v60, 8.507059e+37  ;;  %3035 = vmatpush.msrb.mxu0 %v2829_v31  ;;  %3055 = vmatpush.msrb.mxu1 %v2845_v56  ;;  %v976_v38 = vpop.f32.mrf.mxu1  ;;  %v2821_v14 = vld [vmem:[%s7458_s5 + $0xc0] sm:$0xff] }
 0x287   : > { %v2689_v46 = vrot.slane %v2688_v24, 4  ;;  %v2483_v47 = vsel %vm6552_vm13, %v6462_v32, %v2479_v45  ;;  %v2700_v33 = vadd.f32 %v2699_v21, %v2601_v19  ;;  %v2679_v37 = vadd.f32 %v2678_v62, %v6486_v10  ;;  %3004 = vmatpush.msrb.mxu3 %v2824_v49  ;;  %3064 = vmatpush.msrb.mxu2 %v2872_v1  ;;  %v2871_v32 = vld [vmem:[%s7458_s5 + $0x250] sm:$0xff]  ;;  %v2869_v57 = vld [vmem:[%s7458_s5 + $0x240] sm:$0xff] }
 0x288   : > { %v2717_v16 = vrot.slane %v2716_v23, 2  ;;  %v2488_v35 = vsel %vm2485_vm14, %v2487_v9, %v2483_v47  ;;  %3892 = vrcp.f32 %v6556_v42  ;;  %v6594_v44 = vadd.f32 1.0, %v3887_v63  ;;  %3100 = vmatpush.msra.mxu0 %v2908_v20  ;;  %3120 = vmatpush.msra.mxu1 %v2924_v22  ;;  %v2905_v2 = vld [vmem:[%s7458_s5 + $0x360] sm:$0xff] }
 0x289   : > { %v2690_v25 = vadd.f32 %v2689_v46, %v2688_v24  ;;  %v2611_v54 = vmul.f32 %v2488_v35, %v6208_v17  ;;  %v6603_v26 = vadd.f32 %v6380_v30, %v6233_v40  ;;  %3005 = vmatpush.msrb.mxu3 %v2823_v39  ;;  %3065 = vmatpush.msrb.mxu2 %v2871_v32  ;;  %v2822_v17 = vld [vmem:[%s7458_s5 + $0xc8] sm:$0xff]  ;;  %v2680_v34 = vrot.slane %v2679_v37, 1  ;;  %v2921_v60 = vld [vmem:[%s7458_s5 + $0x3e0] sm:$0xff] }
 0x28a   : > { %v6599_v10 = vpop.eup %3888  ;;  %3101 = vmatpush.msra.mxu0 %v2907_v15  ;;  %3121 = vmatpush.msra.mxu1 %v2923_v18  ;;  %v2922_v30 = vld [vmem:[%s7458_s5 + $0x3e8] sm:$0xff]  ;;  %v2718_v6 = vadd.f32 %v2717_v16, %v2716_v23  ;;  %v1466_v53 = vand.u32 2147483648, %v6497_v3  ;;  %3894 = vrcp.f32 %v6594_v44  ;;  %vm2771_vm15 = vcmask 1044484  }
 0x28b   : > { %v2691_v43 = vrot.slane %v2690_v25, 2  ;;  %v2701_v58 = vadd.f32 %v2700_v33, %v2611_v54  ;;  %3006 = vmatpush.msrb.mxu3 %v2822_v17  ;;  %3066 = vmatpush.msrb.mxu2 %v2870_v61  ;;  %v1456_v52 = vmul.f32 %v6599_v10, %v6497_v3  ;;  %v3454_v29 = vmul.f32 -1.442695, %v6603_v26  ;;  %v2820_v17 = vld [vmem:[%s7458_s5 + $0xb8] sm:$0xff] }
 0x28c   : > { %v6617_v11 = vpop.eup %3890  ;;  %3102 = vmatpush.msra.mxu0 %v2906_v51  ;;  %3122 = vmatpush.msra.mxu1 %v2922_v30  ;;  %v6638_v13 = vadd.f32 %v6499_v8, %v6271_v41  ;;  %v2719_v24 = vrot.slane %v2718_v6, 1  ;;  %vm2773_vm1 = vcmask 1046534   ;;  %vm1461_vm2 = vweird.f32 %v6599_v10  ;;  %v1005_v16 = vpop.f32.mrf.mxu2  ;;  %v2920_v30 = vld [vmem:[%s7458_s5 + $0x3d8] sm:$0xff] }
 0x28d   : > { %v2692_v19 = vadd.f32 %v2691_v43, %v2690_v25  ;;  %v2702_v4 = vrot.slane %v2701_v58, 4  ;;  %3007 = vmatpush.msrb.mxu3 %v2821_v14  ;;  %3067 = vmatpush.msrb.mxu2 %v2869_v57  ;;  %v1606_v12 = vmul.f32 %v6617_v11, %v6521_v59  ;;  %v1464_v45 = vand.u32 2147483647, %v6497_v3  ;;  %v2819_v57 = vld [vmem:[%s7458_s5 + $0xb0] sm:$0xff] }
 0x28e   : > { %v6640_v62 = vpop.eup %3892  ;;  %3103 = vmatpush.msra.mxu0 %v2905_v2  ;;  %3123 = vmatpush.msra.mxu1 %v2921_v60  ;;  %v6646_v50 = vor.u32 1.1754944e-38, %v1466_v53  ;;  %v2681_v8 = vadd.f32 %v2680_v34, %v2679_v37  ;;  %vm2775_vm0 = vcmask 1045508   ;;  %v1457_v63 = vsub.f32 1.0, %v1456_v52  ;;  %v978_v15 = vpop.f32.mrf.mxu1  ;;  %v2867_v2 = vld [vmem:[%s7458_s5 + $0x230] sm:$0xff] }
 0x28f   : > { %v2693_v55 = vrot.slane %v2692_v19, 1  ;;  %v2703_v48 = vadd.f32 %v2702_v4, %v2701_v58  ;;  %vm2777_vm3 = vcmask 1043456   ;;  %vm1460_vm5 = vweird.f32 %v6497_v3  ;;  %3008 = vmatpush.msrb.mxu3 %v2820_v17  ;;  %v2868_v58 = vld [vmem:[%s7458_s5 + $0x238] sm:$0xff]  ;;  %v2897_v3 = vld [vmem:[%s7458_s5 + $0x320] sm:$0xff] }
 0x290   : > { %v1471_v21 = vmul.f32 %v6640_v62, %v6556_v42  ;;  %3896 = vpow2.f32 %v3454_v29  ;;  %v3455_v23 = vmul.f32 -1.442695, %v6638_v13  ;;  %v6654_v9 = vadd.f32 %v6511_v27, %v6233_v40  ;;  %v6656_v49 = vpop.eup %3894  ;;  %3068 = vmatpush.msrb.mxu2 %v2868_v58  ;;  %3124 = vmatpush.msra.mxu1 %v2920_v30  ;;  %v2919_v29 = vld [vmem:[%s7458_s5 + $0x3d0] sm:$0xff]  ;;  %vm6726_vm8 = vmor %vm1460_vm5, %vm1461_vm2  ;;  %v2900_v30 = vld [vmem:[%s7458_s5 + $0x338] sm:$0xff] }
 0x291   : > { %v2694_v31 = vadd.f32 %v2693_v55, %v2692_v19  ;;  %v2704_v56 = vrot.slane %v2703_v48, 2  ;;  %v1607_v20 = vsub.f32 1.0, %v1606_v12  ;;  %v6659_v46 = vadd.f32 %v1002_v0, %v6271_v41  ;;  %v2903_v19 = vld [vmem:[%s7458_s5 + $0x350] sm:$0xff]  ;;  %3009 = vmatpush.msrb.mxu3 %v2819_v57 }
 0x292   : > { %v6662_v47 = vadd.f32 %v976_v38, %v6233_v40  ;;  %v2720_v22 = vadd.f32 %v2719_v24, %v2718_v6  ;;  %v1479_v37 = vand.u32 2147483647, %v6556_v42  ;;  %3898 = vpow2.f32 %v3455_v23  ;;  %v2904_v38 = vld [vmem:[%s7458_s5 + $0x358] sm:$0xff]  ;;  %3069 = vmatpush.msrb.mxu2 %v2867_v2  ;;  %3125 = vmatpush.msra.mxu1 %v2919_v29  ;;  %v2863_v29 = vld [vmem:[%s7458_s5 + $0x210] sm:$0xff] }
 0x293   : > { %v2705_v1 = vadd.f32 %v2704_v56, %v2703_v48  ;;  %v2761_v33 = vrot.slane %v2694_v31, 3  ;;  %v2760_v35 = vrot.slane %v2681_v8, 4  ;;  %v6667_v27 = vmul.f32 %v6656_v49, %v6594_v44  ;;  %3104 = vmatpush.msra.mxu0 %v2904_v38  ;;  %v2818_v8 = vld [vmem:[%s7458_s5 + $0xa8] sm:$0xff]  ;;  %v2864_v38 = vld [vmem:[%s7458_s5 + $0x218] sm:$0xff] }
 0x294   : > { %v3464_v32 = vmul.f32 -1.442695, %v6654_v9  ;;  %v1458_v25 = vmul.f32 %v6599_v10, %v1457_v63  ;;  %v1472_v54 = vsub.f32 1.0, %v1471_v21  ;;  %v3465_v18 = vmul.f32 -1.442695, %v6659_v46  ;;  %v2866_v31 = vld [vmem:[%s7458_s5 + $0x228] sm:$0xff]  ;;  %3010 = vmatpush.msrb.mxu3 %v2818_v8  ;;  %v1007_v2 = vpop.f32.mrf.mxu2 }
 0x295   : > { %v2706_v39 = vrot.slane %v2705_v1, 1  ;;  %v3474_v0 = vmul.f32 -1.442695, %v6662_v47  ;;  %v1608_v51 = vmul.f32 %v6617_v11, %v1607_v20  ;;  %v6678_v43 = vadd.f32 %v1005_v16, %v6271_v41  ;;  %3105 = vmatpush.msra.mxu0 %v2903_v19  ;;  %v2918_v20 = vld [vmem:[%s7458_s5 + $0x3c8] sm:$0xff]  ;;  %3070 = vmatpush.msrb.mxu2 %v2866_v31  ;;  %v2916_v19 = vld [vmem:[%s7458_s5 + $0x3b8] sm:$0xff] }
 0x296   : > { %3900 = vpow2.f32 %v3464_v32  ;;  %v3897_v34 = vpop.eup %3896  ;;  %v2763_v6 = vrot.slane %v2720_v22, 1  ;;  %v2772_v53 = vsel %vm2771_vm15, %v2760_v35, %v2761_v33  ;;  %vm1475_vm7 = vweird.f32 %v6556_v42  ;;  %v2817_v35 = vld [vmem:[%s7458_s5 + $0xa0] sm:$0xff]  ;;  %3126 = vmatpush.msra.mxu1 %v2918_v20 }
 0x297   : > { %v2707_v61 = vadd.f32 %v2706_v39, %v2705_v1  ;;  %3902 = vpow2.f32 %v3465_v18  ;;  %v6692_v14 = vadd.f32 %v978_v15, %v6233_v40  ;;  %v1622_v52 = vsub.f32 1.0, %v6667_v27  ;;  %v2902_v1 = vld [vmem:[%s7458_s5 + $0x348] sm:$0xff]  ;;  %v2865_v39 = vld [vmem:[%s7458_s5 + $0x220] sm:$0xff]  ;;  %3011 = vmatpush.msrb.mxu3 %v2817_v35 }
 0x298   : > { %v6704_v60 = vadd.f32 1.0, %v3897_v34  ;;  %3904 = vpow2.f32 %v3474_v0  ;;  %v3899_v55 = vpop.eup %3898  ;;  %v6710_v48 = vadd.f32 %v6599_v10, %v1458_v25  ;;  %v1473_v12 = vmul.f32 %v6640_v62, %v1472_v54  ;;  %3106 = vmatpush.msra.mxu0 %v2902_v1  ;;  %v2901_v27 = vld [vmem:[%s7458_s5 + $0x340] sm:$0xff]  ;;  %v7648_v15 = vld [vmem:[#allocation6_spill] sm:$0xff]  ;;  %3071 = vmatpush.msrb.mxu2 %v2865_v39 }
 0x299   : > { %v2762_v4 = vrot.slane %v2707_v61, 2  ;;  %v1481_v24 = vand.u32 2147483648, %v6556_v42  ;;  %vm1611_vm6 = vweird.f32 %v6617_v11  ;;  %v6731_v21 = vadd.f32 %v6617_v11, %v1608_v51  ;;  %v2917_v61 = vld [vmem:[%s7458_s5 + $0x3c0] sm:$0xff]  ;;  %v2862_v35 = vld [vmem:[%s7458_s5 + $0x208] sm:$0xff]  ;;  %v2896_v42 = vld [vmem:[%s7458_s5 + $0x318] sm:$0xff] }
 0x29a   : > { %3906 = vrcp.f32 %v6704_v60  ;;  %v3475_v23 = vmul.f32 -1.442695, %v6678_v43  ;;  %vm1610_vm10 = vweird.f32 %v6521_v59  ;;  %v6743_v33 = vadd.f32 1.0, %v3899_v55  ;;  %3107 = vmatpush.msra.mxu0 %v2901_v27  ;;  %3127 = vmatpush.msra.mxu1 %v2917_v61  ;;  %v2899_v55 = vld [vmem:[%s7458_s5 + $0x330] sm:$0xff]  ;;  %v2898_v39 = vld [vmem:[%s7458_s5 + $0x328] sm:$0xff] }
 0x29b   : > { %v2774_v56 = vsel %vm2773_vm1, %v2762_v4, %v2763_v6  ;;  %v3484_v16 = vmul.f32 -1.442695, %v6692_v14  ;;  %vm6759_vm9 = vmor %vm1610_vm10, %vm1611_vm6  ;;  %v1614_v18 = vand.u32 2147483647, %v6521_v59  ;;  %v1616_v0 = vand.u32 2147483648, %v6521_v59  ;;  %v2816_v59 = vld [vmem:[%s7458_s5 + $0x98] sm:$0xff]  ;;  %3072 = vmatpush.msrb.mxu2 %v2864_v38 }
 0x29c   : > { %v2776_v22 = vsel %vm2775_vm0, %v2772_v53, %v2774_v56  ;;  %v3901_v32 = vpop.eup %3900  ;;  %v1623_v17 = vmul.f32 %v6656_v49, %v1622_v52  ;;  %v1463_v58 = vsel %vm6726_vm8, %v6599_v10, %v6710_v48  ;;  %vm1476_vm12 = vweird.f32 %v6640_v62  ;;  %3012 = vmatpush.msrb.mxu3 %v2816_v59  ;;  %3108 = vmatpush.msra.mxu0 %v2900_v30  ;;  %v2914_v54 = vld [vmem:[%s7458_s5 + $0x3a8] sm:$0xff] }
 0x29d   : > { %v2778_v25 = vsel %vm2777_vm3, %v7648_v15, %v2776_v22  ;;  %v3903_v51 = vpop.eup %3902  ;;  %3908 = vrcp.f32 %v6743_v33  ;;  %v6785_v6 = vadd.f32 %v6640_v62, %v1473_v12  ;;  %v1613_v53 = vsel %vm6759_vm9, %v6617_v11, %v6731_v21  ;;  %v2815_v11 = vld [vmem:[%s7458_s5 + $0x90] sm:$0xff]  ;;  %vm6816_vm13 = vmor %vm1475_vm7, %vm1476_vm12  ;;  %3128 = vmatpush.msra.mxu1 %v2916_v19  ;;  %3073 = vmatpush.msrb.mxu2 %v2863_v29 }
 0x29e   : > { %v3905_v34 = vpop.eup %3904  ;;  %v6791_v57 = vadd.f32 1.0, %v3901_v32  ;;  %3910 = vpow2.f32 %v3475_v23  ;;  %2784 = vst [vmem:[#allocation2] sm:$0xff] %v2778_v25  ;;  %vm1626_vm11 = vweird.f32 %v6656_v49  ;;  %v6797_v4 = vadd.f32 1.0, %v3903_v51  ;;  %3013 = vmatpush.msrb.mxu3 %v2815_v11  ;;  %v2915_v23 = vld [vmem:[%s7458_s5 + $0x3b0] sm:$0xff]  ;;  %3109 = vmatpush.msra.mxu0 %v2899_v55  ;;  %v2913_v51 = vld [vmem:[%s7458_s5 + $0x3a0] sm:$0xff] }
 0x29f   : > { %v6799_v52 = vadd.f32 1.0, %v3905_v34  ;;  %3912 = vpow2.f32 %v3484_v16  ;;  %vm6820_vm14 = vcmp.eq.f32.partialorder %v1614_v18, 8.507059e+37  ;;  %v1617_v56 = vor.u32 1.1754944e-38, %v1616_v0  ;;  %v2814_v16 = vld [vmem:[%s7458_s5 + $0x88] sm:$0xff]  ;;  %3129 = vmatpush.msra.mxu1 %v2915_v23  ;;  %3074 = vmatpush.msrb.mxu2 %v2862_v35 }
 0x2a0   : > { %v6810_v12 = vpop.eup %3906  ;;  %v1624_v21 = vadd.f32 %v6656_v49, %v1623_v17  ;;  %3914 = vrcp.f32 %v6791_v57  ;;  %vm1625_vm15 = vweird.f32 %v6594_v44  ;;  %v1631_v1 = vand.u32 2147483648, %v6594_v44  ;;  %3014 = vmatpush.msrb.mxu3 %v2814_v16  ;;  %3110 = vmatpush.msra.mxu0 %v2898_v39  ;;  %v2861_v17 = vld [vmem:[%s7458_s5 + $0x200] sm:$0xff] }
 0x2a1   : > { %v1756_v20 = vmul.f32 %v6810_v12, %v6704_v60  ;;  %v6834_v22 = vadd.f32 %v1007_v2, %v6271_v41  ;;  %v1478_v27 = vsel %vm6816_vm13, %v6640_v62, %v6785_v6  ;;  %v1618_v32 = vsel %vm6820_vm14, %v1617_v56, %v1613_v53  ;;  %vm6853_vm1 = vmor %vm1625_vm15, %vm1626_vm11  ;;  %3130 = vmatpush.msra.mxu1 %v2914_v54  ;;  %v981_v6 = vpop.f32.mrf.mxu1  ;;  %v2895_v53 = vld [vmem:[%s7458_s5 + $0x310] sm:$0xff] }
 0x2a2   : > { %v1629_v25 = vand.u32 2147483647, %v6594_v44  ;;  %3916 = vrcp.f32 %v6797_v4  ;;  %vm1465_vm2 = vcmp.eq.f32.partialorder %v1464_v45, 8.507059e+37  ;;  %v1482_v18 = vor.u32 1.1754944e-38, %v1481_v24  ;;  %v2813_v44 = vld [vmem:[%s7458_s5 + $0x80] sm:$0xff]  ;;  %3075 = vmatpush.msrb.mxu2 %v2861_v17  ;;  %3111 = vmatpush.msra.mxu0 %v2897_v3  ;;  %v2911_v2 = vld [vmem:[%s7458_s5 + $0x390] sm:$0xff] }
 0x2a3   : > { %v6862_v62 = vpop.eup %3908  ;;  %v1757_v0 = vsub.f32 1.0, %v1756_v20  ;;  %3918 = vrcp.f32 %v6799_v52  ;;  %v1468_v24 = vsel %vm1465_vm2, %v6646_v50, %v1463_v58  ;;  %vm1480_vm0 = vcmp.eq.f32.partialorder %v1479_v37, 8.507059e+37  ;;  %3015 = vmatpush.msrb.mxu3 %v2813_v44  ;;  %3131 = vmatpush.msra.mxu1 %v2913_v51  ;;  %v1010_v44 = vpop.f32.mrf.mxu2 }
 0x2a4   : > { %v3911_v45 = vpop.eup %3910  ;;  %v1628_v61 = vsel %vm6853_vm1, %v6656_v49, %v1624_v21  ;;  %v1483_v63 = vsel %vm1480_vm0, %v1482_v18, %v1478_v27  ;;  %v2553_v38 = vmul.f32 %v1618_v32, %v6301_v7  ;;  %v1632_v10 = vor.u32 1.1754944e-38, %v1631_v1  ;;  %v2912_v49 = vld [vmem:[%s7458_s5 + $0x398] sm:$0xff]  ;;  %3112 = vmatpush.msra.mxu0 %v2896_v42  ;;  %v2910_v21 = vld [vmem:[%s7458_s5 + $0x388] sm:$0xff]  ;;  %v2909_v27 = vld [vmem:[%s7458_s5 + $0x380] sm:$0xff] }
 0x2a5   : > { %v3913_v59 = vpop.eup %3912  ;;  %v3485_v50 = vmul.f32 -1.442695, %v6834_v22  ;;  %vm1630_vm3 = vcmp.eq.f32.partialorder %v1629_v25, 8.507059e+37  ;;  %v1771_v48 = vmul.f32 %v6862_v62, %v6743_v33  ;;  %v2543_v7 = vmul.f32 %v1468_v24, %v6278_v28  ;;  %3132 = vmatpush.msra.mxu1 %v2912_v49 }
 0x2a6   : > { %v6900_v37 = vpop.eup %3914  ;;  %v1633_v58 = vsel %vm1630_vm3, %v1632_v10, %v1628_v61  ;;  %v1758_v30 = vmul.f32 %v6810_v12, %v1757_v0  ;;  %v6906_v34 = vadd.f32 1.0, %v3911_v45  ;;  %v2544_v11 = vmul.f32 %v1483_v63, %v6331_v5  ;;  %3113 = vmatpush.msra.mxu0 %v2895_v53  ;;  %v2894_v5 = vld [vmem:[%s7458_s5 + $0x308] sm:$0xff] }
 0x2a7   : > { %v1906_v28 = vmul.f32 %v6900_v37, %v6791_v57  ;;  %v6919_v29 = vadd.f32 1.0, %v3913_v59  ;;  %v6923_v8 = vadd.f32 %v2553_v38, %v2543_v7  ;;  %v1764_v31 = vand.u32 2147483647, %v6704_v60  ;;  %3133 = vmatpush.msra.mxu1 %v2911_v2 }
 0x2a8   : > { %v6914_v19 = vpop.eup %3916  ;;  %v1766_v56 = vand.u32 2147483648, %v6704_v60  ;;  %3920 = vpow2.f32 %v3485_v50  ;;  %v2554_v23 = vmul.f32 %v1633_v58, %v6394_v36  ;;  %vm1761_vm5 = vweird.f32 %v6810_v12  ;;  %3114 = vmatpush.msra.mxu0 %v2894_v5  ;;  %v2893_v36 = vld [vmem:[%s7458_s5 + $0x300] sm:$0xff] }
 0x2a9   : > { %v6921_v55 = vpop.eup %3918  ;;  %v1772_v1 = vsub.f32 1.0, %v1771_v48  ;;  %v6936_v20 = vadd.f32 %v981_v6, %v6233_v40  ;;  %v1759_v16 = vadd.f32 %v6810_v12, %v1758_v30  ;;  %v1921_v35 = vmul.f32 %v6914_v19, %v6797_v4  ;;  %3134 = vmatpush.msra.mxu1 %v2910_v21 }
 0x2aa   : > { %v2056_v39 = vmul.f32 %v6921_v55, %v6799_v52  ;;  %3922 = vrcp.f32 %v6906_v34  ;;  %vm1760_vm7 = vweird.f32 %v6704_v60  ;;  %v1781_v32 = vand.u32 2147483648, %v6743_v33  ;;  %3115 = vmatpush.msra.mxu0 %v2893_v36 }
 0x2ab   : > { %v1907_v15 = vsub.f32 1.0, %v1906_v28  ;;  %3924 = vrcp.f32 %v6919_v29  ;;  %vm6953_vm6 = vcmp.eq.f32.partialorder %v1764_v31, 8.507059e+37  ;;  %v1767_v54 = vor.u32 1.1754944e-38, %v1766_v56  ;;  %vm6961_vm8 = vmor %vm1760_vm7, %vm1761_vm5  ;;  %3135 = vmatpush.msra.mxu1 %v2909_v27 }
 0x2ac   : > { %v1779_v18 = vand.u32 2147483647, %v6743_v33  ;;  %v1916_v0 = vand.u32 2147483648, %v6791_v57  ;;  %v1773_v17 = vmul.f32 %v6862_v62, %v1772_v1  ;;  %vm1775_vm10 = vweird.f32 %v6743_v33 }
 0x2ad   : > { %v1914_v3 = vand.u32 2147483647, %v6791_v57  ;;  %v1931_v45 = vand.u32 2147483648, %v6797_v4  ;;  %v6969_v61 = vadd.f32 %v2554_v23, %v2544_v11  ;;  %v1763_v51 = vsel %vm6961_vm8, %v6810_v12, %v1759_v16 }
 0x2ae   : > { %v3921_v24 = vpop.eup %3920  ;;  %v1922_v59 = vsub.f32 1.0, %v1921_v35  ;;  %v2057_v63 = vsub.f32 1.0, %v2056_v39  ;;  %v1782_v38 = vor.u32 1.1754944e-38, %v1781_v32  ;;  %v1908_v10 = vmul.f32 %v6900_v37, %v1907_v15  ;;  %v983_v35 = vpop.f32.mrf.mxu1 }
 0x2af   : > { %vm1910_vm9 = vweird.f32 %v6791_v57  ;;  %vm1925_vm12 = vweird.f32 %v6797_v4  ;;  %vm1776_vm11 = vweird.f32 %v6862_v62  ;;  %vm6980_vm13 = vcmp.eq.f32.partialorder %v1779_v18, 8.507059e+37 }
 0x2b0   : > { %v6977_v50 = vpop.eup %3922  ;;  %v1917_v49 = vor.u32 1.1754944e-38, %v1916_v0  ;;  %v1929_v12 = vand.u32 2147483647, %v6797_v4  ;;  %v2066_v48 = vand.u32 2147483648, %v6799_v52  ;;  %v1768_v58 = vsel %vm6953_vm6, %v1767_v54, %v1763_v51  ;;  %vm7014_vm2 = vmor %vm1775_vm10, %vm1776_vm11  ;;  %v2793_v54 = vld [vmem:[#allocation2] sm:$0xff] }
 0x2b1   : > { %v6986_v7 = vpop.eup %3924  ;;  %v1774_v30 = vadd.f32 %v6862_v62, %v1773_v17  ;;  %vm6991_vm14 = vcmp.eq.f32.partialorder %v1914_v3, 8.507059e+37  ;;  %v6995_v53 = vor.u32 1.1754944e-38, %v1931_v45  ;;  %v6997_v2 = vadd.f32 1.0, %v3921_v24 }
 0x2b2   : > { %v1923_v11 = vmul.f32 %v6914_v19, %v1922_v59  ;;  %v2058_v28 = vmul.f32 %v6921_v55, %v2057_v63  ;;  %vm2060_vm15 = vweird.f32 %v6799_v52  ;;  %v2064_v31 = vand.u32 2147483647, %v6799_v52 }
 0x2b3   : > { %v1909_v56 = vadd.f32 %v6900_v37, %v1908_v10  ;;  %vm1911_vm1 = vweird.f32 %v6900_v37  ;;  %v2071_v5 = vmul.f32 %v6977_v50, %v6906_v34  ;;  %v2206_v21 = vmul.f32 %v6986_v7, %v6919_v29 }
 0x2b4   : > { %v2563_v23 = vmul.f32 %v1768_v58, %v6603_v26  ;;  %vm1926_vm0 = vweird.f32 %v6914_v19  ;;  %v7019_v16 = vor.u32 1.1754944e-38, %v2066_v48  ;;  %3926 = vrcp.f32 %v6997_v2  ;;  %vm7029_vm5 = vmor %vm1910_vm9, %vm1911_vm1 }
 0x2b5   : > { %v1778_v39 = vsel %vm7014_vm2, %v6862_v62, %v1774_v30  ;;  %vm2061_vm3 = vweird.f32 %v6921_v55  ;;  %v2079_v26 = vand.u32 2147483647, %v6906_v34  ;;  %v2207_v33 = vsub.f32 1.0, %v2206_v21  ;;  %v1012_v62 = vpop.f32.mrf.mxu2  ;;  %vm7059_vm8 = vmor %vm1925_vm12, %vm1926_vm0 }
 0x2b6   : > { %v1924_v27 = vadd.f32 %v6914_v19, %v1923_v11  ;;  %v2059_v32 = vadd.f32 %v6921_v55, %v2058_v28  ;;  %v3494_v15 = vmul.f32 -1.442695, %v6936_v20  ;;  %v7037_v25 = vadd.f32 %v1010_v44, %v6271_v41  ;;  %vm7071_vm10 = vmor %vm2060_vm15, %vm2061_vm3  ;;  %v2892_v11 = vld [vmem:[%s7458_s5 + $0x2f8] sm:$0xff] }
 0x2b7   : > { %v1913_v18 = vsel %vm7029_vm5, %v6900_v37, %v1909_v56  ;;  %vm7042_vm7 = vcmp.eq.f32.partialorder %v1929_v12, 8.507059e+37  ;;  %vm7046_vm6 = vcmp.eq.f32.partialorder %v2064_v31, 8.507059e+37  ;;  %v2072_v60 = vsub.f32 1.0, %v2071_v5 }
 0x2b8   : > { %v2081_v17 = vand.u32 2147483648, %v6906_v34  ;;  %v7052_v44 = vadd.f32 %v983_v35, %v6233_v40  ;;  %v2722_v3 = vadd.f32 %v6923_v8, %v2563_v23  ;;  %v2208_v45 = vmul.f32 %v6986_v7, %v2207_v33 }
 0x2b9   : > { %3928 = vpow2.f32 %v3494_v15  ;;  %v3495_v24 = vmul.f32 -1.442695, %v7037_v25  ;;  %v1783_v51 = vsel %vm6980_vm13, %v1782_v38, %v1778_v39  ;;  %vm2075_vm9 = vweird.f32 %v6906_v34 }
 0x2ba   : > { %v3504_v4 = vmul.f32 -1.442695, %v7052_v44  ;;  %v7078_v8 = vadd.f32 %v1012_v62, %v6271_v41  ;;  %v7080_v59 = vmul.f32 0.015625, %v2793_v54  ;;  %v7082_v63 = vpop.eup %3926  ;;  %v1918_v38 = vsel %vm6991_vm14, %v1917_v49, %v1913_v18  ;;  %v2940_v54 = vld [vmem:[%s7458_s5 + $0x478] sm:$0xff] }
 0x2bb   : > { %v1928_v52 = vsel %vm7059_vm8, %v6914_v19, %v1924_v27  ;;  %v2063_v10 = vsel %vm7071_vm10, %v6921_v55, %v2059_v32  ;;  %3930 = vpow2.f32 %v3495_v24  ;;  %v2073_v42 = vmul.f32 %v6977_v50, %v2072_v60  ;;  %v2889_v60 = vld [vmem:[%s7458_s5 + $0x2e0] sm:$0xff]  ;;  %3140 = vmatpush.msra.mxu2 %v2940_v54 }
 0x2bc   : > { %vm2211_vm12 = vweird.f32 %v6986_v7  ;;  %v2221_v41 = vmul.f32 %v7082_v63, %v6997_v2  ;;  %3932 = vpow2.f32 %v3504_v4  ;;  %v2209_v12 = vadd.f32 %v6986_v7, %v2208_v45  ;;  %v2888_v45 = vld [vmem:[%s7458_s5 + $0x2d8] sm:$0xff] }
 0x2bd   : > { %v3505_v49 = vmul.f32 -1.442695, %v7078_v8  ;;  %v2960_v48 = vperm.slane %v7080_v59, 0  ;;  %v2962_v19 = vperm.slane %v7080_v59, 2  ;;  %v2216_v58 = vand.u32 2147483648, %v6919_v29 }
 0x2be   : > { %v2222_v55 = vsub.f32 1.0, %v2221_v41  ;;  %v2963_v30 = vperm.slane %v7080_v59, 3  ;;  %v2964_v6 = vperm.slane %v7080_v59, 4  ;;  %v2573_v31 = vmul.f32 %v1918_v38, %v6654_v9  ;;  %v2938_v38 = vld [vmem:[%s7458_s5 + $0x468] sm:$0xff] }
 0x2bf   : > { %v3929_v28 = vpop.eup %3928  ;;  %vm2210_vm11 = vweird.f32 %v6919_v29  ;;  %v2214_v56 = vand.u32 2147483647, %v6919_v29  ;;  %3934 = vpow2.f32 %v3505_v49  ;;  %2996 = vmatmul.f32.vlgmr.msra.gmra.mxu3 %v2960_v48  ;;  %3036 = vmatmul.f32.vlgmr.msrb.gmra.mxu0 %v2962_v19  ;;  %v2564_v5 = vmul.f32 %v1783_v51, %v6638_v13  ;;  %v2891_v29 = vld [vmem:[%s7458_s5 + $0x2f0] sm:$0xff] }
 0x2c0   : > { %v2074_v21 = vadd.f32 %v6977_v50, %v2073_v42  ;;  %vm2076_vm13 = vweird.f32 %v6977_v50  ;;  %vm7114_vm14 = vmor %vm2210_vm11, %vm2211_vm12  ;;  %v7118_v9 = vadd.f32 1.0, %v3929_v28  ;;  %3056 = vmatmul.f32.vlgmr.msrb.gmra.mxu1 %v2963_v30  ;;  %3076 = vmatmul.f32.vlgmr.msrb.gmra.mxu2 %v2964_v6  ;;  %v1933_v13 = vsel %vm7042_vm7, %v6995_v53, %v1928_v52  ;;  %v2944_v6 = vld [vmem:[%s7458_s5 + $0x498] sm:$0xff] }
 0x2c1   : > { %v3931_v1 = vpop.eup %3930  ;;  %v2068_v35 = vsel %vm7046_vm6, %v7019_v16, %v2063_v10  ;;  %v2213_v39 = vsel %vm7114_vm14, %v6986_v7, %v2209_v12  ;;  %v2223_v33 = vmul.f32 %v7082_v63, %v2222_v55  ;;  %3080 = vmatpush.msra.mxu3 %v2892_v11  ;;  %vm7135_vm15 = vcmp.eq.f32.partialorder %v2079_v26, 8.507059e+37  ;;  %v2890_v16 = vld [vmem:[%s7458_s5 + $0x2e8] sm:$0xff]  ;;  %vm7147_vm1 = vmor %vm2075_vm9, %vm2076_vm13  ;;  %v2887_v12 = vld [vmem:[%s7458_s5 + $0x2d0] sm:$0xff] }
 0x2c2   : > { %v3933_v36 = vpop.eup %3932  ;;  %v2082_v32 = vor.u32 1.1754944e-38, %v2081_v17  ;;  %v2217_v53 = vor.u32 1.1754944e-38, %v2216_v58  ;;  %3936 = vrcp.f32 %v7118_v9  ;;  %v2723_v15 = vadd.f32 %v2722_v3, %v2573_v31  ;;  %v2937_v58 = vld [vmem:[%s7458_s5 + $0x460] sm:$0xff] }
 0x2c3   : > { %vm2215_vm2 = vcmp.eq.f32.partialorder %v2214_v56, 8.507059e+37  ;;  %v7151_v26 = vadd.f32 1.0, %v3931_v1  ;;  %v7153_v62 = vadd.f32 1.0, %v3933_v36  ;;  %3081 = vmatpush.msra.mxu3 %v2891_v29  ;;  %v2574_v18 = vmul.f32 %v1933_v13, %v6659_v46  ;;  %v2885_v13 = vld [vmem:[%s7458_s5 + $0x2c0] sm:$0xff]  ;;  %v2935_v36 = vld [vmem:[%s7458_s5 + $0x450] sm:$0xff] }
 0x2c4   : > { %v2583_v57 = vmul.f32 %v2068_v35, %v6662_v47  ;;  %v2078_v34 = vsel %vm7147_vm1, %v6977_v50, %v2074_v21  ;;  %v2218_v0 = vsel %vm2215_vm2, %v2217_v53, %v2213_v39  ;;  %v2224_v3 = vadd.f32 %v7082_v63, %v2223_v33  ;;  %v2939_v47 = vld [vmem:[%s7458_s5 + $0x470] sm:$0xff]  ;;  %v2936_v21 = vld [vmem:[%s7458_s5 + $0x458] sm:$0xff] }
 0x2c5   : > { %v3935_v17 = vpop.eup %3934  ;;  %vm2226_vm0 = vweird.f32 %v7082_v63  ;;  %3938 = vrcp.f32 %v7151_v26  ;;  %3082 = vmatpush.msra.mxu3 %v2890_v16  ;;  %v2966_v46 = vperm.slane %v7080_v59, 6  ;;  %v2231_v50 = vand.u32 2147483648, %v6997_v2  ;;  %3141 = vmatpush.msra.mxu2 %v2939_v47  ;;  %v2884_v16 = vld [vmem:[%s7458_s5 + $0x2b8] sm:$0xff] }
 0x2c6   : > { %3940 = vrcp.f32 %v7153_v62  ;;  %v2961_v37 = vperm.slane %v7080_v59, 1  ;;  %v2967_v24 = vperm.slane %v7080_v59, 7  ;;  %v2593_v51 = vmul.f32 %v2218_v0, %v6692_v14  ;;  %v2881_v14 = vld [vmem:[%s7458_s5 + $0x2a0] sm:$0xff] }
 0x2c7   : > { %vm2225_vm3 = vweird.f32 %v6997_v2  ;;  %v2229_v40 = vand.u32 2147483647, %v6997_v2  ;;  %v310_v4 = vlaneseq  ;;  %3083 = vmatpush.msra.mxu3 %v2889_v60  ;;  %3116 = vmatmul.f32.vlgmr.msra.gmra.mxu0 %v2966_v46  ;;  %v2735_v10 = vadd.f32 %v6969_v61, %v2564_v5  ;;  %v2883_v60 = vld [vmem:[%s7458_s5 + $0x2b0] sm:$0xff] }
 0x2c8   : > { %v7186_v52 = vpop.eup %3936  ;;  %v2083_v42 = vsel %vm7135_vm15, %v2082_v32, %v2078_v34  ;;  %vm7193_vm5 = vmor %vm2225_vm3, %vm2226_vm0  ;;  %v2364_v2 = vand.u32 2147483647, %v7118_v9  ;;  %v7198_v41 = vadd.f32 1.0, %v3935_v17  ;;  %3016 = vmatmul.f32.vlgmr.msrb.gmra.mxu3 %v2961_v37  ;;  %3136 = vmatmul.f32.vlgmr.msra.gmra.mxu1 %v2967_v24  ;;  %v2724_v61 = vadd.f32 %v2723_v15, %v2583_v57  ;;  %v2934_v57 = vld [vmem:[%s7458_s5 + $0x448] sm:$0xff]  ;;  %v2933_v17 = vld [vmem:[%s7458_s5 + $0x440] sm:$0xff] }
 0x2c9   : > { %v2228_v49 = vsel %vm7193_vm5, %v7082_v63, %v2224_v3  ;;  %v2356_v48 = vmul.f32 %v7186_v52, %v7118_v9  ;;  %v2366_v19 = vand.u32 2147483648, %v7118_v9  ;;  %3084 = vmatpush.msra.mxu3 %v2888_v45  ;;  %3142 = vmatpush.msra.mxu2 %v2938_v38  ;;  %v7212_v55 = vadd.f32 %v2735_v10, %v2574_v18  ;;  %v2886_v63 = vld [vmem:[%s7458_s5 + $0x2c8] sm:$0xff]  ;;  %v2949_v37 = vld [vmem:[%s7458_s5 + $0x4c0] sm:$0xff] }
 0x2ca   : > { %v2232_v30 = vor.u32 1.1754944e-38, %v2231_v50  ;;  %vm7214_vm7 = vcmp.lt.s32.totalorder %v310_v4, 256  ;;  %3942 = vrcp.f32 %v7198_v41  ;;  %v7225_v28 = vmul.f32 %v2083_v42, %v6678_v43  ;;  %v2882_v24 = vld [vmem:[%s7458_s5 + $0x2a8] sm:$0xff] }
 0x2cb   : > { %v7222_v11 = vpop.eup %3938  ;;  %v7227_v31 = vadd.f32 %v2724_v61, %v2593_v51  ;;  %vm2230_vm6 = vcmp.eq.f32.partialorder %v2229_v40, 8.507059e+37  ;;  %v2357_v56 = vsub.f32 1.0, %v2356_v48  ;;  %v4025_v5 = vmov 0.0   ;;  %3085 = vmatpush.msra.mxu3 %v2887_v12  ;;  %3143 = vmatpush.msra.mxu2 %v2937_v58  ;;  %v2946_v4 = vld [vmem:[%s7458_s5 + $0x4a8] sm:$0xff] }
 0x2cc   : > { %314 = vst.msk [vmem:[#allocation2 + $0x8] sm:$0x3] %vm7214_vm7, %v4025_v5  ;;  %v7234_v23 = vpop.eup %3940  ;;  %v2233_v29 = vsel %vm2230_vm6, %v2232_v30, %v2228_v49  ;;  %vm2360_vm8 = vweird.f32 %v7118_v9  ;;  %vm7237_vm10 = vcmp.eq.f32.partialorder %v2364_v2, 8.507059e+37  ;;  %v2371_v1 = vmul.f32 %v7222_v11, %v7151_v26 }
 0x2cd   : > { %v2358_v35 = vmul.f32 %v7186_v52, %v2357_v56  ;;  %vm2361_vm9 = vweird.f32 %v7186_v52  ;;  %v2367_v39 = vor.u32 1.1754944e-38, %v2366_v19  ;;  %v2506_v33 = vmul.f32 %v7234_v23, %v7153_v62  ;;  %3086 = vmatpush.msra.mxu3 %v2886_v63  ;;  %3144 = vmatpush.msra.mxu2 %v2936_v21  ;;  %v2880_v19 = vld [vmem:[%s7458_s5 + $0x298] sm:$0xff]  ;;  %v2878_v21 = vld [vmem:[%s7458_s5 + $0x288] sm:$0xff] }
 0x2ce   : > { %v2372_v27 = vsub.f32 1.0, %v2371_v1  ;;  %vm2375_vm12 = vweird.f32 %v7151_v26  ;;  %v2379_v32 = vand.u32 2147483647, %v7151_v26  ;;  %v2381_v53 = vand.u32 2147483648, %v7151_v26  ;;  %vm2362_vm11 = vmor %vm2360_vm8, %vm2361_vm9  ;;  %v2928_v1 = vld [vmem:[%s7458_s5 + $0x418] sm:$0xff] }
 0x2cf   : > { %v2594_v15 = vmul.f32 %v2233_v29, %v6834_v22  ;;  %v2359_v7 = vadd.f32 %v7186_v52, %v2358_v35  ;;  %v2507_v54 = vsub.f32 1.0, %v2506_v33  ;;  %v2514_v18 = vand.u32 2147483647, %v7153_v62  ;;  %3087 = vmatpush.msra.mxu3 %v2885_v13  ;;  %3145 = vmatpush.msra.mxu2 %v2935_v36  ;;  %v2877_v13 = vld [vmem:[%s7458_s5 + $0x280] sm:$0xff]  ;;  %v2927_v33 = vld [vmem:[%s7458_s5 + $0x410] sm:$0xff] }
 0x2d0   : > { %v3943_v34 = vpop.eup %3942  ;;  %v2373_v0 = vmul.f32 %v7222_v11, %v2372_v27  ;;  %vm2376_vm13 = vweird.f32 %v7222_v11  ;;  %vm2510_vm14 = vweird.f32 %v7153_v62  ;;  %v2516_v22 = vand.u32 2147483648, %v7153_v62  ;;  %v2931_v62 = vld [vmem:[%s7458_s5 + $0x430] sm:$0xff] }
 0x2d1   : > { %v2363_v3 = vsel %vm2362_vm11, %v7186_v52, %v2359_v7  ;;  %v2508_v9 = vmul.f32 %v7234_v23, %v2507_v54  ;;  %vm2511_vm15 = vweird.f32 %v7234_v23  ;;  %v2521_v46 = vmul.f32 %v3943_v34, %v7198_v41  ;;  %3088 = vmatpush.msra.mxu3 %v2884_v16  ;;  %3146 = vmatpush.msra.mxu2 %v2934_v57  ;;  %vm2377_vm2 = vmor %vm2375_vm12, %vm2376_vm13  ;;  %v2932_v52 = vld [vmem:[%s7458_s5 + $0x438] sm:$0xff]  ;;  %v2955_v16 = vld [vmem:[%s7458_s5 + $0x4f0] sm:$0xff] }
 0x2d2   : > { %v2368_v47 = vsel %vm7237_vm10, %v2367_v39, %v2363_v3  ;;  %v2374_v50 = vadd.f32 %v7222_v11, %v2373_v0  ;;  %vm7286_vm1 = vcmp.eq.f32.partialorder %v2379_v32, 8.507059e+37  ;;  %v2382_v45 = vor.u32 1.1754944e-38, %v2381_v53  ;;  %vm2512_vm3 = vmor %vm2510_vm14, %vm2511_vm15  ;;  %v2926_v53 = vld [vmem:[%s7458_s5 + $0x408] sm:$0xff]  ;;  %v2953_v57 = vld [vmem:[%s7458_s5 + $0x4e0] sm:$0xff] }
 0x2d3   : > { %v2603_v51 = vmul.f32 %v2368_v47, %v6936_v20  ;;  %v2509_v40 = vadd.f32 %v7234_v23, %v2508_v9  ;;  %vm7299_vm0 = vcmp.eq.f32.partialorder %v2514_v18, 8.507059e+37  ;;  %v2522_v38 = vsub.f32 1.0, %v2521_v46  ;;  %3089 = vmatpush.msra.mxu3 %v2883_v60  ;;  %3147 = vmatpush.msra.mxu2 %v2933_v17  ;;  %v2954_v7 = vld [vmem:[%s7458_s5 + $0x4e8] sm:$0xff]  ;;  %v2952_v0 = vld [vmem:[%s7458_s5 + $0x4d8] sm:$0xff]  ;;  %v2951_v17 = vld [vmem:[%s7458_s5 + $0x4d0] sm:$0xff] }
 0x2d4   : > { %v2378_v20 = vsel %vm2377_vm2, %v7222_v11, %v2374_v50  ;;  %v2517_v26 = vor.u32 1.1754944e-38, %v2516_v22  ;;  %v2529_v10 = vand.u32 2147483647, %v7198_v41  ;;  %v2531_v42 = vand.u32 2147483648, %v7198_v41  ;;  %v2950_v9 = vld [vmem:[%s7458_s5 + $0x4c8] sm:$0xff] }
 0x2d5   : > { %v2383_v2 = vsel %vm7286_vm1, %v2382_v45, %v2378_v20  ;;  %v2513_v12 = vsel %vm2512_vm3, %v7234_v23, %v2509_v40  ;;  %v2523_v61 = vmul.f32 %v3943_v34, %v2522_v38  ;;  %vm2526_vm5 = vweird.f32 %v3943_v34  ;;  %3090 = vmatpush.msra.mxu3 %v2882_v24  ;;  %3148 = vmatpush.msra.mxu2 %v2932_v52  ;;  %v2616_v47 = vld [vmem:[#allocation2 + $0x8] sm:$0x3]  ;;  %v2947_v40 = vld [vmem:[%s7458_s5 + $0x4b0] sm:$0xff]  ;;  %v2945_v38 = vld [vmem:[%s7458_s5 + $0x4a0] sm:$0xff] }
 0x2d6   : > { %v2737_v49 = vadd.f32 %v7212_v55, %v7225_v28  ;;  %v2518_v48 = vsel %vm7299_vm0, %v2517_v26, %v2513_v12  ;;  %vm2525_vm6 = vweird.f32 %v7198_v41  ;;  %v2726_v58 = vadd.f32 %v7227_v31, %v2603_v51  ;;  %v2930_v55 = vld [vmem:[%s7458_s5 + $0x428] sm:$0xff]  ;;  %v2879_v41 = vld [vmem:[%s7458_s5 + $0x290] sm:$0xff]  ;;  %v2948_v51 = vld [vmem:[%s7458_s5 + $0x4b8] sm:$0xff] }
 0x2d7   : > { %v2604_v30 = vmul.f32 %v2383_v2, %v7037_v25  ;;  %v2613_v63 = vmul.f32 %v2518_v48, %v7052_v44  ;;  %v2524_v11 = vadd.f32 %v3943_v34, %v2523_v61  ;;  %3091 = vmatpush.msra.mxu3 %v2881_v14  ;;  %vm2527_vm8 = vmor %vm2525_vm6, %vm2526_vm5  ;;  %v2532_v28 = vor.u32 1.1754944e-38, %v2531_v42  ;;  %3149 = vmatpush.msra.mxu2 %v2931_v62  ;;  %v2929_v25 = vld [vmem:[%s7458_s5 + $0x420] sm:$0xff]  ;;  %v2943_v20 = vld [vmem:[%s7458_s5 + $0x490] sm:$0xff] }
 0x2d8   : > { %v2738_v56 = vadd.f32 %v2737_v49, %v2594_v15  ;;  %vm2530_vm10 = vcmp.eq.f32.partialorder %v2529_v10, 8.507059e+37  ;;  %v2965_v36 = vperm.slane %v7080_v59, 5  ;;  %v2925_v59 = vld [vmem:[%s7458_s5 + $0x400] sm:$0xff]  ;;  %v2942_v10 = vld [vmem:[%s7458_s5 + $0x488] sm:$0xff] }
 0x2d9   : > { %v2727_v5 = vadd.f32 %v2726_v58, %v2613_v63  ;;  %v2528_v31 = vsel %vm2527_vm8, %v3943_v34, %v2524_v11  ;;  %3092 = vmatpush.msra.mxu3 %v2880_v19  ;;  %3150 = vmatpush.msra.mxu2 %v2930_v55  ;;  %v2941_v14 = vld [vmem:[%s7458_s5 + $0x480] sm:$0xff] }
 0x2da   : > { %v2533_v44 = vsel %vm2530_vm10, %v2532_v28, %v2528_v31  ;;  %v2739_v23 = vadd.f32 %v2738_v56, %v2604_v30  ;;  %v2957_v61 = vld [vmem:[%s7459_s6] sm:$0x1] }
 0x2db   : > { %v2728_v29 = vrot.slane %v2727_v5, 4  ;;  %v2614_v43 = vmul.f32 %v2533_v44, %v7078_v8  ;;  %3093 = vmatpush.msra.mxu3 %v2879_v41  ;;  %3151 = vmatpush.msra.mxu2 %v2929_v25  ;;  %v2956_v8 = vld [vmem:[%s7458_s5 + $0x4f8] sm:$0xff] }
 0x2dd   : > { %v2729_v35 = vadd.f32 %v2728_v29, %v2727_v5  ;;  %v2740_v39 = vadd.f32 %v2739_v23, %v2614_v43  ;;  %3094 = vmatpush.msra.mxu3 %v2878_v21  ;;  %3152 = vmatpush.msra.mxu2 %v2928_v1 }
 0x2df   : > { %v2730_v27 = vrot.slane %v2729_v35, 2  ;;  %v2741_v32 = vrot.slane %v2740_v39, 4  ;;  %3095 = vmatpush.msra.mxu3 %v2877_v13  ;;  %3153 = vmatpush.msra.mxu2 %v2927_v33 }
 0x2e0   : > { %3096 = vmatmul.f32.vlgmr.msra.gmra.mxu3 %v2965_v36 }
 0x2e1   : > { %v2742_v15 = vadd.f32 %v2741_v32, %v2740_v39  ;;  %3160 = vmatpush.msrb.mxu3 %v2956_v8  ;;  %3154 = vmatpush.msra.mxu2 %v2926_v53  ;;  %v2731_v54 = vadd.f32 %v2730_v27, %v2729_v35 }
 0x2e3   : > { %v2743_v18 = vrot.slane %v2742_v15, 2  ;;  %3161 = vmatpush.msrb.mxu3 %v2955_v16  ;;  %3155 = vmatpush.msra.mxu2 %v2925_v59  ;;  %v2732_v22 = vrot.slane %v2731_v54, 1 }
 0x2e5   : > { %v2744_v34 = vadd.f32 %v2743_v18, %v2742_v15  ;;  %3162 = vmatpush.msrb.mxu3 %v2954_v7  ;;  %v2733_v46 = vadd.f32 %v2732_v22, %v2731_v54 }
 0x2e7   : > { %v2745_v60 = vrot.slane %v2744_v34, 1  ;;  %3163 = vmatpush.msrb.mxu3 %v2953_v57 }
 0x2e9   : > { %v2746_v3 = vadd.f32 %v2745_v60, %v2744_v34  ;;  %3164 = vmatpush.msrb.mxu3 %v2952_v0 }
 0x2eb   : > { %v2764_v50 = vrot.slane %v2746_v3, 7  ;;  %3165 = vmatpush.msrb.mxu3 %v2951_v17 }
 0x2ed   : > { %v2779_v45 = vsel %vm2765_vm4, %v2733_v46, %v2764_v50  ;;  %3166 = vmatpush.msrb.mxu3 %v2950_v9 }
 0x2ee   : > { %v2783_v24 = vadd.f32 %v2779_v45, %v2616_v47 }
 0x2ef   : > { %3167 = vmatpush.msrb.mxu3 %v2949_v37 }
 0x2f0   : > { %2789 = vst.msk [vmem:[#allocation2 + $0x8] sm:$0x3] %vm7214_vm7, %v2783_v24 }
 0x2f1   : > { %3168 = vmatpush.msrb.mxu3 %v2948_v51 }
 0x2f3   : > { %3169 = vmatpush.msrb.mxu3 %v2947_v40 }
 0x2f5   : > { %3170 = vmatpush.msrb.mxu3 %v2946_v4 }
 0x2f7   : > { %3171 = vmatpush.msrb.mxu3 %v2945_v38  ;;  %v2794_v52 = vld [vmem:[#allocation2 + $0x8] sm:$0x3] }
 0x2f8   : > { %v2796_v26 = vmul.f32 0.015625, %v2794_v52 }
 0x2f9   : > { %3172 = vmatpush.msrb.mxu3 %v2944_v6 }
 0x2fa   : > { %v2968_v42 = vperm.slane %v2796_v26, 0  ;;  %v2969_v2 = vperm.slane %v2796_v26, 1 }
 0x2fb   : > { %3173 = vmatpush.msrb.mxu3 %v2943_v20 }
 0x2fc   : > { %3156 = vmatmul.f32.vlgmr.msra.gmra.mxu2 %v2968_v42 }
 0x2fd   : > { %3174 = vmatpush.msrb.mxu3 %v2942_v10 }
 0x2ff   : > { %3175 = vmatpush.msrb.mxu3 %v2941_v14 }
 0x300   : > { %3176 = vmatmul.f32.vlgmr.msrb.gmra.mxu3 %v2969_v2 }
 0x33c   : > { %v3037_v19 = vpop.f32.mrf.mxu0 }
 0x33d   : > { %v3057_v30 = vpop.f32.mrf.mxu1 }
 0x342   : > { %v2997_v12 = vpop.f32.mrf.mxu3 }
 0x343   : > { %v2998_v49 = vadd.f32 %v2997_v12, %v2957_v61  ;;  %v3077_v11 = vpop.f32.mrf.mxu2 }
 0x344   : > { %v3117_v56 = vpop.f32.mrf.mxu0 }
 0x345   : > { %v3137_v31 = vpop.f32.mrf.mxu1 }
 0x34b   : > { %v3017_v62 = vpop.f32.mrf.mxu3 }
 0x34c   : > { %v3018_v48 = vadd.f32 %v3017_v62, %v2998_v49 }
 0x34e   : > { %v3038_v58 = vadd.f32 %v3037_v19, %v3018_v48 }
 0x350   : > { %v3058_v63 = vadd.f32 %v3057_v30, %v3038_v58 }
 0x352   : > { %v3078_v28 = vadd.f32 %v3077_v11, %v3058_v63 }
 0x363   : > { %v3097_v55 = vpop.f32.mrf.mxu3 }
 0x364   : > { %v3098_v41 = vadd.f32 %v3097_v55, %v3078_v28 }
 0x366   : > { %v3118_v5 = vadd.f32 %v3117_v56, %v3098_v41 }
 0x368   : > { %v3138_v25 = vadd.f32 %v3137_v31, %v3118_v5 }
 0x37f   : > { %v3157_v44 = vpop.f32.mrf.mxu2 }
 0x380   : > { %v3158_v21 = vadd.f32 %v3157_v44, %v3138_v25 }
 0x383   : > { %v3177_v23 = vpop.f32.mrf.mxu3 }
 0x384   : > { %v3178_v29 = vadd.f32 %v3177_v23, %v3158_v21 }
 0x386   : > { %3180 = vst [vmem:[%s293_s22] sm:$0x1] %v3178_v29 }
 0x387   : > { %3972 = shalt.err (!%p3969_p5)
}
 0x388   : > { %3535 = dma.vmem_to_hbm [thread:$0]  (%p4106_p4), %s3193_s23, 16, %s3195_s30, %s3182_s8  }
 0x389 PF: > { %p3541_p6 = scmp.ge.s32.totalorder %s4023_s29, 2  ;;  %s3206_s18 = sand.u32 1, %s4003_s24  }
 0x38a   : > { %s3207_s20 = scalar_lea.sflag [#allocation4], %s3206_s18 }
 0x38b   : > { %p3538_p7 = pnand %p3541_p6, %p4113_p8 }
 0x38d   : > { %p3539_p9 = pneg %p3538_p7 }
 0x38f   : > { %3998 = dma.done.wait (%p3539_p9), %s3207_s20, 16  }
 0x390   : > { %4000 = vsyncadd (%p3539_p9), %s3207_s20, 4294967280  ;;  %s20_s29 = sadd.s32 1, %s4023_s29   ;;  %s7693_s24 = smov %s4007_s25 }
 0x391   : > { %p17_p10 = scmp.ge.s32.totalorder %s20_s29, 4   ;;  %s7694_s25 = smov %s4011_s26 }
 0x392   : > { %s7695_s26 = smov %s4119_s14  ;;  %s7696_s27 = smov %s4019_s28 }
 0x393   : > { %s7697_s28 = smov %s7699_s9  ;;  %19 = sbr.rel (!%p17_p10) target bundleno = 4 (0x4), region = 91 }
 0x398   :  { %3212 = vsyncpa [#allocation4], 1 }
 0x399   :  { %3214 = vsyncpa [#allocation4 + $0x1], 1 }

</bundles_post_ra>
